<compile_context>
chip_gen: v5e
topology: v5e:2x2
jax: 0.10.0
libtpu: 0.0.40
codegen_flags: <defaults>
</compile_context>

<pallas_src>
from functools import partial

import jax
import jax.numpy as jnp
from jax import lax
from jax.experimental import pallas as pl
from jax.experimental.pallas import tpu as pltpu


def _maxpool2x2(y):
    """2x2/stride-2 max-pool on an (H, W, C) value (lane dim C unchanged)."""
    H, W, C = y.shape
    y = y.reshape(H, W // 2, 2, C)
    y = jnp.maximum(y[:, :, 0, :], y[:, :, 1, :])      # pool over W
    y = y.reshape(H // 2, 2, W // 2, C)
    y = jnp.maximum(y[:, 0], y[:, 1])                  # pool over H
    return y


def _zero_border(pad_ref, Hi, Wi):
    """Zero only the 1-pixel border of a (Hi+2, Wi+2, C) VMEM pad buffer.

    The interior is fully overwritten every grid step, so zeroing only the
    border halves the VMEM store traffic vs. a full-buffer memset.
    """
    C = pad_ref.shape[-1]
    zrow = jnp.zeros((1, Wi + 2, C), jnp.float32)
    zcol = jnp.zeros((Hi + 2, 1, C), jnp.float32)
    pad_ref[0:1, :, :] = zrow
    pad_ref[Hi + 1:Hi + 2, :, :] = zrow
    pad_ref[:, 0:1, :] = zcol
    pad_ref[:, Wi + 1:Wi + 2, :] = zcol


def _conv3x3_relu_im2col(pad_ref, w_ref, b_ref, Hi, Wi):
    """SAME 3x3 conv + bias + relu via a single im2col MXU matmul.

    pad_ref: (Hi+2, Wi+2, Cin) zero-padded activation in VMEM.
    w_ref  : (9*Cin, Cout) tap-major im2col weight.
    b_ref  : (1, Cout).
    Returns (Hi, Wi, Cout) float32.
    """
    Cin = pad_ref.shape[-1]
    Cout = w_ref.shape[-1]
    cols = []
    for t in range(9):
        kh, kw = t // 3, t % 3
        cols.append(pad_ref[kh:kh + Hi, kw:kw + Wi, :].reshape(Hi * Wi, Cin))
    im = jnp.concatenate(cols, axis=-1)                # (Hi*Wi, 9*Cin)
    y = jnp.dot(im, w_ref[...], preferred_element_type=jnp.float32)
    return jnp.maximum(y + b_ref[0], 0.0).reshape(Hi, Wi, Cout)


def _cnn_fused_kernel(x_ref, w1_ref, b1_ref, w2_ref, b2_ref, w3_ref, b3_ref,
                      o_ref, pad1_ref, pad2_ref, pad3_ref, *, H, W):
    """Full CNN forward for one image; all intermediates stay in VMEM.

    x_ref : (1, H, W, 1)          input image (NHWC, Cin=1)
    w1_ref: (9, C1)               conv1 taps (tap-major), Cin=1 squeezed
    w2_ref: (9*C1, C2)            conv2 im2col weight
    w3_ref: (9*C2, C3)            conv3 im2col weight
    b*_ref: (1, C*)
    o_ref : (1, H/8, W/8, C3)     output (NHWC, lane-dense C3=128)
    pad*_ref: VMEM zero-padded activation buffers per layer.
    """
    C1 = w1_ref.shape[-1]
    H1, W1 = H // 2, W // 2
    H2, W2 = H1 // 2, W1 // 2

    # ------------- layer 1: Cin=1 -> VPU broadcast conv (no MXU) ------------
    _zero_border(pad1_ref, H, W)
    pad1_ref[1:H + 1, 1:W + 1, :] = x_ref[0]
    acc1 = jnp.zeros((H, W, C1), jnp.float32)
    for t in range(9):
        kh, kw = t // 3, t % 3
        patch = pad1_ref[kh:kh + H, kw:kw + W, :]      # (H, W, 1)
        acc1 = acc1 + patch * w1_ref[t]                # broadcast over C1 lanes
    y1 = jnp.maximum(acc1 + b1_ref[0], 0.0)
    p1 = _maxpool2x2(y1)                               # (H1, W1, C1)

    # ------------- layer 2: im2col matmul, K = 9*C1 -------------------------
    _zero_border(pad2_ref, H1, W1)
    pad2_ref[1:H1 + 1, 1:W1 + 1, :] = p1
    y2 = _conv3x3_relu_im2col(pad2_ref, w2_ref, b2_ref, H1, W1)
    # dropout (Dropout2d, eval mode): identity
    p2 = _maxpool2x2(y2)                               # (H2, W2, C2)

    # ------------- layer 3: im2col matmul, K = 9*C2 -------------------------
    _zero_border(pad3_ref, H2, W2)
    pad3_ref[1:H2 + 1, 1:W2 + 1, :] = p2
    y3 = _conv3x3_relu_im2col(pad3_ref, w3_ref, b3_ref, H2, W2)
    p3 = _maxpool2x2(y3)                               # (H/8, W/8, C3)

    o_ref[0] = p3.astype(o_ref.dtype)


def cnn_forward(x_nchw, params):
    """Pallas implementation of CNN.forward. Input/output in PyTorch NCHW."""
    (w1, b1), (w2, b2), (w3, b3) = params
    N, Cin, H, W = x_nchw.shape
    assert Cin == 1 and H % 8 == 0 and W % 8 == 0
    C1, C2, C3 = w1.shape[-1], w2.shape[-1], w3.shape[-1]
    H3, W3 = H // 8, W // 8

    # NCHW with Cin=1 -> NHWC is just a reshape (no real transpose).
    x = x_nchw.reshape(N, H, W, 1)
    # Flatten conv weights to im2col layout (tap-major, cin within tap).
    w1f = w1.reshape(9, C1)            # (3,3,1,C1)  -> (9, C1)
    w2f = w2.reshape(9 * C1, C2)       # (3,3,C1,C2) -> (9*C1, C2)
    w3f = w3.reshape(9 * C2, C3)       # (3,3,C2,C3) -> (9*C2, C3)

    kernel = partial(_cnn_fused_kernel, H=H, W=W)
    out = pl.pallas_call(
        kernel,
        out_shape=jax.ShapeDtypeStruct((N, H3, W3, C3), x_nchw.dtype),
        grid=(N,),
        in_specs=[
            pl.BlockSpec((1, H, W, 1), lambda n: (n, 0, 0, 0)),
            pl.BlockSpec((9, C1), lambda n: (0, 0)),
            pl.BlockSpec((1, C1), lambda n: (0, 0)),
            pl.BlockSpec((9 * C1, C2), lambda n: (0, 0)),
            pl.BlockSpec((1, C2), lambda n: (0, 0)),
            pl.BlockSpec((9 * C2, C3), lambda n: (0, 0)),
            pl.BlockSpec((1, C3), lambda n: (0, 0)),
        ],
        out_specs=pl.BlockSpec((1, H3, W3, C3), lambda n: (n, 0, 0, 0)),
        scratch_shapes=[
            pltpu.VMEM((H + 2, W + 2, 1), jnp.float32),             # pad1
            pltpu.VMEM((H // 2 + 2, W // 2 + 2, C1), jnp.float32),  # pad2
            pltpu.VMEM((H // 4 + 2, W // 4 + 2, C2), jnp.float32),  # pad3
        ],
        compiler_params=pltpu.CompilerParams(
            dimension_semantics=("parallel",)),
    )(x, w1f, b1.reshape(1, C1), w2f, b2.reshape(1, C2), w3f, b3.reshape(1, C3))

    # NHWC -> NCHW (single tiny transpose to match PyTorch output layout).
    return jnp.transpose(out, (0, 3, 1, 2))


def init_conv_params(key, cin, cout):
    """Deterministic conv params (PyTorch (Cout,Cin,3,3) -> HWIO (3,3,Cin,Cout))."""
    kw, kb = jax.random.split(key)
    fan_in = cin * 3 * 3
    w_oihw = jax.random.normal(kw, (cout, cin, 3, 3), jnp.float32) / jnp.sqrt(fan_in)
    b = jax.random.normal(kb, (cout,), jnp.float32) * 0.01
    w_hwio = jnp.transpose(w_oihw, (2, 3, 1, 0))
    return w_hwio, b


def _reference_forward(x_nchw, params):
    """Pure-JAX (XLA) reference for correctness checking."""
    x = jnp.transpose(x_nchw, (0, 2, 3, 1))
    for w, b in params:
        x = lax.conv_general_dilated(
            x, w, window_strides=(1, 1), padding="SAME",
            dimension_numbers=("NHWC", "HWIO", "NHWC"))
        x = jnp.maximum(x + b, 0.0)
        x = lax.reduce_window(x, -jnp.inf, lax.max,
                              (1, 2, 2, 1), (1, 2, 2, 1), "VALID")
    return jnp.transpose(x, (0, 3, 1, 2))


if __name__ == "__main__":
    key = jax.random.PRNGKey(0)
    k_in, k1, k2, k3 = jax.random.split(key, 4)

    # Small shapes consistent with the module: batch=2, 1 channel, 16x16 image.
    x = jax.random.normal(k_in, (2, 1, 16, 16), jnp.float32)

    params = (
        init_conv_params(k1, 1, 32),     # conv1
        init_conv_params(k2, 32, 64),    # conv2
        init_conv_params(k3, 64, 128),   # conv3
    )

    out = cnn_forward(x, params)
    out = jax.block_until_ready(out)
    assert out.shape == (2, 128, 2, 2), out.shape

    ref = jax.block_until_ready(_reference_forward(x, params))
    assert jnp.allclose(out, ref, atol=1e-3, rtol=1e-3), "mismatch vs reference"

    print("KERNEL_OK")
</pallas_src>

<mosaic_0001>
module attributes {stable_mosaic.version = 11 : i64} {
  func.func @_cnn_fused_kernel(%arg0: i32, %arg1: memref<1x16x16x1xf32, #tpu.memory_space<vmem>>, %arg2: memref<9x32xf32, #tpu.memory_space<vmem>>, %arg3: memref<1x32xf32, #tpu.memory_space<vmem>>, %arg4: memref<288x64xf32, #tpu.memory_space<vmem>>, %arg5: memref<1x64xf32, #tpu.memory_space<vmem>>, %arg6: memref<576x128xf32, #tpu.memory_space<vmem>>, %arg7: memref<1x128xf32, #tpu.memory_space<vmem>>, %arg8: memref<1x2x2x128xf32, #tpu.memory_space<vmem>>, %arg9: memref<18x18x1xf32, #tpu.memory_space<vmem>>, %arg10: memref<10x10x32xf32, #tpu.memory_space<vmem>>, %arg11: memref<6x6x64xf32, #tpu.memory_space<vmem>>) attributes {dimension_semantics = [#tpu.dimension_semantics<parallel>], iteration_bounds = array<i64: 2>, scalar_prefetch = 0 : i64, scratch_operands = 3 : i64, tpu.core_type = #tpu.core_type<tc>, window_params = [{transform_indices = @transform_0, window_bounds = array<i64: 1, 16, 16, 1>}, {pipeline_mode = #tpu.pipeline_mode<synchronous>, transform_indices = @transform_1, window_bounds = array<i64: 9, 32>}, {pipeline_mode = #tpu.pipeline_mode<synchronous>, transform_indices = @transform_2, window_bounds = array<i64: 1, 32>}, {pipeline_mode = #tpu.pipeline_mode<synchronous>, transform_indices = @transform_3, window_bounds = array<i64: 288, 64>}, {pipeline_mode = #tpu.pipeline_mode<synchronous>, transform_indices = @transform_4, window_bounds = array<i64: 1, 64>}, {pipeline_mode = #tpu.pipeline_mode<synchronous>, transform_indices = @transform_5, window_bounds = array<i64: 576, 128>}, {pipeline_mode = #tpu.pipeline_mode<synchronous>, transform_indices = @transform_6, window_bounds = array<i64: 1, 128>}, {transform_indices = @transform_7, window_bounds = array<i64: 1, 2, 2, 128>}]} {
    %cst = arith.constant 0.000000e+00 : f32
    %0 = vector.broadcast %cst : f32 to vector<1x18x1xf32>
    %cst_0 = arith.constant 0.000000e+00 : f32
    %1 = vector.broadcast %cst_0 : f32 to vector<18x1x1xf32>
    %c0 = arith.constant 0 : index
    %c0_1 = arith.constant 0 : index
    %c0_2 = arith.constant 0 : index
    %2 = vector.load %arg9[%c0, %c0_1, %c0_2] : memref<18x18x1xf32, #tpu.memory_space<vmem>>, vector<1x18x1xf32>
    tpu.vector_store %arg9[%c0, %c0_1, %c0_2], %0 {strides = array<i32>} : memref<18x18x1xf32, #tpu.memory_space<vmem>>, vector<1x18x1xf32>,
    %c17 = arith.constant 17 : index
    %c0_3 = arith.constant 0 : index
    %c0_4 = arith.constant 0 : index
    %3 = vector.load %arg9[%c17, %c0_3, %c0_4] : memref<18x18x1xf32, #tpu.memory_space<vmem>>, vector<1x18x1xf32>
    tpu.vector_store %arg9[%c17, %c0_3, %c0_4], %0 {strides = array<i32>} : memref<18x18x1xf32, #tpu.memory_space<vmem>>, vector<1x18x1xf32>,
    %c0_5 = arith.constant 0 : index
    %c0_6 = arith.constant 0 : index
    %c0_7 = arith.constant 0 : index
    %4 = vector.load %arg9[%c0_5, %c0_6, %c0_7] : memref<18x18x1xf32, #tpu.memory_space<vmem>>, vector<18x1x1xf32>
    tpu.vector_store %arg9[%c0_5, %c0_6, %c0_7], %1 {strides = array<i32>} : memref<18x18x1xf32, #tpu.memory_space<vmem>>, vector<18x1x1xf32>,
    %c0_8 = arith.constant 0 : index
    %c17_9 = arith.constant 17 : index
    %c0_10 = arith.constant 0 : index
    %5 = vector.load %arg9[%c0_8, %c17_9, %c0_10] : memref<18x18x1xf32, #tpu.memory_space<vmem>>, vector<18x1x1xf32>
    tpu.vector_store %arg9[%c0_8, %c17_9, %c0_10], %1 {strides = array<i32>} : memref<18x18x1xf32, #tpu.memory_space<vmem>>, vector<18x1x1xf32>,
    %c0_11 = arith.constant 0 : index
    %c0_12 = arith.constant 0 : index
    %c0_13 = arith.constant 0 : index
    %c0_14 = arith.constant 0 : index
    %6 = vector.load %arg1[%c0_11, %c0_12, %c0_13, %c0_14] : memref<1x16x16x1xf32, #tpu.memory_space<vmem>>, vector<1x16x16x1xf32>
    %7 = vector.shape_cast %6 : vector<1x16x16x1xf32> to vector<16x16x1xf32>
    %c1 = arith.constant 1 : index
    %c1_15 = arith.constant 1 : index
    %c0_16 = arith.constant 0 : index
    %8 = vector.load %arg9[%c1, %c1_15, %c0_16] : memref<18x18x1xf32, #tpu.memory_space<vmem>>, vector<16x16x1xf32>
    tpu.vector_store %arg9[%c1, %c1_15, %c0_16], %7 {strides = array<i32>} : memref<18x18x1xf32, #tpu.memory_space<vmem>>, vector<16x16x1xf32>,
    %cst_17 = arith.constant 0.000000e+00 : f32
    %9 = vector.broadcast %cst_17 : f32 to vector<16x16x32xf32>
    %c0_18 = arith.constant 0 : index
    %c0_19 = arith.constant 0 : index
    %c0_20 = arith.constant 0 : index
    %10 = vector.load %arg9[%c0_18, %c0_19, %c0_20] : memref<18x18x1xf32, #tpu.memory_space<vmem>>, vector<16x16x1xf32>
    %c0_21 = arith.constant 0 : index
    %c0_22 = arith.constant 0 : index
    %11 = vector.load %arg2[%c0_21, %c0_22] : memref<9x32xf32, #tpu.memory_space<vmem>>, vector<1x32xf32>
    %12 = vector.shape_cast %11 : vector<1x32xf32> to vector<32xf32>
    %13 = vector.shape_cast %12 : vector<32xf32> to vector<1x1x32xf32>
    %14 = vector.broadcast %10 : vector<16x16x1xf32> to vector<16x16x32xf32>
    %15 = vector.broadcast %13 : vector<1x1x32xf32> to vector<16x16x32xf32>
    %16 = arith.mulf %14, %15 : vector<16x16x32xf32>
    %17 = arith.addf %9, %16 : vector<16x16x32xf32>
    %c0_23 = arith.constant 0 : index
    %c1_24 = arith.constant 1 : index
    %c0_25 = arith.constant 0 : index
    %18 = vector.load %arg9[%c0_23, %c1_24, %c0_25] : memref<18x18x1xf32, #tpu.memory_space<vmem>>, vector<16x16x1xf32>
    %c1_26 = arith.constant 1 : index
    %c0_27 = arith.constant 0 : index
    %19 = vector.load %arg2[%c1_26, %c0_27] : memref<9x32xf32, #tpu.memory_space<vmem>>, vector<1x32xf32>
    %20 = vector.shape_cast %19 : vector<1x32xf32> to vector<32xf32>
    %21 = vector.shape_cast %20 : vector<32xf32> to vector<1x1x32xf32>
    %22 = vector.broadcast %18 : vector<16x16x1xf32> to vector<16x16x32xf32>
    %23 = vector.broadcast %21 : vector<1x1x32xf32> to vector<16x16x32xf32>
    %24 = arith.mulf %22, %23 : vector<16x16x32xf32>
    %25 = arith.addf %17, %24 : vector<16x16x32xf32>
    %c0_28 = arith.constant 0 : index
    %c2 = arith.constant 2 : index
    %c0_29 = arith.constant 0 : index
    %26 = vector.load %arg9[%c0_28, %c2, %c0_29] : memref<18x18x1xf32, #tpu.memory_space<vmem>>, vector<16x16x1xf32>
    %c2_30 = arith.constant 2 : index
    %c0_31 = arith.constant 0 : index
    %27 = vector.load %arg2[%c2_30, %c0_31] : memref<9x32xf32, #tpu.memory_space<vmem>>, vector<1x32xf32>
    %28 = vector.shape_cast %27 : vector<1x32xf32> to vector<32xf32>
    %29 = vector.shape_cast %28 : vector<32xf32> to vector<1x1x32xf32>
    %30 = vector.broadcast %26 : vector<16x16x1xf32> to vector<16x16x32xf32>
    %31 = vector.broadcast %29 : vector<1x1x32xf32> to vector<16x16x32xf32>
    %32 = arith.mulf %30, %31 : vector<16x16x32xf32>
    %33 = arith.addf %25, %32 : vector<16x16x32xf32>
    %c1_32 = arith.constant 1 : index
    %c0_33 = arith.constant 0 : index
    %c0_34 = arith.constant 0 : index
    %34 = vector.load %arg9[%c1_32, %c0_33, %c0_34] : memref<18x18x1xf32, #tpu.memory_space<vmem>>, vector<16x16x1xf32>
    %c3 = arith.constant 3 : index
    %c0_35 = arith.constant 0 : index
    %35 = vector.load %arg2[%c3, %c0_35] : memref<9x32xf32, #tpu.memory_space<vmem>>, vector<1x32xf32>
    %36 = vector.shape_cast %35 : vector<1x32xf32> to vector<32xf32>
    %37 = vector.shape_cast %36 : vector<32xf32> to vector<1x1x32xf32>
    %38 = vector.broadcast %34 : vector<16x16x1xf32> to vector<16x16x32xf32>
    %39 = vector.broadcast %37 : vector<1x1x32xf32> to vector<16x16x32xf32>
    %40 = arith.mulf %38, %39 : vector<16x16x32xf32>
    %41 = arith.addf %33, %40 : vector<16x16x32xf32>
    %c1_36 = arith.constant 1 : index
    %c1_37 = arith.constant 1 : index
    %c0_38 = arith.constant 0 : index
    %42 = vector.load %arg9[%c1_36, %c1_37, %c0_38] : memref<18x18x1xf32, #tpu.memory_space<vmem>>, vector<16x16x1xf32>
    %c4 = arith.constant 4 : index
    %c0_39 = arith.constant 0 : index
    %43 = vector.load %arg2[%c4, %c0_39] : memref<9x32xf32, #tpu.memory_space<vmem>>, vector<1x32xf32>
    %44 = vector.shape_cast %43 : vector<1x32xf32> to vector<32xf32>
    %45 = vector.shape_cast %44 : vector<32xf32> to vector<1x1x32xf32>
    %46 = vector.broadcast %42 : vector<16x16x1xf32> to vector<16x16x32xf32>
    %47 = vector.broadcast %45 : vector<1x1x32xf32> to vector<16x16x32xf32>
    %48 = arith.mulf %46, %47 : vector<16x16x32xf32>
    %49 = arith.addf %41, %48 : vector<16x16x32xf32>
    %c1_40 = arith.constant 1 : index
    %c2_41 = arith.constant 2 : index
    %c0_42 = arith.constant 0 : index
    %50 = vector.load %arg9[%c1_40, %c2_41, %c0_42] : memref<18x18x1xf32, #tpu.memory_space<vmem>>, vector<16x16x1xf32>
    %c5 = arith.constant 5 : index
    %c0_43 = arith.constant 0 : index
    %51 = vector.load %arg2[%c5, %c0_43] : memref<9x32xf32, #tpu.memory_space<vmem>>, vector<1x32xf32>
    %52 = vector.shape_cast %51 : vector<1x32xf32> to vector<32xf32>
    %53 = vector.shape_cast %52 : vector<32xf32> to vector<1x1x32xf32>
    %54 = vector.broadcast %50 : vector<16x16x1xf32> to vector<16x16x32xf32>
    %55 = vector.broadcast %53 : vector<1x1x32xf32> to vector<16x16x32xf32>
    %56 = arith.mulf %54, %55 : vector<16x16x32xf32>
    %57 = arith.addf %49, %56 : vector<16x16x32xf32>
    %c2_44 = arith.constant 2 : index
    %c0_45 = arith.constant 0 : index
    %c0_46 = arith.constant 0 : index
    %58 = vector.load %arg9[%c2_44, %c0_45, %c0_46] : memref<18x18x1xf32, #tpu.memory_space<vmem>>, vector<16x16x1xf32>
    %c6 = arith.constant 6 : index
    %c0_47 = arith.constant 0 : index
    %59 = vector.load %arg2[%c6, %c0_47] : memref<9x32xf32, #tpu.memory_space<vmem>>, vector<1x32xf32>
    %60 = vector.shape_cast %59 : vector<1x32xf32> to vector<32xf32>
    %61 = vector.shape_cast %60 : vector<32xf32> to vector<1x1x32xf32>
    %62 = vector.broadcast %58 : vector<16x16x1xf32> to vector<16x16x32xf32>
    %63 = vector.broadcast %61 : vector<1x1x32xf32> to vector<16x16x32xf32>
    %64 = arith.mulf %62, %63 : vector<16x16x32xf32>
    %65 = arith.addf %57, %64 : vector<16x16x32xf32>
    %c2_48 = arith.constant 2 : index
    %c1_49 = arith.constant 1 : index
    %c0_50 = arith.constant 0 : index
    %66 = vector.load %arg9[%c2_48, %c1_49, %c0_50] : memref<18x18x1xf32, #tpu.memory_space<vmem>>, vector<16x16x1xf32>
    %c7 = arith.constant 7 : index
    %c0_51 = arith.constant 0 : index
    %67 = vector.load %arg2[%c7, %c0_51] : memref<9x32xf32, #tpu.memory_space<vmem>>, vector<1x32xf32>
    %68 = vector.shape_cast %67 : vector<1x32xf32> to vector<32xf32>
    %69 = vector.shape_cast %68 : vector<32xf32> to vector<1x1x32xf32>
    %70 = vector.broadcast %66 : vector<16x16x1xf32> to vector<16x16x32xf32>
    %71 = vector.broadcast %69 : vector<1x1x32xf32> to vector<16x16x32xf32>
    %72 = arith.mulf %70, %71 : vector<16x16x32xf32>
    %73 = arith.addf %65, %72 : vector<16x16x32xf32>
    %c2_52 = arith.constant 2 : index
    %c2_53 = arith.constant 2 : index
    %c0_54 = arith.constant 0 : index
    %74 = vector.load %arg9[%c2_52, %c2_53, %c0_54] : memref<18x18x1xf32, #tpu.memory_space<vmem>>, vector<16x16x1xf32>
    %c8 = arith.constant 8 : index
    %c0_55 = arith.constant 0 : index
    %75 = vector.load %arg2[%c8, %c0_55] : memref<9x32xf32, #tpu.memory_space<vmem>>, vector<1x32xf32>
    %76 = vector.shape_cast %75 : vector<1x32xf32> to vector<32xf32>
    %77 = vector.shape_cast %76 : vector<32xf32> to vector<1x1x32xf32>
    %78 = vector.broadcast %74 : vector<16x16x1xf32> to vector<16x16x32xf32>
    %79 = vector.broadcast %77 : vector<1x1x32xf32> to vector<16x16x32xf32>
    %80 = arith.mulf %78, %79 : vector<16x16x32xf32>
    %81 = arith.addf %73, %80 : vector<16x16x32xf32>
    %c0_56 = arith.constant 0 : index
    %c0_57 = arith.constant 0 : index
    %82 = vector.load %arg3[%c0_56, %c0_57] : memref<1x32xf32, #tpu.memory_space<vmem>>, vector<1x32xf32>
    %83 = vector.shape_cast %82 : vector<1x32xf32> to vector<32xf32>
    %84 = vector.shape_cast %83 : vector<32xf32> to vector<1x1x32xf32>
    %85 = vector.broadcast %84 : vector<1x1x32xf32> to vector<16x16x32xf32>
    %86 = arith.addf %81, %85 : vector<16x16x32xf32>
    %cst_58 = arith.constant 0.000000e+00 : f32
    %87 = vector.broadcast %cst_58 : f32 to vector<16x16x32xf32>
    %88 = arith.maximumf %86, %87 : vector<16x16x32xf32>
    %89 = vector.shape_cast %88 : vector<16x16x32xf32> to vector<16x8x2x32xf32>
    %90 = vector.extract_strided_slice %89 {offsets = [0, 0, 0, 0], sizes = [16, 8, 1, 32], strides = [1, 1, 1, 1]} : vector<16x8x2x32xf32> to vector<16x8x1x32xf32>
    %91 = vector.shape_cast %90 : vector<16x8x1x32xf32> to vector<16x8x32xf32>
    %92 = vector.extract_strided_slice %89 {offsets = [0, 0, 1, 0], sizes = [16, 8, 1, 32], strides = [1, 1, 1, 1]} : vector<16x8x2x32xf32> to vector<16x8x1x32xf32>
    %93 = vector.shape_cast %92 : vector<16x8x1x32xf32> to vector<16x8x32xf32>
    %94 = arith.maximumf %91, %93 : vector<16x8x32xf32>
    %95 = vector.shape_cast %94 : vector<16x8x32xf32> to vector<8x2x8x32xf32>
    %96 = vector.extract_strided_slice %95 {offsets = [0, 0, 0, 0], sizes = [8, 1, 8, 32], strides = [1, 1, 1, 1]} : vector<8x2x8x32xf32> to vector<8x1x8x32xf32>
    %97 = vector.shape_cast %96 : vector<8x1x8x32xf32> to vector<8x8x32xf32>
    %98 = vector.extract_strided_slice %95 {offsets = [0, 1, 0, 0], sizes = [8, 1, 8, 32], strides = [1, 1, 1, 1]} : vector<8x2x8x32xf32> to vector<8x1x8x32xf32>
    %99 = vector.shape_cast %98 : vector<8x1x8x32xf32> to vector<8x8x32xf32>
    %100 = arith.maximumf %97, %99 : vector<8x8x32xf32>
    %cst_59 = arith.constant 0.000000e+00 : f32
    %101 = vector.broadcast %cst_59 : f32 to vector<1x10x32xf32>
    %cst_60 = arith.constant 0.000000e+00 : f32
    %102 = vector.broadcast %cst_60 : f32 to vector<10x1x32xf32>
    %c0_61 = arith.constant 0 : index
    %c0_62 = arith.constant 0 : index
    %c0_63 = arith.constant 0 : index
    %103 = vector.load %arg10[%c0_61, %c0_62, %c0_63] : memref<10x10x32xf32, #tpu.memory_space<vmem>>, vector<1x10x32xf32>
    tpu.vector_store %arg10[%c0_61, %c0_62, %c0_63], %101 {strides = array<i32>} : memref<10x10x32xf32, #tpu.memory_space<vmem>>, vector<1x10x32xf32>,
    %c9 = arith.constant 9 : index
    %c0_64 = arith.constant 0 : index
    %c0_65 = arith.constant 0 : index
    %104 = vector.load %arg10[%c9, %c0_64, %c0_65] : memref<10x10x32xf32, #tpu.memory_space<vmem>>, vector<1x10x32xf32>
    tpu.vector_store %arg10[%c9, %c0_64, %c0_65], %101 {strides = array<i32>} : memref<10x10x32xf32, #tpu.memory_space<vmem>>, vector<1x10x32xf32>,
    %c0_66 = arith.constant 0 : index
    %c0_67 = arith.constant 0 : index
    %c0_68 = arith.constant 0 : index
    %105 = vector.load %arg10[%c0_66, %c0_67, %c0_68] : memref<10x10x32xf32, #tpu.memory_space<vmem>>, vector<10x1x32xf32>
    tpu.vector_store %arg10[%c0_66, %c0_67, %c0_68], %102 {strides = array<i32>} : memref<10x10x32xf32, #tpu.memory_space<vmem>>, vector<10x1x32xf32>,
    %c0_69 = arith.constant 0 : index
    %c9_70 = arith.constant 9 : index
    %c0_71 = arith.constant 0 : index
    %106 = vector.load %arg10[%c0_69, %c9_70, %c0_71] : memref<10x10x32xf32, #tpu.memory_space<vmem>>, vector<10x1x32xf32>
    tpu.vector_store %arg10[%c0_69, %c9_70, %c0_71], %102 {strides = array<i32>} : memref<10x10x32xf32, #tpu.memory_space<vmem>>, vector<10x1x32xf32>,
    %c1_72 = arith.constant 1 : index
    %c1_73 = arith.constant 1 : index
    %c0_74 = arith.constant 0 : index
    %107 = vector.load %arg10[%c1_72, %c1_73, %c0_74] : memref<10x10x32xf32, #tpu.memory_space<vmem>>, vector<8x8x32xf32>
    tpu.vector_store %arg10[%c1_72, %c1_73, %c0_74], %100 {strides = array<i32>} : memref<10x10x32xf32, #tpu.memory_space<vmem>>, vector<8x8x32xf32>,
    %c0_75 = arith.constant 0 : index
    %c0_76 = arith.constant 0 : index
    %c0_77 = arith.constant 0 : index
    %108 = vector.load %arg10[%c0_75, %c0_76, %c0_77] : memref<10x10x32xf32, #tpu.memory_space<vmem>>, vector<8x8x32xf32>
    %109 = vector.shape_cast %108 : vector<8x8x32xf32> to vector<64x32xf32>
    %c0_78 = arith.constant 0 : index
    %c1_79 = arith.constant 1 : index
    %c0_80 = arith.constant 0 : index
    %110 = vector.load %arg10[%c0_78, %c1_79, %c0_80] : memref<10x10x32xf32, #tpu.memory_space<vmem>>, vector<8x8x32xf32>
    %111 = vector.shape_cast %110 : vector<8x8x32xf32> to vector<64x32xf32>
    %c0_81 = arith.constant 0 : index
    %c2_82 = arith.constant 2 : index
    %c0_83 = arith.constant 0 : index
    %112 = vector.load %arg10[%c0_81, %c2_82, %c0_83] : memref<10x10x32xf32, #tpu.memory_space<vmem>>, vector<8x8x32xf32>
    %113 = vector.shape_cast %112 : vector<8x8x32xf32> to vector<64x32xf32>
    %c1_84 = arith.constant 1 : index
    %c0_85 = arith.constant 0 : index
    %c0_86 = arith.constant 0 : index
    %114 = vector.load %arg10[%c1_84, %c0_85, %c0_86] : memref<10x10x32xf32, #tpu.memory_space<vmem>>, vector<8x8x32xf32>
    %115 = vector.shape_cast %114 : vector<8x8x32xf32> to vector<64x32xf32>
    %c1_87 = arith.constant 1 : index
    %c1_88 = arith.constant 1 : index
    %c0_89 = arith.constant 0 : index
    %116 = vector.load %arg10[%c1_87, %c1_88, %c0_89] : memref<10x10x32xf32, #tpu.memory_space<vmem>>, vector<8x8x32xf32>
    %117 = vector.shape_cast %116 : vector<8x8x32xf32> to vector<64x32xf32>
    %c1_90 = arith.constant 1 : index
    %c2_91 = arith.constant 2 : index
    %c0_92 = arith.constant 0 : index
    %118 = vector.load %arg10[%c1_90, %c2_91, %c0_92] : memref<10x10x32xf32, #tpu.memory_space<vmem>>, vector<8x8x32xf32>
    %119 = vector.shape_cast %118 : vector<8x8x32xf32> to vector<64x32xf32>
    %c2_93 = arith.constant 2 : index
    %c0_94 = arith.constant 0 : index
    %c0_95 = arith.constant 0 : index
    %120 = vector.load %arg10[%c2_93, %c0_94, %c0_95] : memref<10x10x32xf32, #tpu.memory_space<vmem>>, vector<8x8x32xf32>
    %121 = vector.shape_cast %120 : vector<8x8x32xf32> to vector<64x32xf32>
    %c2_96 = arith.constant 2 : index
    %c1_97 = arith.constant 1 : index
    %c0_98 = arith.constant 0 : index
    %122 = vector.load %arg10[%c2_96, %c1_97, %c0_98] : memref<10x10x32xf32, #tpu.memory_space<vmem>>, vector<8x8x32xf32>
    %123 = vector.shape_cast %122 : vector<8x8x32xf32> to vector<64x32xf32>
    %c2_99 = arith.constant 2 : index
    %c2_100 = arith.constant 2 : index
    %c0_101 = arith.constant 0 : index
    %124 = vector.load %arg10[%c2_99, %c2_100, %c0_101] : memref<10x10x32xf32, #tpu.memory_space<vmem>>, vector<8x8x32xf32>
    %125 = vector.shape_cast %124 : vector<8x8x32xf32> to vector<64x32xf32>
    %126 = tpu.concatenate %109, %111, %113, %115, %117, %119, %121, %123, %125 in 1 : vector<64x32xf32>, vector<64x32xf32>, vector<64x32xf32>, vector<64x32xf32>, vector<64x32xf32>, vector<64x32xf32>, vector<64x32xf32>, vector<64x32xf32>, vector<64x32xf32> -> vector<64x288xf32>
    %c0_102 = arith.constant 0 : index
    %c0_103 = arith.constant 0 : index
    %127 = vector.load %arg4[%c0_102, %c0_103] : memref<288x64xf32, #tpu.memory_space<vmem>>, vector<288x64xf32>
    %cst_104 = arith.constant dense<0.000000e+00> : vector<64x64xf32>
    %128 = tpu.matmul %126, %127, %cst_104 {dimension_numbers = #tpu.dot_dimension_numbers<[1], [0], [0], [1], [0, 0, 1, 1], [], []>} : vector<64x288xf32>, vector<288x64xf32>, vector<64x64xf32> -> vector<64x64xf32>
    %c0_105 = arith.constant 0 : index
    %c0_106 = arith.constant 0 : index
    %129 = vector.load %arg5[%c0_105, %c0_106] : memref<1x64xf32, #tpu.memory_space<vmem>>, vector<1x64xf32>
    %130 = vector.shape_cast %129 : vector<1x64xf32> to vector<64xf32>
    %131 = vector.shape_cast %130 : vector<64xf32> to vector<1x64xf32>
    %132 = vector.broadcast %131 : vector<1x64xf32> to vector<64x64xf32>
    %133 = arith.addf %128, %132 : vector<64x64xf32>
    %cst_107 = arith.constant 0.000000e+00 : f32
    %134 = vector.broadcast %cst_107 : f32 to vector<64x64xf32>
    %135 = arith.maximumf %133, %134 : vector<64x64xf32>
    %136 = vector.shape_cast %135 : vector<64x64xf32> to vector<8x8x64xf32>
    %137 = vector.shape_cast %136 : vector<8x8x64xf32> to vector<8x4x2x64xf32>
    %138 = vector.extract_strided_slice %137 {offsets = [0, 0, 0, 0], sizes = [8, 4, 1, 64], strides = [1, 1, 1, 1]} : vector<8x4x2x64xf32> to vector<8x4x1x64xf32>
    %139 = vector.shape_cast %138 : vector<8x4x1x64xf32> to vector<8x4x64xf32>
    %140 = vector.extract_strided_slice %137 {offsets = [0, 0, 1, 0], sizes = [8, 4, 1, 64], strides = [1, 1, 1, 1]} : vector<8x4x2x64xf32> to vector<8x4x1x64xf32>
    %141 = vector.shape_cast %140 : vector<8x4x1x64xf32> to vector<8x4x64xf32>
    %142 = arith.maximumf %139, %141 : vector<8x4x64xf32>
    %143 = vector.shape_cast %142 : vector<8x4x64xf32> to vector<4x2x4x64xf32>
    %144 = vector.extract_strided_slice %143 {offsets = [0, 0, 0, 0], sizes = [4, 1, 4, 64], strides = [1, 1, 1, 1]} : vector<4x2x4x64xf32> to vector<4x1x4x64xf32>
    %145 = vector.shape_cast %144 : vector<4x1x4x64xf32> to vector<4x4x64xf32>
    %146 = vector.extract_strided_slice %143 {offsets = [0, 1, 0, 0], sizes = [4, 1, 4, 64], strides = [1, 1, 1, 1]} : vector<4x2x4x64xf32> to vector<4x1x4x64xf32>
    %147 = vector.shape_cast %146 : vector<4x1x4x64xf32> to vector<4x4x64xf32>
    %148 = arith.maximumf %145, %147 : vector<4x4x64xf32>
    %cst_108 = arith.constant 0.000000e+00 : f32
    %149 = vector.broadcast %cst_108 : f32 to vector<1x6x64xf32>
    %cst_109 = arith.constant 0.000000e+00 : f32
    %150 = vector.broadcast %cst_109 : f32 to vector<6x1x64xf32>
    %c0_110 = arith.constant 0 : index
    %c0_111 = arith.constant 0 : index
    %c0_112 = arith.constant 0 : index
    %151 = vector.load %arg11[%c0_110, %c0_111, %c0_112] : memref<6x6x64xf32, #tpu.memory_space<vmem>>, vector<1x6x64xf32>
    tpu.vector_store %arg11[%c0_110, %c0_111, %c0_112], %149 {strides = array<i32>} : memref<6x6x64xf32, #tpu.memory_space<vmem>>, vector<1x6x64xf32>,
    %c5_113 = arith.constant 5 : index
    %c0_114 = arith.constant 0 : index
    %c0_115 = arith.constant 0 : index
    %152 = vector.load %arg11[%c5_113, %c0_114, %c0_115] : memref<6x6x64xf32, #tpu.memory_space<vmem>>, vector<1x6x64xf32>
    tpu.vector_store %arg11[%c5_113, %c0_114, %c0_115], %149 {strides = array<i32>} : memref<6x6x64xf32, #tpu.memory_space<vmem>>, vector<1x6x64xf32>,
    %c0_116 = arith.constant 0 : index
    %c0_117 = arith.constant 0 : index
    %c0_118 = arith.constant 0 : index
    %153 = vector.load %arg11[%c0_116, %c0_117, %c0_118] : memref<6x6x64xf32, #tpu.memory_space<vmem>>, vector<6x1x64xf32>
    tpu.vector_store %arg11[%c0_116, %c0_117, %c0_118], %150 {strides = array<i32>} : memref<6x6x64xf32, #tpu.memory_space<vmem>>, vector<6x1x64xf32>,
    %c0_119 = arith.constant 0 : index
    %c5_120 = arith.constant 5 : index
    %c0_121 = arith.constant 0 : index
    %154 = vector.load %arg11[%c0_119, %c5_120, %c0_121] : memref<6x6x64xf32, #tpu.memory_space<vmem>>, vector<6x1x64xf32>
    tpu.vector_store %arg11[%c0_119, %c5_120, %c0_121], %150 {strides = array<i32>} : memref<6x6x64xf32, #tpu.memory_space<vmem>>, vector<6x1x64xf32>,
    %c1_122 = arith.constant 1 : index
    %c1_123 = arith.constant 1 : index
    %c0_124 = arith.constant 0 : index
    %155 = vector.load %arg11[%c1_122, %c1_123, %c0_124] : memref<6x6x64xf32, #tpu.memory_space<vmem>>, vector<4x4x64xf32>
    tpu.vector_store %arg11[%c1_122, %c1_123, %c0_124], %148 {strides = array<i32>} : memref<6x6x64xf32, #tpu.memory_space<vmem>>, vector<4x4x64xf32>,
    %c0_125 = arith.constant 0 : index
    %c0_126 = arith.constant 0 : index
    %c0_127 = arith.constant 0 : index
    %156 = vector.load %arg11[%c0_125, %c0_126, %c0_127] : memref<6x6x64xf32, #tpu.memory_space<vmem>>, vector<4x4x64xf32>
    %157 = vector.shape_cast %156 : vector<4x4x64xf32> to vector<16x64xf32>
    %c0_128 = arith.constant 0 : index
    %c1_129 = arith.constant 1 : index
    %c0_130 = arith.constant 0 : index
    %158 = vector.load %arg11[%c0_128, %c1_129, %c0_130] : memref<6x6x64xf32, #tpu.memory_space<vmem>>, vector<4x4x64xf32>
    %159 = vector.shape_cast %158 : vector<4x4x64xf32> to vector<16x64xf32>
    %c0_131 = arith.constant 0 : index
    %c2_132 = arith.constant 2 : index
    %c0_133 = arith.constant 0 : index
    %160 = vector.load %arg11[%c0_131, %c2_132, %c0_133] : memref<6x6x64xf32, #tpu.memory_space<vmem>>, vector<4x4x64xf32>
    %161 = vector.shape_cast %160 : vector<4x4x64xf32> to vector<16x64xf32>
    %c1_134 = arith.constant 1 : index
    %c0_135 = arith.constant 0 : index
    %c0_136 = arith.constant 0 : index
    %162 = vector.load %arg11[%c1_134, %c0_135, %c0_136] : memref<6x6x64xf32, #tpu.memory_space<vmem>>, vector<4x4x64xf32>
    %163 = vector.shape_cast %162 : vector<4x4x64xf32> to vector<16x64xf32>
    %c1_137 = arith.constant 1 : index
    %c1_138 = arith.constant 1 : index
    %c0_139 = arith.constant 0 : index
    %164 = vector.load %arg11[%c1_137, %c1_138, %c0_139] : memref<6x6x64xf32, #tpu.memory_space<vmem>>, vector<4x4x64xf32>
    %165 = vector.shape_cast %164 : vector<4x4x64xf32> to vector<16x64xf32>
    %c1_140 = arith.constant 1 : index
    %c2_141 = arith.constant 2 : index
    %c0_142 = arith.constant 0 : index
    %166 = vector.load %arg11[%c1_140, %c2_141, %c0_142] : memref<6x6x64xf32, #tpu.memory_space<vmem>>, vector<4x4x64xf32>
    %167 = vector.shape_cast %166 : vector<4x4x64xf32> to vector<16x64xf32>
    %c2_143 = arith.constant 2 : index
    %c0_144 = arith.constant 0 : index
    %c0_145 = arith.constant 0 : index
    %168 = vector.load %arg11[%c2_143, %c0_144, %c0_145] : memref<6x6x64xf32, #tpu.memory_space<vmem>>, vector<4x4x64xf32>
    %169 = vector.shape_cast %168 : vector<4x4x64xf32> to vector<16x64xf32>
    %c2_146 = arith.constant 2 : index
    %c1_147 = arith.constant 1 : index
    %c0_148 = arith.constant 0 : index
    %170 = vector.load %arg11[%c2_146, %c1_147, %c0_148] : memref<6x6x64xf32, #tpu.memory_space<vmem>>, vector<4x4x64xf32>
    %171 = vector.shape_cast %170 : vector<4x4x64xf32> to vector<16x64xf32>
    %c2_149 = arith.constant 2 : index
    %c2_150 = arith.constant 2 : index
    %c0_151 = arith.constant 0 : index
    %172 = vector.load %arg11[%c2_149, %c2_150, %c0_151] : memref<6x6x64xf32, #tpu.memory_space<vmem>>, vector<4x4x64xf32>
    %173 = vector.shape_cast %172 : vector<4x4x64xf32> to vector<16x64xf32>
    %174 = tpu.concatenate %157, %159, %161, %163, %165, %167, %169, %171, %173 in 1 : vector<16x64xf32>, vector<16x64xf32>, vector<16x64xf32>, vector<16x64xf32>, vector<16x64xf32>, vector<16x64xf32>, vector<16x64xf32>, vector<16x64xf32>, vector<16x64xf32> -> vector<16x576xf32>
    %c0_152 = arith.constant 0 : index
    %c0_153 = arith.constant 0 : index
    %175 = vector.load %arg6[%c0_152, %c0_153] : memref<576x128xf32, #tpu.memory_space<vmem>>, vector<576x128xf32>
    %cst_154 = arith.constant dense<0.000000e+00> : vector<16x128xf32>
    %176 = tpu.matmul %174, %175, %cst_154 {dimension_numbers = #tpu.dot_dimension_numbers<[1], [0], [0], [1], [0, 0, 1, 1], [], []>} : vector<16x576xf32>, vector<576x128xf32>, vector<16x128xf32> -> vector<16x128xf32>
    %c0_155 = arith.constant 0 : index
    %c0_156 = arith.constant 0 : index
    %177 = vector.load %arg7[%c0_155, %c0_156] : memref<1x128xf32, #tpu.memory_space<vmem>>, vector<1x128xf32>
    %178 = vector.shape_cast %177 : vector<1x128xf32> to vector<128xf32>
    %179 = vector.shape_cast %178 : vector<128xf32> to vector<1x128xf32>
    %180 = vector.broadcast %179 : vector<1x128xf32> to vector<16x128xf32>
    %181 = arith.addf %176, %180 : vector<16x128xf32>
    %cst_157 = arith.constant 0.000000e+00 : f32
    %182 = vector.broadcast %cst_157 : f32 to vector<16x128xf32>
    %183 = arith.maximumf %181, %182 : vector<16x128xf32>
    %184 = vector.shape_cast %183 : vector<16x128xf32> to vector<4x4x128xf32>
    %185 = vector.shape_cast %184 : vector<4x4x128xf32> to vector<4x2x2x128xf32>
    %186 = vector.extract_strided_slice %185 {offsets = [0, 0, 0, 0], sizes = [4, 2, 1, 128], strides = [1, 1, 1, 1]} : vector<4x2x2x128xf32> to vector<4x2x1x128xf32>
    %187 = vector.shape_cast %186 : vector<4x2x1x128xf32> to vector<4x2x128xf32>
    %188 = vector.extract_strided_slice %185 {offsets = [0, 0, 1, 0], sizes = [4, 2, 1, 128], strides = [1, 1, 1, 1]} : vector<4x2x2x128xf32> to vector<4x2x1x128xf32>
    %189 = vector.shape_cast %188 : vector<4x2x1x128xf32> to vector<4x2x128xf32>
    %190 = arith.maximumf %187, %189 : vector<4x2x128xf32>
    %191 = vector.shape_cast %190 : vector<4x2x128xf32> to vector<2x2x2x128xf32>
    %192 = vector.extract_strided_slice %191 {offsets = [0, 0, 0, 0], sizes = [2, 1, 2, 128], strides = [1, 1, 1, 1]} : vector<2x2x2x128xf32> to vector<2x1x2x128xf32>
    %193 = vector.shape_cast %192 : vector<2x1x2x128xf32> to vector<2x2x128xf32>
    %194 = vector.extract_strided_slice %191 {offsets = [0, 1, 0, 0], sizes = [2, 1, 2, 128], strides = [1, 1, 1, 1]} : vector<2x2x2x128xf32> to vector<2x1x2x128xf32>
    %195 = vector.shape_cast %194 : vector<2x1x2x128xf32> to vector<2x2x128xf32>
    %196 = arith.maximumf %193, %195 : vector<2x2x128xf32>
    %c0_158 = arith.constant 0 : index
    %c0_159 = arith.constant 0 : index
    %c0_160 = arith.constant 0 : index
    %c0_161 = arith.constant 0 : index
    %197 = vector.load %arg8[%c0_158, %c0_159, %c0_160, %c0_161] : memref<1x2x2x128xf32, #tpu.memory_space<vmem>>, vector<1x2x2x128xf32>
    %198 = vector.shape_cast %197 : vector<1x2x2x128xf32> to vector<2x2x128xf32>
    %199 = vector.shape_cast %196 : vector<2x2x128xf32> to vector<1x2x2x128xf32>
    tpu.vector_store %arg8[%c0_158, %c0_159, %c0_160, %c0_161], %199 {strides = array<i32>} : memref<1x2x2x128xf32, #tpu.memory_space<vmem>>, vector<1x2x2x128xf32>,
    return
  }
  func.func @transform_0(%arg0: i32) -> (i32, i32, i32, i32) {
    %c0_i32 = arith.constant 0 : i32
    %c0_i32_0 = arith.constant 0 : i32
    %c0_i32_1 = arith.constant 0 : i32
    %c0_i32_2 = arith.constant 0 : i32
    return %arg0, %c0_i32, %c0_i32_0, %c0_i32_1 : i32, i32, i32, i32
  }
  func.func @transform_1(%arg0: i32) -> (i32, i32) {
    %c0_i32 = arith.constant 0 : i32
    %c0_i32_0 = arith.constant 0 : i32
    %c0_i32_1 = arith.constant 0 : i32
    return %c0_i32, %c0_i32_0 : i32, i32
  }
  func.func @transform_2(%arg0: i32) -> (i32, i32) {
    %c0_i32 = arith.constant 0 : i32
    %c0_i32_0 = arith.constant 0 : i32
    %c0_i32_1 = arith.constant 0 : i32
    return %c0_i32, %c0_i32_0 : i32, i32
  }
  func.func @transform_3(%arg0: i32) -> (i32, i32) {
    %c0_i32 = arith.constant 0 : i32
    %c0_i32_0 = arith.constant 0 : i32
    %c0_i32_1 = arith.constant 0 : i32
    return %c0_i32, %c0_i32_0 : i32, i32
  }
  func.func @transform_4(%arg0: i32) -> (i32, i32) {
    %c0_i32 = arith.constant 0 : i32
    %c0_i32_0 = arith.constant 0 : i32
    %c0_i32_1 = arith.constant 0 : i32
    return %c0_i32, %c0_i32_0 : i32, i32
  }
  func.func @transform_5(%arg0: i32) -> (i32, i32) {
    %c0_i32 = arith.constant 0 : i32
    %c0_i32_0 = arith.constant 0 : i32
    %c0_i32_1 = arith.constant 0 : i32
    return %c0_i32, %c0_i32_0 : i32, i32
  }
  func.func @transform_6(%arg0: i32) -> (i32, i32) {
    %c0_i32 = arith.constant 0 : i32
    %c0_i32_0 = arith.constant 0 : i32
    %c0_i32_1 = arith.constant 0 : i32
    return %c0_i32, %c0_i32_0 : i32, i32
  }
  func.func @transform_7(%arg0: i32) -> (i32, i32, i32, i32) {
    %c0_i32 = arith.constant 0 : i32
    %c0_i32_0 = arith.constant 0 : i32
    %c0_i32_1 = arith.constant 0 : i32
    %c0_i32_2 = arith.constant 0 : i32
    return %arg0, %c0_i32, %c0_i32_0, %c0_i32_1 : i32, i32, i32, i32
  }
}

</mosaic_0001>

<bundles_post_ra>
// kernel: tpu_custom_call.1
= control target key start
LH: loop header
LB: loop body
LE: loop exit
PB: predicated region body
PF: predicated region fallthrough
CT: control target
= control target key end

     0   :  { %12 = vsyncpa [#allocation6], 0  ;;  %s8453_s0 = inlined_call_operand.vmem [shape: f32[2,16,16,1], index: 0, kind: input, shape index: {}]   ;;  %s8454_s1 = inlined_call_operand.vmem [shape: f32[9,32], index: 1, kind: input, shape index: {}]   ;;  %s8455_s2 = inlined_call_operand.vmem [shape: f32[1,32], index: 2, kind: input, shape index: {}]   ;;  %s8456_s3 = inlined_call_operand.vmem [shape: f32[288,64], index: 3, kind: input, shape index: {}]   ;;  %s8457_s4 = inlined_call_operand.vmem [shape: f32[1,64], index: 4, kind: input, shape index: {}]   ;;  %s8458_s5 = inlined_call_operand.vmem [shape: f32[576,128], index: 5, kind: input, shape index: {}]   ;;  %s8459_s6 = inlined_call_operand.vmem [shape: f32[1,128], index: 6, kind: input, shape index: {}]   ;;  %s8460_s7 = inlined_call_operand.hbm [shape: f32[2,2,2,128], index: 7, kind: output, shape index: {}]  }
   0x1   :  { %14 = vsyncpa [#allocation6 + $0x1], 0  ;;  %s5620_s24 = smov 0   ;;  %s5622_s25 = smov 0  }
   0x2   :  { %s5624_s26 = smov 0   ;;  %s5626_s27 = smov 0  }
   0x3 LB: > { %s5641_s28 = sadd.s32 4294967295, %s5572_s27   ;;  %s5129_s29 = sadd.s32 4294967294, %s5572_s27   ;;  %s5572_s27 = sphi %s5626_s27, %s8979_s27   ;;  %s5568_s26 = sphi %s5624_s26, %s8978_s26   ;;  %s5564_s25 = sphi %s5622_s25, %s8977_s25   ;;  %s5560_s24 = sphi %s5620_s24, %s8976_s24  }
   0x4   : > { %s5645_s30 = sadd.s32 1, %s5572_s27   ;;  %s179_s8 = sadd.s32 1, %s5568_s26 }
   0x5   : > { %s176_s9 = ssub.s32 %s5572_s27, %s5645_s30  ;;  %p189_p0 = scmp.ne.s32.totalorder %s5568_s26, %s5564_s25 }
   0x6   : > { %p177_p1 = scmp.eq.s32.totalorder %s176_s9, 0  ;;  %p190_p2 = scmp.eq.s32.totalorder %s5641_s28, 1 }
   0x7   : > { %p195_p3 = scmp.ne.s32.totalorder %s5564_s25, %s5560_s24  ;;  %p196_p4 = scmp.eq.s32.totalorder %s5129_s29, 1 }
   0x8   : > { %s5656_s10 = scalar_select %p177_p1, %s5568_s26, %s179_s8  }
   0x9   : > { %p5658_p5 = por %p190_p2, %p189_p0  ;;  %p5662_p6 = por %p196_p4, %p195_p3 }
   0xa   : > { %p5132_p7 = scmp.ge.s32.totalorder %s5572_s27, 1  ;;  %p240_p8 = scmp.lt.s32.totalorder %s5572_s27, 3 }
   0xc   : > { %p241_p9 = pnand %p5132_p7, %p240_p8 }
   0xe   : > { %244 = sbr.rel (%p241_p9) target bundleno = 1581 (0x62d), region = 48 }
  0x13   : > { %vm277_vm0 = vcmask 7168   ;;  %p272_p10 = scmp.lt.s32.totalorder %s5641_s28, 1  ;;  %v5574_v0 = vmov 0   ;;  %v8461_v1 = vmov 0.0   ;;  %vm286_vm1 = vcmask 0   ;;  %s5576_s18 = smov 32  }
  0x14   : > { %5366 = vset.pattern.permute.xlu0 %v5574_v0  ;;  %279 = vst.msk [vmem:[#allocation2 + $0x8] sm:$0xff] %vm277_vm0, %v8461_v1  ;;  %5368 = vset.pattern.permute.xlu2 %v5574_v0  ;;  %vm280_vm2 = vcmask 1024   ;;  %vm3579_vm3 = vcmask 261120   ;;  %vm3735_vm4 = vcmask 1041409   ;;  %vm3737_vm5 = vcmask 1042434   ;;  %s5577_s19 = smov 96  }
  0x15   : > { %278 = vst.msk [vmem:[#allocation2] sm:$0xff] %vm277_vm0, %v8461_v1  ;;  %5367 = vset.pattern.permute.xlu1 %v5574_v0  ;;  %s273_s13 = scalar_select %p272_p10, %s5641_s28, 1  ;;  %vm3739_vm6 = vcmask 1043459   ;;  %vm3581_vm7 = vcmask 254976   ;;  %vm3586_vm8 = vcmask 253952   ;;  %vm3741_vm9 = vcmask 1044484  }
  0x16   : > { %283 = vst.msk [vmem:[#allocation2 + $0x198] sm:$0xff] %vm277_vm0, %v8461_v1  ;;  %vm3743_vm10 = vcmask 1045509   ;;  %vm3745_vm11 = vcmask 1046534   ;;  %vm3747_vm12 = vcmask 1047559   ;;  %s5578_s20 = smov 64   ;;  %vm4088_vm13 = vcmask 523264  }
  0x17   : > { %284 = vst.msk [vmem:[#allocation2 + $0x1a0] sm:$0xff] %vm277_vm0, %v8461_v1  ;;  %s5319_s14 = sshll.u32 %s273_s13, 8  ;;  %vm4097_vm14 = vcmask 785408   ;;  %vm4525_vm15 = vcmask 521216   ;;  %s5320_s9 = sshll.u32 %s5641_s28, 2 }
  0x18   : > { %s5681_s17 = scalar_lea.vmem %s8453_s0, %s5319_s14  ;;  %289 = vst.msk [vmem:[#allocation2 + $0x30] sm:$0x1] %vm286_vm1, %v8461_v1  ;;  %s5063_s15 = scalar_lea.hbm %s8460_s7, %s5320_s9 }
  0x19   : > { %v325_v2 = vld [vmem:[%s5681_s17 + $0x10] sm:$0xff]  ;;  %287 = vst.msk [vmem:[#allocation2] sm:$0x1] %vm286_vm1, %v8461_v1  ;;  %v323_v6 = vld [vmem:[%s5681_s17] sm:$0xff]  ;;  %v326_v7 = vld [vmem:[%s5681_s17 + $0x18] sm:$0xff] }
  0x1a   : > { %358 = vst.msk [vmem:[#allocation2 + $0x31] sm:$0xff] %vm277_vm0, %v325_v2  ;;  %v324_v8 = vld [vmem:[%s5681_s17 + $0x8] sm:$0xff]  ;;  %v327_v9 = vld [vmem:[%s5681_s17 + $0x20] sm:$0xff]  ;;  %v329_v10 = vld [vmem:[%s5681_s17 + $0x30] sm:$0xff] }
  0x1b   : > { %v389_v3 = vld [vmem:[#allocation2 + $0x8] sm:$0xff]  ;;  %288 = vst.msk [vmem:[#allocation2 + $0x18] sm:$0x1] %vm286_vm1, %v8461_v1  ;;  %v328_v11 = vld [vmem:[%s5681_s17 + $0x28] sm:$0xff]  ;;  %v330_v12 = vld [vmem:[%s5681_s17 + $0x38] sm:$0xff] }
  0x1c   : > { %428 = vperm.xlu0 %5366, %v389_v3   ;;  %290 = vst.msk [vmem:[#allocation2 + $0x48] sm:$0x1] %vm286_vm1, %v8461_v1  ;;  %v331_v13 = vld [vmem:[%s5681_s17 + $0x40] sm:$0xff]  ;;  %v332_v14 = vld [vmem:[%s5681_s17 + $0x48] sm:$0xff]  ;;  %v333_v15 = vld [vmem:[%s5681_s17 + $0x50] sm:$0xff] }
  0x1d   : > { %291 = vst.msk [vmem:[#allocation2 + $0x60] sm:$0x1] %vm286_vm1, %v8461_v1  ;;  %v335_v17 = vld [vmem:[%s5681_s17 + $0x60] sm:$0xff]  ;;  %v334_v19 = vld [vmem:[%s5681_s17 + $0x58] sm:$0xff]  ;;  %v336_v20 = vld [vmem:[%s5681_s17 + $0x68] sm:$0xff] }
  0x1e   : > { %292 = vst.msk [vmem:[#allocation2 + $0x78] sm:$0x1] %vm286_vm1, %v8461_v1  ;;  %v337_v22 = vld [vmem:[%s5681_s17 + $0x70] sm:$0xff]  ;;  %v338_v23 = vld [vmem:[%s5681_s17 + $0x78] sm:$0xff]  ;;  %v339_v24 = vld [vmem:[%s5681_s17 + $0x80] sm:$0xff] }
  0x1f   : > { %293 = vst.msk [vmem:[#allocation2 + $0x90] sm:$0x1] %vm286_vm1, %v8461_v1  ;;  %v341_v27 = vld [vmem:[%s5681_s17 + $0x90] sm:$0xff]  ;;  %v340_v28 = vld [vmem:[%s5681_s17 + $0x88] sm:$0xff]  ;;  %v342_v30 = vld [vmem:[%s5681_s17 + $0x98] sm:$0xff] }
  0x20   : > { %294 = vst.msk [vmem:[#allocation2 + $0xa8] sm:$0x1] %vm286_vm1, %v8461_v1  ;;  %v388_v5 = vld [vmem:[#allocation2] sm:$0xff]  ;;  %v343_v33 = vld [vmem:[%s5681_s17 + $0xa0] sm:$0xff]  ;;  %v345_v36 = vld [vmem:[%s5681_s17 + $0xb0] sm:$0xff] }
  0x21   : > { %v5701_v4 = vld [vmem:[#allocation2 + $0x30] sm:$0xff]  ;;  %295 = vst.msk [vmem:[#allocation2 + $0xc0] sm:$0x1] %vm286_vm1, %v8461_v1  ;;  %v344_v34 = vld [vmem:[%s5681_s17 + $0xa8] sm:$0xff]  ;;  %v347_v39 = vld [vmem:[%s5681_s17 + $0xc0] sm:$0xff] }
  0x22   : > { %443 = vperm.xlu2 %5368, %v5701_v4   ;;  %296 = vst.msk [vmem:[#allocation2 + $0xd8] sm:$0x1] %vm286_vm1, %v8461_v1  ;;  %v346_v40 = vld [vmem:[%s5681_s17 + $0xb8] sm:$0xff]  ;;  %v348_v42 = vld [vmem:[%s5681_s17 + $0xc8] sm:$0xff]  ;;  %v349_v45 = vld [vmem:[%s5681_s17 + $0xd0] sm:$0xff] }
  0x23   : > { %297 = vst.msk [vmem:[#allocation2 + $0xf0] sm:$0x1] %vm286_vm1, %v8461_v1  ;;  %v350_v46 = vld [vmem:[%s5681_s17 + $0xd8] sm:$0xff]  ;;  %v351_v48 = vld [vmem:[%s5681_s17 + $0xe0] sm:$0xff]  ;;  %v352_v51 = vld [vmem:[%s5681_s17 + $0xe8] sm:$0xff] }
  0x24   : > { %298 = vst.msk [vmem:[#allocation2 + $0x108] sm:$0x1] %vm286_vm1, %v8461_v1  ;;  %423 = vperm.xlu0 %5366, %v388_v5   ;;  %v646_v63 = vld [vmem:[#allocation2 + $0x1] sm:$0xff]  ;;  %v5909_v5 = vld [vmem:[#allocation2 + $0x31] sm:$0xff] }
  0x25   : > { %299 = vst.msk [vmem:[#allocation2 + $0x120] sm:$0x1] %vm286_vm1, %v8461_v1 }
  0x26   : > { %300 = vst.msk [vmem:[#allocation2 + $0x138] sm:$0x1] %vm286_vm1, %v8461_v1 }
  0x27   : > { %301 = vst.msk [vmem:[#allocation2 + $0x150] sm:$0x1] %vm286_vm1, %v8461_v1 }
  0x28   : > { %302 = vst.msk [vmem:[#allocation2 + $0x168] sm:$0x1] %vm286_vm1, %v8461_v1 }
  0x29   : > { %303 = vst.msk [vmem:[#allocation2 + $0x180] sm:$0x1] %vm286_vm1, %v8461_v1 }
  0x2a   : > { %304 = vst.msk [vmem:[#allocation2 + $0x198] sm:$0x1] %vm286_vm1, %v8461_v1 }
  0x2b   : > { %306 = vst.msk [vmem:[#allocation2 + $0x29] sm:$0x1] %vm286_vm1, %v8461_v1 }
  0x2c   : > { %307 = vst.msk [vmem:[#allocation2 + $0x41] sm:$0x1] %vm286_vm1, %v8461_v1 }
  0x2d   : > { %308 = vst.msk [vmem:[#allocation2 + $0x59] sm:$0x1] %vm286_vm1, %v8461_v1 }
  0x2e   : > { %309 = vst.msk [vmem:[#allocation2 + $0x71] sm:$0x1] %vm286_vm1, %v8461_v1 }
  0x2f   : > { %310 = vst.msk [vmem:[#allocation2 + $0x89] sm:$0x1] %vm286_vm1, %v8461_v1 }
  0x30   : > { %311 = vst.msk [vmem:[#allocation2 + $0xa1] sm:$0x1] %vm286_vm1, %v8461_v1 }
  0x31   : > { %312 = vst.msk [vmem:[#allocation2 + $0xb9] sm:$0x1] %vm286_vm1, %v8461_v1 }
  0x32   : > { %313 = vst.msk [vmem:[#allocation2 + $0xd1] sm:$0x1] %vm286_vm1, %v8461_v1 }
  0x33   : > { %314 = vst.msk [vmem:[#allocation2 + $0xe9] sm:$0x1] %vm286_vm1, %v8461_v1 }
  0x34   : > { %315 = vst.msk [vmem:[#allocation2 + $0x101] sm:$0x1] %vm286_vm1, %v8461_v1 }
  0x35   : > { %316 = vst.msk [vmem:[#allocation2 + $0x119] sm:$0x1] %vm286_vm1, %v8461_v1 }
  0x36   : > { %317 = vst.msk [vmem:[#allocation2 + $0x131] sm:$0x1] %vm286_vm1, %v8461_v1 }
  0x37   : > { %318 = vst.msk [vmem:[#allocation2 + $0x149] sm:$0x1] %vm286_vm1, %v8461_v1 }
  0x38   : > { %319 = vst.msk [vmem:[#allocation2 + $0x161] sm:$0x1] %vm286_vm1, %v8461_v1 }
  0x39   : > { %320 = vst.msk [vmem:[#allocation2 + $0x179] sm:$0x1] %vm286_vm1, %v8461_v1 }
  0x3a   : > { %321 = vst.msk [vmem:[#allocation2 + $0x191] sm:$0x1] %vm286_vm1, %v8461_v1 }
  0x3b   : > { %356 = vst.msk [vmem:[#allocation2 + $0x19] sm:$0xff] %vm277_vm0, %v323_v6 }
  0x3c   : > { %359 = vst.msk [vmem:[#allocation2 + $0x39] sm:$0xff] %vm277_vm0, %v326_v7 }
  0x3d   : > { %357 = vst.msk [vmem:[#allocation2 + $0x21] sm:$0xff] %vm277_vm0, %v324_v8 }
  0x3e   : > { %360 = vst.msk [vmem:[#allocation2 + $0x49] sm:$0xff] %vm277_vm0, %v327_v9 }
  0x3f   : > { %362 = vst.msk [vmem:[#allocation2 + $0x61] sm:$0xff] %vm277_vm0, %v329_v10 }
  0x40   : > { %361 = vst.msk [vmem:[#allocation2 + $0x51] sm:$0xff] %vm277_vm0, %v328_v11 }
  0x41   : > { %363 = vst.msk [vmem:[#allocation2 + $0x69] sm:$0xff] %vm277_vm0, %v330_v12 }
  0x42   : > { %v5773_v16 = vld [vmem:[#allocation2 + $0x18] sm:$0xff]  ;;  %364 = vst.msk [vmem:[#allocation2 + $0x79] sm:$0xff] %vm277_vm0, %v331_v13 }
  0x43   : > { %433 = vperm.xlu1 %5367, %v5773_v16   ;;  %v5778_v18 = vld [vmem:[#allocation2 + $0x38] sm:$0xff]  ;;  %365 = vst.msk [vmem:[#allocation2 + $0x81] sm:$0xff] %vm277_vm0, %v332_v14 }
  0x44   : > { %448 = vperm.xlu2 %5368, %v5778_v18   ;;  %366 = vst.msk [vmem:[#allocation2 + $0x91] sm:$0xff] %vm277_vm0, %v333_v15  ;;  %v5794_v25 = vld [vmem:[#allocation2 + $0x20] sm:$0xff] }
  0x45   : > { %v5785_v21 = vld [vmem:[#allocation2 + $0x48] sm:$0xff]  ;;  %368 = vst.msk [vmem:[#allocation2 + $0xa9] sm:$0xff] %vm277_vm0, %v335_v17  ;;  %v5915_v7 = vld [vmem:[#allocation2 + $0x19] sm:$0xff] }
  0x46   : > { %453 = vperm.xlu0 %5366, %v5785_v21   ;;  %367 = vst.msk [vmem:[#allocation2 + $0x99] sm:$0xff] %vm277_vm0, %v334_v19  ;;  %v5797_v26 = vld [vmem:[#allocation2 + $0x60] sm:$0xff]  ;;  %v5917_v8 = vld [vmem:[#allocation2 + $0x49] sm:$0xff] }
  0x47   : > { %369 = vst.msk [vmem:[#allocation2 + $0xb1] sm:$0xff] %vm277_vm0, %v336_v20  ;;  %v5812_v31 = vld [vmem:[#allocation2 + $0x50] sm:$0xff]  ;;  %v5906_v3 = vld [vmem:[#allocation2 + $0x21] sm:$0xff]  ;;  %v5926_v11 = vld [vmem:[#allocation2 + $0x39] sm:$0xff] }
  0x48   : > { %370 = vst.msk [vmem:[#allocation2 + $0xc1] sm:$0xff] %vm277_vm0, %v337_v22  ;;  %v5804_v29 = vld [vmem:[#allocation2 + $0x68] sm:$0xff]  ;;  %v5920_v9 = vld [vmem:[#allocation2 + $0x51] sm:$0xff] }
  0x49   : > { %371 = vst.msk [vmem:[#allocation2 + $0xc9] sm:$0xff] %vm277_vm0, %v338_v23  ;;  %v5827_v37 = vld [vmem:[#allocation2 + $0x78] sm:$0xff]  ;;  %v5928_v12 = vld [vmem:[#allocation2 + $0x69] sm:$0xff]  ;;  %v5939_v17 = vld [vmem:[#allocation2 + $0x61] sm:$0xff] }
  0x4a   : > { %372 = vst.msk [vmem:[#allocation2 + $0xd9] sm:$0xff] %vm277_vm0, %v339_v24  ;;  %v5814_v32 = vld [vmem:[#allocation2 + $0x80] sm:$0xff] }
  0x4b   : > { %438 = vperm.xlu1 %5367, %v5794_v25   ;;  %374 = vst.msk [vmem:[#allocation2 + $0xf1] sm:$0xff] %vm277_vm0, %v341_v27  ;;  %v5819_v35 = vld [vmem:[#allocation2 + $0x90] sm:$0xff]  ;;  %v5931_v13 = vld [vmem:[#allocation2 + $0x79] sm:$0xff]  ;;  %v5952_v24 = vld [vmem:[#allocation2 + $0x81] sm:$0xff] }
  0x4c   : > { %463 = vperm.xlu2 %5368, %v5797_v26   ;;  %373 = vst.msk [vmem:[#allocation2 + $0xe1] sm:$0xff] %vm277_vm0, %v340_v28  ;;  %v5829_v38 = vld [vmem:[#allocation2 + $0xa8] sm:$0xff]  ;;  %v5941_v19 = vld [vmem:[#allocation2 + $0x91] sm:$0xff] }
  0x4d   : > { %375 = vst.msk [vmem:[#allocation2 + $0xf9] sm:$0xff] %vm277_vm0, %v342_v30  ;;  %v5842_v43 = vld [vmem:[#allocation2 + $0x98] sm:$0xff] }
  0x4e   : > { %468 = vperm.xlu0 %5366, %v5804_v29   ;;  %376 = vst.msk [vmem:[#allocation2 + $0x109] sm:$0xff] %vm277_vm0, %v343_v33  ;;  %v5834_v41 = vld [vmem:[#allocation2 + $0xb0] sm:$0xff]  ;;  %v5944_v20 = vld [vmem:[#allocation2 + $0x99] sm:$0xff] }
  0x4f   : > { %377 = vst.msk [vmem:[#allocation2 + $0x111] sm:$0xff] %vm277_vm0, %v344_v34  ;;  %v5857_v49 = vld [vmem:[#allocation2 + $0xc0] sm:$0xff]  ;;  %v5954_v27 = vld [vmem:[#allocation2 + $0xb1] sm:$0xff]  ;;  %v5965_v34 = vld [vmem:[#allocation2 + $0xa9] sm:$0xff] }
  0x50   : > { %378 = vst.msk [vmem:[#allocation2 + $0x121] sm:$0xff] %vm277_vm0, %v345_v36  ;;  %v5844_v44 = vld [vmem:[#allocation2 + $0xc8] sm:$0xff] }
  0x51   : > { %380 = vst.msk [vmem:[#allocation2 + $0x139] sm:$0xff] %vm277_vm0, %v347_v39  ;;  %v5849_v47 = vld [vmem:[#allocation2 + $0xd8] sm:$0xff]  ;;  %v5957_v28 = vld [vmem:[#allocation2 + $0xc1] sm:$0xff] }
  0x52   : > { %379 = vst.msk [vmem:[#allocation2 + $0x129] sm:$0xff] %vm277_vm0, %v346_v40  ;;  %v5859_v50 = vld [vmem:[#allocation2 + $0xf0] sm:$0xff]  ;;  %v5969_v39 = vld [vmem:[#allocation2 + $0xd9] sm:$0xff] }
  0x53   : > { %458 = vperm.xlu1 %5367, %v5812_v31   ;;  %381 = vst.msk [vmem:[#allocation2 + $0x141] sm:$0xff] %vm277_vm0, %v348_v42  ;;  %v5872_v53 = vld [vmem:[#allocation2 + $0xe0] sm:$0xff] }
  0x54   : > { %478 = vperm.xlu2 %5368, %v5814_v32   ;;  %382 = vst.msk [vmem:[#allocation2 + $0x151] sm:$0xff] %vm277_vm0, %v349_v45  ;;  %v5863_v52 = vld [vmem:[#allocation2 + $0xf8] sm:$0xff]  ;;  %v5972_v40 = vld [vmem:[#allocation2 + $0xe1] sm:$0xff] }
  0x55   : > { %383 = vst.msk [vmem:[#allocation2 + $0x159] sm:$0xff] %vm277_vm0, %v350_v46  ;;  %v5883_v56 = vld [vmem:[#allocation2 + $0x108] sm:$0xff] }
  0x56   : > { %483 = vperm.xlu0 %5366, %v5819_v35   ;;  %384 = vst.msk [vmem:[#allocation2 + $0x169] sm:$0xff] %vm277_vm0, %v351_v48  ;;  %v5876_v54 = vld [vmem:[#allocation2 + $0x110] sm:$0xff] }
  0x57   : > { %385 = vst.msk [vmem:[#allocation2 + $0x171] sm:$0xff] %vm277_vm0, %v352_v51  ;;  %v5879_v55 = vld [vmem:[#allocation2 + $0x120] sm:$0xff]  ;;  %v5980_v46 = vld [vmem:[#allocation2 + $0xc9] sm:$0xff] }
  0x58   : > { %281 = vst.msk [vmem:[#allocation2 + $0x10] sm:$0x3] %vm280_vm2, %v8461_v1  ;;  %v5885_v57 = vld [vmem:[#allocation2 + $0x138] sm:$0xff] }
  0x59   : > { %285 = vst.msk [vmem:[#allocation2 + $0x1a8] sm:$0x3] %vm280_vm2, %v8461_v1  ;;  %v5892_v59 = vld [vmem:[#allocation2 + $0x128] sm:$0xff]  ;;  %v5984_v51 = vld [vmem:[#allocation2 + $0xf9] sm:$0xff] }
  0x5a   : > { %305 = vst.msk [vmem:[#allocation2 + $0x11] sm:$0x1] %vm286_vm1, %v8461_v1  ;;  %v5888_v58 = vld [vmem:[#allocation2 + $0x140] sm:$0xff] }
  0x5b   : > { %473 = vperm.xlu1 %5367, %v5827_v37   ;;  %322 = vst.msk [vmem:[#allocation2 + $0x1a9] sm:$0x1] %vm286_vm1, %v8461_v1  ;;  %v5901_v62 = vld [vmem:[#allocation2 + $0x150] sm:$0xff]  ;;  %vm4591_vm1 = vcmask 519168  }
  0x5c   : > { %493 = vperm.xlu2 %5368, %v5829_v38   ;;  %v5894_v60 = vld [vmem:[#allocation2 + $0x158] sm:$0xff] }
  0x5d   : > { %v5897_v61 = vld [vmem:[#allocation2 + $0x168] sm:$0xff] }
  0x5e   : > { %498 = vperm.xlu0 %5366, %v5834_v41   ;;  %v5904_v2 = vld [vmem:[#allocation2 + $0x170] sm:$0xff] }
  0x5f   : > { %v647_v0 = vld [vmem:[#allocation2 + $0x9] sm:$0xff] }
  0x63   : > { %488 = vperm.xlu1 %5367, %v5842_v43  }
  0x64   : > { %508 = vperm.xlu2 %5368, %v5844_v44  }
  0x66   : > { %513 = vperm.xlu0 %5366, %v5849_v47  }
  0x6b   : > { %503 = vperm.xlu1 %5367, %v5857_v49  }
  0x6c   : > { %523 = vperm.xlu2 %5368, %v5859_v50  }
  0x6e   : > { %528 = vperm.xlu0 %5366, %v5863_v52  }
  0x73   : > { %518 = vperm.xlu1 %5367, %v5872_v53  }
  0x74   : > { %538 = vperm.xlu2 %5368, %v5876_v54  }
  0x76   : > { %543 = vperm.xlu0 %5366, %v5879_v55  }
  0x7b   : > { %533 = vperm.xlu1 %5367, %v5883_v56  }
  0x7c   : > { %553 = vperm.xlu2 %5368, %v5885_v57   ;;  %v5912_v6 = vpop.permute.xlu2 %443 }
  0x7d   : > { %8498 = vst [vmem:[#allocation8_spill] sm:$0xff] %v5912_v6  ;;  %v6040_v6 = vld [vmem:[#allocation2 + $0x159] sm:$0xff] }
  0x7e   : > { %558 = vperm.xlu0 %5366, %v5888_v58   ;;  %8526 = vst [vmem:[#allocation36_spill] sm:$0xff] %v6040_v6 }
  0x83   : > { %548 = vperm.xlu1 %5367, %v5892_v59  }
  0x84   : > { %568 = vperm.xlu2 %5368, %v5894_v60  }
  0x86   : > { %573 = vperm.xlu0 %5366, %v5897_v61  }
  0x8b   : > { %563 = vperm.xlu1 %5367, %v5901_v62  }
  0x8c   : > { %681 = vperm.xlu2 %5368, %v646_v63   ;;  %v5987_v63 = vld [vmem:[#allocation2 + $0x109] sm:$0xff] }
  0x8e   : > { %686 = vperm.xlu0 %5366, %v647_v0   ;;  %v5934_v14 = vpop.permute.xlu0 %428 }
  0x8f   : > { %8500 = vst [vmem:[#allocation10_spill] sm:$0xff] %v5934_v14 }
  0x93   : > { %578 = vperm.xlu1 %5367, %v5904_v2  }
  0x94   : > { %696 = vperm.xlu2 %5368, %v5906_v3  }
  0x96   : > { %701 = vperm.xlu0 %5366, %v5909_v5   ;;  %v5950_v23 = vpop.permute.xlu0 %423 }
  0x97   : > { %8503 = vst [vmem:[#allocation13_spill] sm:$0xff] %v5950_v23  ;;  %v6014_v23 = vld [vmem:[#allocation2 + $0x141] sm:$0xff] }
  0x98   : > { %8517 = vst [vmem:[#allocation27_spill] sm:$0xff] %v6014_v23 }
  0x9b   : > { %691 = vperm.xlu1 %5367, %v5915_v7  }
  0x9c   : > { %711 = vperm.xlu2 %5368, %v5917_v8  }
  0x9e   : > { %716 = vperm.xlu0 %5366, %v5920_v9   ;;  %v5924_v10 = vpop.permute.xlu2 %448 }
  0x9f   : > { %8499 = vst [vmem:[#allocation9_spill] sm:$0xff] %v5924_v10  ;;  %v6029_v10 = vld [vmem:[#allocation2 + $0x169] sm:$0xff] }
  0xa0   : > { %8522 = vst [vmem:[#allocation32_spill] sm:$0xff] %v6029_v10 }
  0xa3   : > { %706 = vperm.xlu1 %5367, %v5926_v11  }
  0xa4   : > { %726 = vperm.xlu2 %5368, %v5928_v12  }
  0xa6   : > { %731 = vperm.xlu0 %5366, %v5931_v13   ;;  %v5937_v15 = vpop.permute.xlu2 %463 }
  0xa7   : > { %8501 = vst [vmem:[#allocation11_spill] sm:$0xff] %v5937_v15  ;;  %v6025_v15 = vld [vmem:[#allocation2 + $0x139] sm:$0xff] }
  0xab   : > { %721 = vperm.xlu1 %5367, %v5939_v17  }
  0xac   : > { %741 = vperm.xlu2 %5368, %v5941_v19  }
  0xae   : > { %746 = vperm.xlu0 %5366, %v5944_v20   ;;  %v5948_v22 = vpop.permute.xlu2 %478 }
  0xaf   : > { %8502 = vst [vmem:[#allocation12_spill] sm:$0xff] %v5948_v22 }
  0xb3   : > { %736 = vperm.xlu1 %5367, %v5952_v24  }
  0xb4   : > { %756 = vperm.xlu2 %5368, %v5954_v27  }
  0xb5   : > { %v5960_v30 = vpop.permute.xlu1 %433 }
  0xb6   : > { %8504 = vst [vmem:[#allocation14_spill] sm:$0xff] %v5960_v30  ;;  %761 = vperm.xlu0 %5366, %v5957_v28   ;;  %v5963_v33 = vpop.permute.xlu2 %493  ;;  %v6010_v30 = vld [vmem:[#allocation2 + $0x111] sm:$0xff] }
  0xb7   : > { %8505 = vst [vmem:[#allocation15_spill] sm:$0xff] %v5963_v33 }
  0xb8   : > { %v5967_v36 = vpop.permute.xlu0 %453 }
  0xb9   : > { %8506 = vst [vmem:[#allocation16_spill] sm:$0xff] %v5967_v36  ;;  %v5999_v36 = vld [vmem:[#allocation2 + $0x121] sm:$0xff] }
  0xbb   : > { %751 = vperm.xlu1 %5367, %v5965_v34  }
  0xbc   : > { %771 = vperm.xlu2 %5368, %v5969_v39  }
  0xbd   : > { %v5975_v42 = vpop.permute.xlu1 %438 }
  0xbe   : > { %8507 = vst [vmem:[#allocation17_spill] sm:$0xff] %v5975_v42  ;;  %776 = vperm.xlu0 %5366, %v5972_v40   ;;  %v5978_v45 = vpop.permute.xlu2 %508  ;;  %v5995_v42 = vld [vmem:[#allocation2 + $0xf1] sm:$0xff] }
  0xbf   : > { %8508 = vst [vmem:[#allocation18_spill] sm:$0xff] %v5978_v45 }
  0xc0   : > { %v5982_v48 = vpop.permute.xlu0 %468 }
  0xc1   : > { %8509 = vst [vmem:[#allocation19_spill] sm:$0xff] %v5982_v48  ;;  %v6002_v48 = vld [vmem:[#allocation2 + $0x129] sm:$0xff] }
  0xc2   : > { %8513 = vst [vmem:[#allocation23_spill] sm:$0xff] %v6002_v48 }
  0xc3   : > { %766 = vperm.xlu1 %5367, %v5980_v46  }
  0xc4   : > { %786 = vperm.xlu2 %5368, %v5984_v51  }
  0xc5   : > { %v5990_v0 = vpop.permute.xlu1 %458 }
  0xc6   : > { %8510 = vst [vmem:[#allocation20_spill] sm:$0xff] %v5990_v0  ;;  %791 = vperm.xlu0 %5366, %v5987_v63   ;;  %v5993_v1 = vpop.permute.xlu2 %523 }
  0xc7   : > { %8511 = vst [vmem:[#allocation21_spill] sm:$0xff] %v5993_v1 }
  0xc8   : > { %v5997_v45 = vpop.permute.xlu0 %483 }
  0xc9   : > { %8512 = vst [vmem:[#allocation22_spill] sm:$0xff] %v5997_v45  ;;  %v6017_v45 = vld [vmem:[#allocation2 + $0x151] sm:$0xff] }
  0xca   : > { %8518 = vst [vmem:[#allocation28_spill] sm:$0xff] %v6017_v45 }
  0xcb   : > { %781 = vperm.xlu1 %5367, %v5995_v42  }
  0xcc   : > { %801 = vperm.xlu2 %5368, %v5999_v36  }
  0xcd   : > { %v6005_v33 = vpop.permute.xlu1 %473 }
  0xce   : > { %8514 = vst [vmem:[#allocation24_spill] sm:$0xff] %v6005_v33  ;;  %806 = vperm.xlu0 %5366, %v6002_v48   ;;  %v6008_v0 = vpop.permute.xlu2 %538 }
  0xcf   : > { %8515 = vst [vmem:[#allocation25_spill] sm:$0xff] %v6008_v0 }
  0xd0   : > { %v6012_v1 = vpop.permute.xlu0 %498 }
  0xd1   : > { %8516 = vst [vmem:[#allocation26_spill] sm:$0xff] %v6012_v1  ;;  %v6032_v1 = vld [vmem:[#allocation2 + $0x171] sm:$0xff] }
  0xd2   : > { %8523 = vst [vmem:[#allocation33_spill] sm:$0xff] %v6032_v1 }
  0xd3   : > { %796 = vperm.xlu1 %5367, %v6010_v30  }
  0xd4   : > { %816 = vperm.xlu2 %5368, %v6014_v23  }
  0xd5   : > { %v6020_v22 = vpop.permute.xlu1 %488 }
  0xd6   : > { %8519 = vst [vmem:[#allocation29_spill] sm:$0xff] %v6020_v22  ;;  %821 = vperm.xlu0 %5366, %v6017_v45   ;;  %v6023_v33 = vpop.permute.xlu2 %553  ;;  %v905_v45 = vld [vmem:[#allocation2 + $0xa] sm:$0xff] }
  0xd7   : > { %8520 = vst [vmem:[#allocation30_spill] sm:$0xff] %v6023_v33 }
  0xd8   : > { %v6027_v0 = vpop.permute.xlu0 %513 }
  0xd9   : > { %8521 = vst [vmem:[#allocation31_spill] sm:$0xff] %v6027_v0  ;;  %v6045_v0 = vld [vmem:[#allocation2 + $0x1a] sm:$0xff] }
  0xda   : > { %8528 = vst [vmem:[#allocation38_spill] sm:$0xff] %v6045_v0 }
  0xdb   : > { %811 = vperm.xlu1 %5367, %v6025_v15  }
  0xdc   : > { %831 = vperm.xlu2 %5368, %v6029_v10   ;;  %v6056_v10 = vld [vmem:[#allocation2 + $0x3a] sm:$0xff] }
  0xdd   : > { %v6035_v14 = vpop.permute.xlu1 %503  ;;  %8533 = vst [vmem:[#allocation43_spill] sm:$0xff] %v6056_v10 }
  0xde   : > { %8524 = vst [vmem:[#allocation34_spill] sm:$0xff] %v6035_v14  ;;  %836 = vperm.xlu0 %5366, %v6032_v1   ;;  %v6038_v22 = vpop.permute.xlu2 %568  ;;  %v904_v14 = vld [vmem:[#allocation2 + $0x2] sm:$0xff] }
  0xdf   : > { %8525 = vst [vmem:[#allocation35_spill] sm:$0xff] %v6038_v22  ;;  %v6054_v22 = vld [vmem:[#allocation2 + $0x32] sm:$0xff] }
  0xe0   : > { %v6042_v33 = vpop.permute.xlu0 %528  ;;  %8532 = vst [vmem:[#allocation42_spill] sm:$0xff] %v6054_v22 }
  0xe1   : > { %8527 = vst [vmem:[#allocation37_spill] sm:$0xff] %v6042_v33 }
  0xe3   : > { %826 = vperm.xlu1 %5367, %v6040_v6  }
  0xe4   : > { %944 = vperm.xlu2 %5368, %v905_v45   ;;  %v6064_v45 = vld [vmem:[#allocation2 + $0x22] sm:$0xff] }
  0xe5   : > { %v6047_v48 = vpop.permute.xlu1 %518 }
  0xe6   : > { %8529 = vst [vmem:[#allocation39_spill] sm:$0xff] %v6047_v48  ;;  %v6049_v23 = vpop.permute.xlu2 %681  ;;  %949 = vperm.xlu0 %5366, %v6045_v0  }
  0xe7   : > { %8530 = vst [vmem:[#allocation40_spill] sm:$0xff] %v6049_v23  ;;  %v6068_v23 = vld [vmem:[#allocation2 + $0x52] sm:$0xff] }
  0xe8   : > { %v6052_v1 = vpop.permute.xlu0 %543  ;;  %8537 = vst [vmem:[#allocation47_spill] sm:$0xff] %v6068_v23 }
  0xe9   : > { %8531 = vst [vmem:[#allocation41_spill] sm:$0xff] %v6052_v1  ;;  %v6071_v1 = vld [vmem:[#allocation2 + $0x62] sm:$0xff] }
  0xea   : > { %8538 = vst [vmem:[#allocation48_spill] sm:$0xff] %v6071_v1 }
  0xeb   : > { %939 = vperm.xlu1 %5367, %v904_v14  }
  0xec   : > { %959 = vperm.xlu2 %5368, %v6054_v22  }
  0xed   : > { %v6059_v33 = vpop.permute.xlu1 %533 }
  0xee   : > { %8534 = vst [vmem:[#allocation44_spill] sm:$0xff] %v6059_v33  ;;  %v6061_v6 = vpop.permute.xlu2 %696  ;;  %964 = vperm.xlu0 %5366, %v6056_v10   ;;  %v6079_v33 = vld [vmem:[#allocation2 + $0x4a] sm:$0xff]  ;;  %v6083_v10 = vld [vmem:[#allocation2 + $0x7a] sm:$0xff] }
  0xef   : > { %8535 = vst [vmem:[#allocation45_spill] sm:$0xff] %v6061_v6 }
  0xf0   : > { %v6066_v48 = vpop.permute.xlu0 %558  ;;  %8541 = vst [vmem:[#allocation51_spill] sm:$0xff] %v6079_v33 }
  0xf1   : > { %8536 = vst [vmem:[#allocation46_spill] sm:$0xff] %v6066_v48  ;;  %v6086_v48 = vld [vmem:[#allocation2 + $0x82] sm:$0xff] }
  0xf2   : > { %8543 = vst [vmem:[#allocation53_spill] sm:$0xff] %v6083_v10 }
  0xf3   : > { %954 = vperm.xlu1 %5367, %v6064_v45   ;;  %8544 = vst [vmem:[#allocation54_spill] sm:$0xff] %v6086_v48 }
  0xf4   : > { %974 = vperm.xlu2 %5368, %v6068_v23  }
  0xf5   : > { %v6074_v14 = vpop.permute.xlu1 %548 }
  0xf6   : > { %8539 = vst [vmem:[#allocation49_spill] sm:$0xff] %v6074_v14  ;;  %v6076_v0 = vpop.permute.xlu2 %711  ;;  %979 = vperm.xlu0 %5366, %v6071_v1   ;;  %v6094_v14 = vld [vmem:[#allocation2 + $0x6a] sm:$0xff]  ;;  %v6098_v1 = vld [vmem:[#allocation2 + $0x9a] sm:$0xff] }
  0xf7   : > { %8540 = vst [vmem:[#allocation50_spill] sm:$0xff] %v6076_v0 }
  0xf8   : > { %v6081_v6 = vpop.permute.xlu0 %573  ;;  %8547 = vst [vmem:[#allocation57_spill] sm:$0xff] %v6094_v14 }
  0xf9   : > { %8542 = vst [vmem:[#allocation52_spill] sm:$0xff] %v6081_v6  ;;  %v6101_v6 = vld [vmem:[#allocation2 + $0xaa] sm:$0xff] }
  0xfa   : > { %8549 = vst [vmem:[#allocation59_spill] sm:$0xff] %v6098_v1 }
  0xfb   : > { %969 = vperm.xlu1 %5367, %v6079_v33   ;;  %8550 = vst [vmem:[#allocation60_spill] sm:$0xff] %v6101_v6 }
  0xfc   : > { %989 = vperm.xlu2 %5368, %v6083_v10  }
  0xfd   : > { %v6089_v22 = vpop.permute.xlu1 %563 }
  0xfe   : > { %8545 = vst [vmem:[#allocation55_spill] sm:$0xff] %v6089_v22  ;;  %v6091_v23 = vpop.permute.xlu2 %726  ;;  %994 = vperm.xlu0 %5366, %v6086_v48   ;;  %v6109_v22 = vld [vmem:[#allocation2 + $0x92] sm:$0xff]  ;;  %v6113_v48 = vld [vmem:[#allocation2 + $0xc2] sm:$0xff] }
  0xff   : > { %8546 = vst [vmem:[#allocation56_spill] sm:$0xff] %v6091_v23 }
 0x100   : > { %v6096_v0 = vpop.permute.xlu0 %686  ;;  %8553 = vst [vmem:[#allocation63_spill] sm:$0xff] %v6109_v22 }
 0x101   : > { %8548 = vst [vmem:[#allocation58_spill] sm:$0xff] %v6096_v0  ;;  %v6116_v0 = vld [vmem:[#allocation2 + $0xca] sm:$0xff] }
 0x102   : > { %8555 = vst [vmem:[#allocation65_spill] sm:$0xff] %v6113_v48 }
 0x103   : > { %984 = vperm.xlu1 %5367, %v6094_v14   ;;  %8556 = vst [vmem:[#allocation66_spill] sm:$0xff] %v6116_v0 }
 0x104   : > { %1004 = vperm.xlu2 %5368, %v6098_v1  }
 0x105   : > { %v6104_v33 = vpop.permute.xlu1 %578 }
 0x106   : > { %8551 = vst [vmem:[#allocation61_spill] sm:$0xff] %v6104_v33  ;;  %v6106_v10 = vpop.permute.xlu2 %741  ;;  %1009 = vperm.xlu0 %5366, %v6101_v6   ;;  %v6124_v33 = vld [vmem:[#allocation2 + $0xb2] sm:$0xff]  ;;  %v6128_v6 = vld [vmem:[#allocation2 + $0xe2] sm:$0xff] }
 0x107   : > { %8552 = vst [vmem:[#allocation62_spill] sm:$0xff] %v6106_v10 }
 0x108   : > { %v6111_v23 = vpop.permute.xlu0 %701  ;;  %8559 = vst [vmem:[#allocation69_spill] sm:$0xff] %v6124_v33 }
 0x109   : > { %8554 = vst [vmem:[#allocation64_spill] sm:$0xff] %v6111_v23  ;;  %v6131_v23 = vld [vmem:[#allocation2 + $0xf2] sm:$0xff] }
 0x10a   : > { %8561 = vst [vmem:[#allocation71_spill] sm:$0xff] %v6128_v6 }
 0x10b   : > { %999 = vperm.xlu1 %5367, %v6109_v22   ;;  %8562 = vst [vmem:[#allocation72_spill] sm:$0xff] %v6131_v23 }
 0x10c   : > { %1019 = vperm.xlu2 %5368, %v6113_v48  }
 0x10d   : > { %v6119_v14 = vpop.permute.xlu1 %691 }
 0x10e   : > { %8557 = vst [vmem:[#allocation67_spill] sm:$0xff] %v6119_v14  ;;  %v6121_v1 = vpop.permute.xlu2 %756  ;;  %1024 = vperm.xlu0 %5366, %v6116_v0   ;;  %v6143_v0 = vld [vmem:[#allocation2 + $0x10a] sm:$0xff] }
 0x10f   : > { %8558 = vst [vmem:[#allocation68_spill] sm:$0xff] %v6121_v1  ;;  %v6139_v1 = vld [vmem:[#allocation2 + $0xda] sm:$0xff] }
 0x110   : > { %v6126_v10 = vpop.permute.xlu0 %716  ;;  %8565 = vst [vmem:[#allocation75_spill] sm:$0xff] %v6139_v1 }
 0x111   : > { %8560 = vst [vmem:[#allocation70_spill] sm:$0xff] %v6126_v10  ;;  %v6146_v10 = vld [vmem:[#allocation2 + $0x112] sm:$0xff] }
 0x112   : > { %8567 = vst [vmem:[#allocation77_spill] sm:$0xff] %v6143_v0 }
 0x113   : > { %1014 = vperm.xlu1 %5367, %v6124_v33   ;;  %8568 = vst [vmem:[#allocation78_spill] sm:$0xff] %v6146_v10 }
 0x114   : > { %1034 = vperm.xlu2 %5368, %v6128_v6  }
 0x115   : > { %v6134_v22 = vpop.permute.xlu1 %706 }
 0x116   : > { %8563 = vst [vmem:[#allocation73_spill] sm:$0xff] %v6134_v22  ;;  %v6136_v48 = vpop.permute.xlu2 %771  ;;  %1039 = vperm.xlu0 %5366, %v6131_v23   ;;  %v6158_v23 = vld [vmem:[#allocation2 + $0x12a] sm:$0xff] }
 0x117   : > { %8564 = vst [vmem:[#allocation74_spill] sm:$0xff] %v6136_v48  ;;  %v6154_v48 = vld [vmem:[#allocation2 + $0xfa] sm:$0xff] }
 0x118   : > { %v6141_v14 = vpop.permute.xlu0 %731  ;;  %8571 = vst [vmem:[#allocation81_spill] sm:$0xff] %v6154_v48 }
 0x119   : > { %8566 = vst [vmem:[#allocation76_spill] sm:$0xff] %v6141_v14  ;;  %v6161_v14 = vld [vmem:[#allocation2 + $0x13a] sm:$0xff] }
 0x11a   : > { %8573 = vst [vmem:[#allocation83_spill] sm:$0xff] %v6158_v23 }
 0x11b   : > { %1029 = vperm.xlu1 %5367, %v6139_v1   ;;  %8574 = vst [vmem:[#allocation84_spill] sm:$0xff] %v6161_v14 }
 0x11c   : > { %1049 = vperm.xlu2 %5368, %v6143_v0  }
 0x11d   : > { %v6149_v33 = vpop.permute.xlu1 %721 }
 0x11e   : > { %8569 = vst [vmem:[#allocation79_spill] sm:$0xff] %v6149_v33  ;;  %v6151_v6 = vpop.permute.xlu2 %786  ;;  %1054 = vperm.xlu0 %5366, %v6146_v10   ;;  %v6173_v10 = vld [vmem:[#allocation2 + $0x152] sm:$0xff] }
 0x11f   : > { %8570 = vst [vmem:[#allocation80_spill] sm:$0xff] %v6151_v6  ;;  %v6169_v6 = vld [vmem:[#allocation2 + $0x122] sm:$0xff] }
 0x120   : > { %v6156_v22 = vpop.permute.xlu0 %746  ;;  %8577 = vst [vmem:[#allocation87_spill] sm:$0xff] %v6169_v6 }
 0x121   : > { %8572 = vst [vmem:[#allocation82_spill] sm:$0xff] %v6156_v22  ;;  %v6176_v22 = vld [vmem:[#allocation2 + $0x15a] sm:$0xff] }
 0x122   : > { %8579 = vst [vmem:[#allocation89_spill] sm:$0xff] %v6176_v22 }
 0x123   : > { %1044 = vperm.xlu1 %5367, %v6154_v48  }
 0x124   : > { %1064 = vperm.xlu2 %5368, %v6158_v23  }
 0x125   : > { %v6164_v1 = vpop.permute.xlu1 %736 }
 0x126   : > { %8575 = vst [vmem:[#allocation85_spill] sm:$0xff] %v6164_v1  ;;  %v6166_v0 = vpop.permute.xlu2 %801  ;;  %1069 = vperm.xlu0 %5366, %v6161_v14   ;;  %v6188_v14 = vld [vmem:[#allocation2 + $0x172] sm:$0xff] }
 0x127   : > { %8576 = vst [vmem:[#allocation86_spill] sm:$0xff] %v6166_v0  ;;  %v6184_v0 = vld [vmem:[#allocation2 + $0x142] sm:$0xff] }
 0x128   : > { %v6171_v33 = vpop.permute.xlu0 %761  ;;  %8583 = vst [vmem:[#allocation93_spill] sm:$0xff] %v6188_v14 }
 0x129   : > { %8578 = vst [vmem:[#allocation88_spill] sm:$0xff] %v6171_v33 }
 0x12b   : > { %1059 = vperm.xlu1 %5367, %v6169_v6  }
 0x12c   : > { %1079 = vperm.xlu2 %5368, %v6173_v10  }
 0x12d   : > { %v6179_v48 = vpop.permute.xlu1 %751 }
 0x12e   : > { %8580 = vst [vmem:[#allocation90_spill] sm:$0xff] %v6179_v48  ;;  %v6181_v23 = vpop.permute.xlu2 %816  ;;  %1084 = vperm.xlu0 %5366, %v6176_v22   ;;  %v6197_v48 = vld [vmem:[#allocation2 + $0x16a] sm:$0xff] }
 0x12f   : > { %8581 = vst [vmem:[#allocation91_spill] sm:$0xff] %v6181_v23 }
 0x130   : > { %v6186_v1 = vpop.permute.xlu0 %776 }
 0x131   : > { %8582 = vst [vmem:[#allocation92_spill] sm:$0xff] %v6186_v1 }
 0x133   : > { %1074 = vperm.xlu1 %5367, %v6184_v0  }
 0x134   : > { %1094 = vperm.xlu2 %5368, %v6188_v14  }
 0x135   : > { %v6192_v33 = vpop.permute.xlu1 %766 }
 0x136   : > { %v6194_v6 = vpop.permute.xlu2 %831  ;;  %1197 = vperm.xlu0 %5366, %v5773_v16  }
 0x137   : > { %8584 = vst [vmem:[#allocation94_spill] sm:$0xff] %v6194_v6 }
 0x138   : > { %v6199_v23 = vpop.permute.xlu0 %791 }
 0x139   : > { %8585 = vst [vmem:[#allocation95_spill] sm:$0xff] %v6199_v23 }
 0x13b   : > { %1089 = vperm.xlu1 %5367, %v6197_v48  }
 0x13c   : > { %1207 = vperm.xlu2 %5368, %v5701_v4  }
 0x13d   : > { %v6203_v1 = vpop.permute.xlu1 %781 }
 0x13e   : > { %v6205_v22 = vpop.permute.xlu2 %944  ;;  %1212 = vperm.xlu0 %5366, %v5778_v18  }
 0x13f   : > { %8586 = vst [vmem:[#allocation96_spill] sm:$0xff] %v6205_v22 }
 0x140   : > { %v6208_v14 = vpop.permute.xlu0 %806 }
 0x141   : > { %8587 = vst [vmem:[#allocation97_spill] sm:$0xff] %v6208_v14 }
 0x143   : > { %1202 = vperm.xlu1 %5367, %v5794_v25  }
 0x144   : > { %1222 = vperm.xlu2 %5368, %v5812_v31  }
 0x145   : > { %v6212_v16 = vpop.permute.xlu1 %796 }
 0x146   : > { %v6214_v6 = vpop.permute.xlu2 %959  ;;  %1227 = vperm.xlu0 %5366, %v5797_v26  }
 0x147   : > { %8588 = vst [vmem:[#allocation98_spill] sm:$0xff] %v6214_v6  ;;  %v8746_v6 = vld [vmem:[#allocation17_spill] sm:$0xff] }
 0x148   : > { %v6217_v23 = vpop.permute.xlu0 %821 }
 0x149   : > { %8589 = vst [vmem:[#allocation99_spill] sm:$0xff] %v6217_v23  ;;  %v2459_v23 = vld [vmem:[#allocation2 + $0x7a] sm:$0xff] }
 0x14b   : > { %1217 = vperm.xlu1 %5367, %v5785_v21  }
 0x14c   : > { %1237 = vperm.xlu2 %5368, %v5827_v37  }
 0x14d   : > { %v6221_v4 = vpop.permute.xlu1 %811 }
 0x14e   : > { %8590 = vst [vmem:[#allocation100_spill] sm:$0xff] %v6221_v4  ;;  %v6223_v18 = vpop.permute.xlu2 %974  ;;  %1242 = vperm.xlu0 %5366, %v5814_v32  }
 0x14f   : > { %8591 = vst [vmem:[#allocation101_spill] sm:$0xff] %v6223_v18 }
 0x150   : > { %v6226_v25 = vpop.permute.xlu0 %836 }
 0x151   : > { %8592 = vst [vmem:[#allocation102_spill] sm:$0xff] %v6226_v25 }
 0x153   : > { %1232 = vperm.xlu1 %5367, %v5804_v29  }
 0x154   : > { %1252 = vperm.xlu2 %5368, %v5842_v43  }
 0x155   : > { %v6230_v26 = vpop.permute.xlu1 %826 }
 0x156   : > { %8593 = vst [vmem:[#allocation103_spill] sm:$0xff] %v6230_v26  ;;  %v6232_v31 = vpop.permute.xlu2 %989  ;;  %1257 = vperm.xlu0 %5366, %v5829_v38   ;;  %v353_v38 = vld [vmem:[%s5681_s17 + $0xf0] sm:$0xff] }
 0x157   : > { %8594 = vst [vmem:[#allocation104_spill] sm:$0xff] %v6232_v31 }
 0x158   : > { %v6235_v21 = vpop.permute.xlu0 %949  ;;  %386 = vst.msk [vmem:[#allocation2 + $0x181] sm:$0xff] %vm277_vm0, %v353_v38 }
 0x159   : > { %8595 = vst [vmem:[#allocation105_spill] sm:$0xff] %v6235_v21  ;;  %v1952_v21 = vld [vmem:[#allocation2 + $0xe0] sm:$0xff] }
 0x15b   : > { %1247 = vperm.xlu1 %5367, %v5819_v35  }
 0x15c   : > { %1267 = vperm.xlu2 %5368, %v5857_v49  }
 0x15d   : > { %v6239_v32 = vpop.permute.xlu1 %939 }
 0x15e   : > { %8596 = vst [vmem:[#allocation106_spill] sm:$0xff] %v6239_v32  ;;  %v6241_v37 = vpop.permute.xlu2 %1004  ;;  %1272 = vperm.xlu0 %5366, %v5844_v44   ;;  %v354_v32 = vld [vmem:[%s5681_s17 + $0xf8] sm:$0xff]  ;;  %s5066_s17 = sshll.u32 %s5063_s15, 4  ;;  %s5067_s17 = int_to_ptr.hbm [resolvable:$true] %s5066_s17 }
 0x15f   : > { %8597 = vst [vmem:[#allocation107_spill] sm:$0xff] %v6241_v37  ;;  %s5524_s21 = sshra.s32 %s5067_s17, 4  ;;  %s5525_s21 = int_to_ptr.hbm [resolvable:$true] %s5524_s21 }
 0x160   : > { %v6244_v29 = vpop.permute.xlu0 %964  ;;  %387 = vst.msk [vmem:[#allocation2 + $0x189] sm:$0xff] %vm277_vm0, %v354_v32  ;;  %vm4529_vm0 = vcmask 516096   ;;  %s5526_s22 = scalar_lea.hbm %s5525_s21, 4  ;;  %p5531_p0 = scmp.lt.s32.totalorder %s5525_s21, %s8460_s7 }
 0x161   : > { %8598 = vst [vmem:[#allocation108_spill] sm:$0xff] %v6244_v29  ;;  %p5527_p11 = scmp.ne.s32.totalorder %s5525_s21, %s5526_s22 }
 0x163   : > { %1262 = vperm.xlu1 %5367, %v5834_v41   ;;  %p5528_p12 = pnand %p5527_p11, %p5658_p5 }
 0x164   : > { %1282 = vperm.xlu2 %5368, %v5872_v53  }
 0x165   : > { %v6249_v43 = vpop.permute.xlu1 %954  ;;  %p5529_p13 = pneg %p5528_p12 }
 0x166   : > { %8599 = vst [vmem:[#allocation109_spill] sm:$0xff] %v6249_v43  ;;  %v6252_v35 = vpop.permute.xlu2 %1019  ;;  %1287 = vperm.xlu0 %5366, %v5859_v50   ;;  %v1939_v43 = vld [vmem:[#allocation2 + $0x48] sm:$0xff] }
 0x167   : > { %8600 = vst [vmem:[#allocation110_spill] sm:$0xff] %v6252_v35 }
 0x168   : > { %v6255_v49 = vpop.permute.xlu0 %979 }
 0x169   : > { %8601 = vst [vmem:[#allocation111_spill] sm:$0xff] %v6255_v49 }
 0x16b   : > { %1277 = vperm.xlu1 %5367, %v5849_v47  }
 0x16c   : > { %1297 = vperm.xlu2 %5368, %v5883_v56  }
 0x16d   : > { %v6261_v41 = vpop.permute.xlu1 %969 }
 0x16e   : > { %8602 = vst [vmem:[#allocation112_spill] sm:$0xff] %v6261_v41  ;;  %v6263_v44 = vpop.permute.xlu2 %1034  ;;  %1302 = vperm.xlu0 %5366, %v5876_v54   ;;  %v1937_v41 = vld [vmem:[#allocation2 + $0x30] sm:$0xff] }
 0x16f   : > { %8603 = vst [vmem:[#allocation113_spill] sm:$0xff] %v6263_v44  ;;  %v2453_v44 = vld [vmem:[#allocation2 + $0x32] sm:$0xff] }
 0x170   : > { %v6266_v53 = vpop.permute.xlu0 %994 }
 0x171   : > { %8604 = vst [vmem:[#allocation114_spill] sm:$0xff] %v6266_v53  ;;  %v8660_v53 = vld [vmem:[#allocation63_spill] sm:$0xff] }
 0x173   : > { %1292 = vperm.xlu1 %5367, %v5863_v52  }
 0x174   : > { %1312 = vperm.xlu2 %5368, %v5892_v59   ;;  %v6287_v59 = vld [vmem:[#allocation2 + $0x180] sm:$0xff] }
 0x175   : > { %v6270_v50 = vpop.permute.xlu1 %984 }
 0x176   : > { %8605 = vst [vmem:[#allocation115_spill] sm:$0xff] %v6270_v50  ;;  %v6272_v38 = vpop.permute.xlu2 %1049  ;;  %1317 = vperm.xlu0 %5366, %v5885_v57  }
 0x177   : > { %8606 = vst [vmem:[#allocation116_spill] sm:$0xff] %v6272_v38 }
 0x178   : > { %v6275_v47 = vpop.permute.xlu0 %1009 }
 0x17b   : > { %1307 = vperm.xlu1 %5367, %v5879_v55  }
 0x17c   : > { %1327 = vperm.xlu2 %5368, %v5901_v62  }
 0x17d   : > { %v6279_v56 = vpop.permute.xlu1 %999 }
 0x17e   : > { %v6281_v54 = vpop.permute.xlu2 %1064  ;;  %1332 = vperm.xlu0 %5366, %v5894_v60  }
 0x17f   : > { %8607 = vst [vmem:[#allocation117_spill] sm:$0xff] %v6281_v54  ;;  %v8657_v54 = vld [vmem:[#allocation53_spill] sm:$0xff] }
 0x180   : > { %v6284_v52 = vpop.permute.xlu0 %1024 }
 0x183   : > { %1322 = vperm.xlu1 %5367, %v5888_v58   ;;  %v6304_v58 = vld [vmem:[#allocation2 + $0x188] sm:$0xff] }
 0x184   : > { %1342 = vperm.xlu2 %5368, %v5904_v2  }
 0x185   : > { %v6290_v57 = vpop.permute.xlu1 %1014 }
 0x186   : > { %v6292_v32 = vpop.permute.xlu2 %1079  ;;  %1347 = vperm.xlu0 %5366, %v6287_v59  }
 0x187   : > { %8608 = vst [vmem:[#allocation118_spill] sm:$0xff] %v6292_v32 }
 0x188   : > { %v6295_v55 = vpop.permute.xlu0 %1039 }
 0x18b   : > { %1337 = vperm.xlu1 %5367, %v5897_v61  }
 0x18c   : > { %1455 = vperm.xlu2 %5368, %v5915_v7  }
 0x18d   : > { %v6299_v60 = vpop.permute.xlu1 %1029 }
 0x18e   : > { %8609 = vst [vmem:[#allocation119_spill] sm:$0xff] %v6299_v60  ;;  %v6301_v62 = vpop.permute.xlu2 %1094  ;;  %1460 = vperm.xlu0 %5366, %v5906_v3  }
 0x18f   : > { %8610 = vst [vmem:[#allocation120_spill] sm:$0xff] %v6301_v62 }
 0x190   : > { %v6306_v2 = vpop.permute.xlu0 %1054 }
 0x193   : > { %1352 = vperm.xlu1 %5367, %v6304_v58  }
 0x194   : > { %1470 = vperm.xlu2 %5368, %v5926_v11  }
 0x195   : > { %v6310_v32 = vpop.permute.xlu1 %1044 }
 0x196   : > { %8611 = vst [vmem:[#allocation121_spill] sm:$0xff] %v6310_v32  ;;  %v6312_v50 = vpop.permute.xlu2 %1207  ;;  %1475 = vperm.xlu0 %5366, %v5917_v8  }
 0x197   : > { %8612 = vst [vmem:[#allocation122_spill] sm:$0xff] %v6312_v50  ;;  %v8654_v50 = vld [vmem:[#allocation57_spill] sm:$0xff] }
 0x198   : > { %v6315_v61 = vpop.permute.xlu0 %1069 }
 0x199   : > { %8613 = vst [vmem:[#allocation123_spill] sm:$0xff] %v6315_v61 }
 0x19b   : > { %1465 = vperm.xlu1 %5367, %v5909_v5  }
 0x19c   : > { %1485 = vperm.xlu2 %5368, %v5939_v17  }
 0x19d   : > { %v6319_v3 = vpop.permute.xlu1 %1059 }
 0x19e   : > { %8614 = vst [vmem:[#allocation124_spill] sm:$0xff] %v6319_v3  ;;  %v6321_v7 = vpop.permute.xlu2 %1222  ;;  %1490 = vperm.xlu0 %5366, %v5928_v12   ;;  %v1955_v3 = vld [vmem:[#allocation2 + $0x108] sm:$0xff] }
 0x19f   : > { %8615 = vst [vmem:[#allocation125_spill] sm:$0xff] %v6321_v7 }
 0x1a0   : > { %v6324_v62 = vpop.permute.xlu0 %1084 }
 0x1a1   : > { %8616 = vst [vmem:[#allocation126_spill] sm:$0xff] %v6324_v62  ;;  %v8745_v62 = vld [vmem:[#allocation90_spill] sm:$0xff] }
 0x1a3   : > { %1480 = vperm.xlu1 %5367, %v5920_v9  }
 0x1a4   : > { %1500 = vperm.xlu2 %5368, %v5952_v24  }
 0x1a5   : > { %v6328_v11 = vpop.permute.xlu1 %1074 }
 0x1a6   : > { %8617 = vst [vmem:[#allocation127_spill] sm:$0xff] %v6328_v11  ;;  %v6330_v8 = vpop.permute.xlu2 %1237  ;;  %1505 = vperm.xlu0 %5366, %v5941_v19  }
 0x1a7   : > { %8618 = vst [vmem:[#allocation128_spill] sm:$0xff] %v6330_v8  ;;  %v8648_v8 = vld [vmem:[#allocation51_spill] sm:$0xff] }
 0x1a8   : > { %v6333_v5 = vpop.permute.xlu0 %1197 }
 0x1a9   : > { %8619 = vst [vmem:[#allocation129_spill] sm:$0xff] %v6333_v5  ;;  %v8645_v5 = vld [vmem:[#allocation42_spill] sm:$0xff] }
 0x1ab   : > { %1495 = vperm.xlu1 %5367, %v5931_v13  }
 0x1ac   : > { %1515 = vperm.xlu2 %5368, %v5965_v34  }
 0x1ad   : > { %v6337_v17 = vpop.permute.xlu1 %1089 }
 0x1ae   : > { %8620 = vst [vmem:[#allocation130_spill] sm:$0xff] %v6337_v17  ;;  %v6339_v12 = vpop.permute.xlu2 %1252  ;;  %1520 = vperm.xlu0 %5366, %v5954_v27   ;;  %v8651_v17 = vld [vmem:[#allocation47_spill] sm:$0xff] }
 0x1af   : > { %8621 = vst [vmem:[#allocation131_spill] sm:$0xff] %v6339_v12 }
 0x1b0   : > { %v6342_v9 = vpop.permute.xlu0 %1212 }
 0x1b1   : > { %8622 = vst [vmem:[#allocation132_spill] sm:$0xff] %v6342_v9 }
 0x1b3   : > { %1510 = vperm.xlu1 %5367, %v5944_v20  }
 0x1b4   : > { %1530 = vperm.xlu2 %5368, %v5980_v46  }
 0x1b5   : > { %v6346_v24 = vpop.permute.xlu1 %1202 }
 0x1b6   : > { %8623 = vst [vmem:[#allocation133_spill] sm:$0xff] %v6346_v24  ;;  %v6348_v19 = vpop.permute.xlu2 %1267  ;;  %1535 = vperm.xlu0 %5366, %v5969_v39   ;;  %v1451_v24 = vld [vmem:[#allocation2 + $0x189] sm:$0xff] }
 0x1b8   : > { %v6351_v13 = vpop.permute.xlu0 %1227 }
 0x1b9   : > { %8624 = vst [vmem:[#allocation134_spill] sm:$0xff] %v6351_v13 }
 0x1bb   : > { %1525 = vperm.xlu1 %5367, %v5957_v28  }
 0x1bc   : > { %1545 = vperm.xlu2 %5368, %v5995_v42  }
 0x1bd   : > { %v6355_v34 = vpop.permute.xlu1 %1217 }
 0x1be   : > { %8625 = vst [vmem:[#allocation135_spill] sm:$0xff] %v6355_v34  ;;  %v6357_v27 = vpop.permute.xlu2 %1282  ;;  %1550 = vperm.xlu0 %5366, %v5984_v51   ;;  %v8636_v34 = vld [vmem:[#allocation32_spill] sm:$0xff] }
 0x1c0   : > { %v6360_v20 = vpop.permute.xlu0 %1242 }
 0x1c1   : > { %8626 = vst [vmem:[#allocation136_spill] sm:$0xff] %v6360_v20  ;;  %v8630_v20 = vld [vmem:[#allocation27_spill] sm:$0xff] }
 0x1c3   : > { %1540 = vperm.xlu1 %5367, %v5972_v40  }
 0x1c4   : > { %1560 = vperm.xlu2 %5368, %v6010_v30   ;;  %v8632_v30 = vld [vmem:[#allocation23_spill] sm:$0xff] }
 0x1c5   : > { %v6364_v46 = vpop.permute.xlu1 %1232 }
 0x1c6   : > { %8627 = vst [vmem:[#allocation137_spill] sm:$0xff] %v6364_v46  ;;  %v6366_v39 = vpop.permute.xlu2 %1297  ;;  %1565 = vperm.xlu0 %5366, %v5999_v36   ;;  %v8633_v46 = vld [vmem:[#allocation36_spill] sm:$0xff] }
 0x1c8   : > { %v6369_v28 = vpop.permute.xlu0 %1257 }
 0x1cb   : > { %1555 = vperm.xlu1 %5367, %v5987_v63  }
 0x1cc   : > { %1575 = vperm.xlu2 %5368, %v6025_v15   ;;  %v1450_v15 = vld [vmem:[#allocation2 + $0x181] sm:$0xff] }
 0x1cd   : > { %v6373_v42 = vpop.permute.xlu1 %1247 }
 0x1ce   : > { %8628 = vst [vmem:[#allocation138_spill] sm:$0xff] %v6373_v42  ;;  %v6375_v51 = vpop.permute.xlu2 %1312  ;;  %1580 = vperm.xlu0 %5366, %v8630_v20   ;;  %v8638_v42 = vld [vmem:[#allocation28_spill] sm:$0xff] }
 0x1cf   : > { %8629 = vst [vmem:[#allocation139_spill] sm:$0xff] %v6375_v51 }
 0x1d0   : > { %v6378_v40 = vpop.permute.xlu0 %1272 }
 0x1d1   : > { %8631 = vst [vmem:[#allocation27_spill] sm:$0xff] %v6378_v40 }
 0x1d3   : > { %1570 = vperm.xlu1 %5367, %v8632_v30  }
 0x1d4   : > { %1590 = vperm.xlu2 %5368, %v8633_v46   ;;  %v8642_v46 = vld [vmem:[#allocation33_spill] sm:$0xff] }
 0x1d5   : > { %v6382_v13 = vpop.permute.xlu1 %1262 }
 0x1d6   : > { %8634 = vst [vmem:[#allocation23_spill] sm:$0xff] %v6382_v13  ;;  %v6384_v36 = vpop.permute.xlu2 %1327  ;;  %1595 = vperm.xlu0 %5366, %v8636_v34  }
 0x1d7   : > { %8635 = vst [vmem:[#allocation36_spill] sm:$0xff] %v6384_v36 }
 0x1d8   : > { %v6387_v63 = vpop.permute.xlu0 %1287 }
 0x1d9   : > { %8637 = vst [vmem:[#allocation32_spill] sm:$0xff] %v6387_v63 }
 0x1db   : > { %1585 = vperm.xlu1 %5367, %v8638_v42  }
 0x1dc   : > { %1605 = vperm.xlu2 %5368, %v1450_v15   ;;  %v8647_v15 = vld [vmem:[#allocation38_spill] sm:$0xff] }
 0x1dd   : > { %v6390_v20 = vpop.permute.xlu1 %1277 }
 0x1de   : > { %8639 = vst [vmem:[#allocation28_spill] sm:$0xff] %v6390_v20  ;;  %v6392_v9 = vpop.permute.xlu2 %1342  ;;  %1610 = vperm.xlu0 %5366, %v1451_v24   ;;  %v8743_v20 = vld [vmem:[#allocation15_spill] sm:$0xff] }
 0x1df   : > { %8640 = vst [vmem:[#allocation140_spill] sm:$0xff] %v6392_v9 }
 0x1e0   : > { %v6394_v30 = vpop.permute.xlu0 %1302 }
 0x1e1   : > { %8641 = vst [vmem:[#allocation141_spill] sm:$0xff] %v6394_v30  ;;  %v8742_v30 = vld [vmem:[#allocation14_spill] sm:$0xff] }
 0x1e3   : > { %1600 = vperm.xlu1 %5367, %v8642_v46  }
 0x1e4   : > { %1718 = vperm.xlu2 %5368, %v6064_v45   ;;  %v8653_v45 = vld [vmem:[#allocation43_spill] sm:$0xff] }
 0x1e5   : > { %v6398_v12 = vpop.permute.xlu1 %1292 }
 0x1e6   : > { %8643 = vst [vmem:[#allocation33_spill] sm:$0xff] %v6398_v12  ;;  %v6400_v34 = vpop.permute.xlu2 %1455  ;;  %1723 = vperm.xlu0 %5366, %v8645_v5  }
 0x1e7   : > { %8644 = vst [vmem:[#allocation142_spill] sm:$0xff] %v6400_v34 }
 0x1e8   : > { %v6403_v42 = vpop.permute.xlu0 %1317 }
 0x1e9   : > { %8646 = vst [vmem:[#allocation42_spill] sm:$0xff] %v6403_v42  ;;  %v1946_v42 = vld [vmem:[#allocation2 + $0x98] sm:$0xff] }
 0x1eb   : > { %1713 = vperm.xlu1 %5367, %v8647_v15  }
 0x1ec   : > { %1733 = vperm.xlu2 %5368, %v8648_v8   ;;  %v8659_v8 = vld [vmem:[#allocation48_spill] sm:$0xff] }
 0x1ed   : > { %v6407_v7 = vpop.permute.xlu1 %1307 }
 0x1ee   : > { %8649 = vst [vmem:[#allocation38_spill] sm:$0xff] %v6407_v7  ;;  %v6409_v24 = vpop.permute.xlu2 %1470  ;;  %1738 = vperm.xlu0 %5366, %v8651_v17  }
 0x1ef   : > { %8650 = vst [vmem:[#allocation51_spill] sm:$0xff] %v6409_v24 }
 0x1f0   : > { %v6412_v46 = vpop.permute.xlu0 %1332 }
 0x1f1   : > { %8652 = vst [vmem:[#allocation47_spill] sm:$0xff] %v6412_v46  ;;  %v8663_v46 = vld [vmem:[#allocation59_spill] sm:$0xff] }
 0x1f3   : > { %1728 = vperm.xlu1 %5367, %v8653_v45  }
 0x1f4   : > { %1748 = vperm.xlu2 %5368, %v8654_v50   ;;  %v8665_v50 = vld [vmem:[#allocation54_spill] sm:$0xff] }
 0x1f5   : > { %v6416_v34 = vpop.permute.xlu1 %1322 }
 0x1f6   : > { %8655 = vst [vmem:[#allocation43_spill] sm:$0xff] %v6416_v34  ;;  %v6418_v5 = vpop.permute.xlu2 %1485  ;;  %1753 = vperm.xlu0 %5366, %v8657_v54   ;;  %v8666_v34 = vld [vmem:[#allocation69_spill] sm:$0xff] }
 0x1f7   : > { %8656 = vst [vmem:[#allocation57_spill] sm:$0xff] %v6418_v5 }
 0x1f8   : > { %v6421_v15 = vpop.permute.xlu0 %1347 }
 0x1f9   : > { %8658 = vst [vmem:[#allocation53_spill] sm:$0xff] %v6421_v15  ;;  %v8668_v15 = vld [vmem:[#allocation65_spill] sm:$0xff] }
 0x1fb   : > { %1743 = vperm.xlu1 %5367, %v8659_v8  }
 0x1fc   : > { %1763 = vperm.xlu2 %5368, %v8660_v53   ;;  %v8670_v53 = vld [vmem:[#allocation60_spill] sm:$0xff] }
 0x1fd   : > { %v6425_v24 = vpop.permute.xlu1 %1337 }
 0x1fe   : > { %8661 = vst [vmem:[#allocation48_spill] sm:$0xff] %v6425_v24  ;;  %v6427_v17 = vpop.permute.xlu2 %1500  ;;  %1768 = vperm.xlu0 %5366, %v8663_v46   ;;  %v8671_v24 = vld [vmem:[#allocation75_spill] sm:$0xff] }
 0x1ff   : > { %8662 = vst [vmem:[#allocation63_spill] sm:$0xff] %v6427_v17 }
 0x200   : > { %v6430_v45 = vpop.permute.xlu0 %1460 }
 0x201   : > { %8664 = vst [vmem:[#allocation59_spill] sm:$0xff] %v6430_v45  ;;  %v8674_v45 = vld [vmem:[#allocation71_spill] sm:$0xff] }
 0x203   : > { %1758 = vperm.xlu1 %5367, %v8665_v50  }
 0x204   : > { %1778 = vperm.xlu2 %5368, %v8666_v34   ;;  %v8676_v34 = vld [vmem:[#allocation66_spill] sm:$0xff] }
 0x205   : > { %v6434_v5 = vpop.permute.xlu1 %1352 }
 0x206   : > { %8667 = vst [vmem:[#allocation54_spill] sm:$0xff] %v6434_v5  ;;  %v6436_v54 = vpop.permute.xlu2 %1515  ;;  %1783 = vperm.xlu0 %5366, %v8668_v15   ;;  %v8677_v5 = vld [vmem:[#allocation81_spill] sm:$0xff] }
 0x208   : > { %v6439_v8 = vpop.permute.xlu0 %1475 }
 0x209   : > { %8669 = vst [vmem:[#allocation69_spill] sm:$0xff] %v6439_v8  ;;  %v8680_v8 = vld [vmem:[#allocation77_spill] sm:$0xff] }
 0x20b   : > { %1773 = vperm.xlu1 %5367, %v8670_v53  }
 0x20c   : > { %1793 = vperm.xlu2 %5368, %v8671_v24   ;;  %v8682_v24 = vld [vmem:[#allocation72_spill] sm:$0xff] }
 0x20d   : > { %v6443_v17 = vpop.permute.xlu1 %1465 }
 0x20e   : > { %8672 = vst [vmem:[#allocation65_spill] sm:$0xff] %v6443_v17  ;;  %v6445_v46 = vpop.permute.xlu2 %1530  ;;  %1798 = vperm.xlu0 %5366, %v8674_v45   ;;  %v8683_v17 = vld [vmem:[#allocation87_spill] sm:$0xff] }
 0x20f   : > { %8673 = vst [vmem:[#allocation60_spill] sm:$0xff] %v6445_v46  ;;  %v8768_v46 = vld [vmem:[#allocation37_spill] sm:$0xff] }
 0x210   : > { %v6448_v50 = vpop.permute.xlu0 %1490 }
 0x211   : > { %8675 = vst [vmem:[#allocation75_spill] sm:$0xff] %v6448_v50  ;;  %v8686_v50 = vld [vmem:[#allocation83_spill] sm:$0xff] }
 0x213   : > { %1788 = vperm.xlu1 %5367, %v8676_v34  }
 0x214   : > { %1808 = vperm.xlu2 %5368, %v8677_v5   ;;  %v8688_v5 = vld [vmem:[#allocation78_spill] sm:$0xff] }
 0x215   : > { %v6452_v11 = vpop.permute.xlu1 %1480 }
 0x216   : > { %8678 = vst [vmem:[#allocation71_spill] sm:$0xff] %v6452_v11  ;;  %v6454_v15 = vpop.permute.xlu2 %1545  ;;  %1813 = vperm.xlu0 %5366, %v8680_v8  }
 0x217   : > { %8679 = vst [vmem:[#allocation66_spill] sm:$0xff] %v6454_v15 }
 0x218   : > { %v6457_v53 = vpop.permute.xlu0 %1505 }
 0x219   : > { %8681 = vst [vmem:[#allocation81_spill] sm:$0xff] %v6457_v53  ;;  %v8694_v53 = vld [vmem:[#allocation93_spill] sm:$0xff] }
 0x21b   : > { %1803 = vperm.xlu1 %5367, %v8682_v24  }
 0x21c   : > { %1823 = vperm.xlu2 %5368, %v8683_v17   ;;  %v8692_v17 = vld [vmem:[#allocation84_spill] sm:$0xff] }
 0x21d   : > { %v6461_v49 = vpop.permute.xlu1 %1495 }
 0x21e   : > { %8684 = vst [vmem:[#allocation77_spill] sm:$0xff] %v6461_v49  ;;  %v6463_v45 = vpop.permute.xlu2 %1560  ;;  %1828 = vperm.xlu0 %5366, %v8686_v50  }
 0x21f   : > { %8685 = vst [vmem:[#allocation72_spill] sm:$0xff] %v6463_v45 }
 0x220   : > { %v6466_v34 = vpop.permute.xlu0 %1520 }
 0x221   : > { %8687 = vst [vmem:[#allocation87_spill] sm:$0xff] %v6466_v34 }
 0x223   : > { %1818 = vperm.xlu1 %5367, %v8688_v5  }
 0x224   : > { %1838 = vperm.xlu2 %5368, %v6184_v0   ;;  %v1709_v0 = vld [vmem:[#allocation2 + $0x18a] sm:$0xff] }
 0x225   : > { %v6470_v11 = vpop.permute.xlu1 %1510 }
 0x226   : > { %8689 = vst [vmem:[#allocation83_spill] sm:$0xff] %v6470_v11  ;;  %v6472_v8 = vpop.permute.xlu2 %1575  ;;  %1843 = vperm.xlu0 %5366, %v6173_v10   ;;  %v8696_v11 = vld [vmem:[#allocation89_spill] sm:$0xff] }
 0x227   : > { %8690 = vst [vmem:[#allocation78_spill] sm:$0xff] %v6472_v8  ;;  %v1943_v8 = vld [vmem:[#allocation2 + $0x78] sm:$0xff] }
 0x228   : > { %v6475_v24 = vpop.permute.xlu0 %1535 }
 0x229   : > { %8691 = vst [vmem:[#allocation143_spill] sm:$0xff] %v6475_v24 }
 0x22b   : > { %1833 = vperm.xlu1 %5367, %v8692_v17   ;;  %v1708_v17 = vld [vmem:[#allocation2 + $0x182] sm:$0xff] }
 0x22c   : > { %1853 = vperm.xlu2 %5368, %v6197_v48  }
 0x22d   : > { %v6479_v49 = vpop.permute.xlu1 %1525 }
 0x22e   : > { %v6481_v50 = vpop.permute.xlu2 %1590  ;;  %1858 = vperm.xlu0 %5366, %v8694_v53  }
 0x22f   : > { %8693 = vst [vmem:[#allocation84_spill] sm:$0xff] %v6481_v50  ;;  %v1940_v50 = vld [vmem:[#allocation2 + $0x50] sm:$0xff] }
 0x230   : > { %v6484_v5 = vpop.permute.xlu0 %1550 }
 0x231   : > { %8695 = vst [vmem:[#allocation93_spill] sm:$0xff] %v6484_v5  ;;  %v1949_v5 = vld [vmem:[#allocation2 + $0xc0] sm:$0xff] }
 0x233   : > { %1848 = vperm.xlu1 %5367, %v8696_v11   ;;  %v1938_v11 = vld [vmem:[#allocation2 + $0x38] sm:$0xff] }
 0x234   : > { %1868 = vperm.xlu2 %5368, %v1709_v0   ;;  %v1942_v0 = vld [vmem:[#allocation2 + $0x68] sm:$0xff] }
 0x235   : > { %v6487_v10 = vpop.permute.xlu1 %1540 }
 0x236   : > { %v6489_v7 = vpop.permute.xlu2 %1605  ;;  %1972 = vperm.xlu0 %5366, %v1937_v41  }
 0x237   : > { %8697 = vst [vmem:[#allocation89_spill] sm:$0xff] %v6489_v7 }
 0x238   : > { %v6491_v48 = vpop.permute.xlu0 %1565 }
 0x239   : > { %8698 = vst [vmem:[#allocation144_spill] sm:$0xff] %v6491_v48 }
 0x23b   : > { %1863 = vperm.xlu1 %5367, %v1708_v17   ;;  %v1941_v17 = vld [vmem:[#allocation2 + $0x60] sm:$0xff] }
 0x23c   : > { %1982 = vperm.xlu2 %5368, %v1939_v43   ;;  %v1945_v43 = vld [vmem:[#allocation2 + $0x90] sm:$0xff] }
 0x23d   : > { %v6493_v53 = vpop.permute.xlu1 %1555 }
 0x23e   : > { %v6495_v29 = vpop.permute.xlu2 %1718  ;;  %1987 = vperm.xlu0 %5366, %v1940_v50  }
 0x23f   : > { %8699 = vst [vmem:[#allocation145_spill] sm:$0xff] %v6495_v29 }
 0x240   : > { %v6497_v38 = vpop.permute.xlu0 %1580 }
 0x241   : > { %8700 = vst [vmem:[#allocation146_spill] sm:$0xff] %v6497_v38 }
 0x243   : > { %1977 = vperm.xlu1 %5367, %v1938_v11   ;;  %v1944_v11 = vld [vmem:[#allocation2 + $0x80] sm:$0xff] }
 0x244   : > { %1997 = vperm.xlu2 %5368, %v1942_v0   ;;  %v1948_v0 = vld [vmem:[#allocation2 + $0xb0] sm:$0xff] }
 0x245   : > { %v6499_v41 = vpop.permute.xlu1 %1570 }
 0x246   : > { %8701 = vst [vmem:[#allocation147_spill] sm:$0xff] %v6499_v41  ;;  %v6501_v7 = vpop.permute.xlu2 %1733  ;;  %2002 = vperm.xlu0 %5366, %v1943_v8  }
 0x247   : > { %8702 = vst [vmem:[#allocation148_spill] sm:$0xff] %v6501_v7 }
 0x248   : > { %v6503_v48 = vpop.permute.xlu0 %1595 }
 0x249   : > { %8703 = vst [vmem:[#allocation149_spill] sm:$0xff] %v6503_v48 }
 0x24b   : > { %1992 = vperm.xlu1 %5367, %v1941_v17   ;;  %v1947_v17 = vld [vmem:[#allocation2 + $0xa8] sm:$0xff] }
 0x24c   : > { %2012 = vperm.xlu2 %5368, %v1945_v43   ;;  %v1951_v43 = vld [vmem:[#allocation2 + $0xd8] sm:$0xff] }
 0x24d   : > { %v6505_v50 = vpop.permute.xlu1 %1585 }
 0x24e   : > { %8704 = vst [vmem:[#allocation150_spill] sm:$0xff] %v6505_v50  ;;  %v6507_v29 = vpop.permute.xlu2 %1748  ;;  %2017 = vperm.xlu0 %5366, %v1946_v42   ;;  %v8750_v50 = vld [vmem:[#allocation21_spill] sm:$0xff] }
 0x24f   : > { %8705 = vst [vmem:[#allocation151_spill] sm:$0xff] %v6507_v29 }
 0x250   : > { %v6509_v38 = vpop.permute.xlu0 %1610 }
 0x251   : > { %8706 = vst [vmem:[#allocation152_spill] sm:$0xff] %v6509_v38 }
 0x253   : > { %2007 = vperm.xlu1 %5367, %v1944_v11   ;;  %v1950_v11 = vld [vmem:[#allocation2 + $0xc8] sm:$0xff] }
 0x254   : > { %2027 = vperm.xlu2 %5368, %v1948_v0   ;;  %v1954_v0 = vld [vmem:[#allocation2 + $0xf8] sm:$0xff] }
 0x255   : > { %v6511_v8 = vpop.permute.xlu1 %1600 }
 0x256   : > { %8707 = vst [vmem:[#allocation153_spill] sm:$0xff] %v6511_v8  ;;  %v6513_v7 = vpop.permute.xlu2 %1763  ;;  %2032 = vperm.xlu0 %5366, %v1949_v5  }
 0x257   : > { %8708 = vst [vmem:[#allocation154_spill] sm:$0xff] %v6513_v7 }
 0x258   : > { %v6515_v48 = vpop.permute.xlu0 %1723 }
 0x259   : > { %8709 = vst [vmem:[#allocation155_spill] sm:$0xff] %v6515_v48 }
 0x25b   : > { %2022 = vperm.xlu1 %5367, %v1947_v17   ;;  %v1953_v17 = vld [vmem:[#allocation2 + $0xf0] sm:$0xff] }
 0x25c   : > { %2042 = vperm.xlu2 %5368, %v1951_v43   ;;  %v1957_v43 = vld [vmem:[#allocation2 + $0x120] sm:$0xff] }
 0x25d   : > { %v6517_v42 = vpop.permute.xlu1 %1713 }
 0x25e   : > { %8710 = vst [vmem:[#allocation156_spill] sm:$0xff] %v6517_v42  ;;  %v6519_v29 = vpop.permute.xlu2 %1778  ;;  %2047 = vperm.xlu0 %5366, %v1952_v21   ;;  %v1958_v42 = vld [vmem:[#allocation2 + $0x128] sm:$0xff] }
 0x25f   : > { %8711 = vst [vmem:[#allocation157_spill] sm:$0xff] %v6519_v29 }
 0x260   : > { %v6521_v38 = vpop.permute.xlu0 %1738 }
 0x261   : > { %8712 = vst [vmem:[#allocation158_spill] sm:$0xff] %v6521_v38 }
 0x263   : > { %2037 = vperm.xlu1 %5367, %v1950_v11   ;;  %v1956_v11 = vld [vmem:[#allocation2 + $0x110] sm:$0xff] }
 0x264   : > { %2057 = vperm.xlu2 %5368, %v1954_v0   ;;  %v1960_v0 = vld [vmem:[#allocation2 + $0x140] sm:$0xff] }
 0x265   : > { %v6523_v5 = vpop.permute.xlu1 %1728 }
 0x266   : > { %8713 = vst [vmem:[#allocation159_spill] sm:$0xff] %v6523_v5  ;;  %v6525_v7 = vpop.permute.xlu2 %1793  ;;  %2062 = vperm.xlu0 %5366, %v1955_v3   ;;  %v1961_v5 = vld [vmem:[#allocation2 + $0x150] sm:$0xff] }
 0x267   : > { %8714 = vst [vmem:[#allocation160_spill] sm:$0xff] %v6525_v7  ;;  %v8738_v7 = vld [vmem:[#allocation9_spill] sm:$0xff] }
 0x268   : > { %v6527_v48 = vpop.permute.xlu0 %1753 }
 0x269   : > { %8715 = vst [vmem:[#allocation161_spill] sm:$0xff] %v6527_v48 }
 0x26b   : > { %2052 = vperm.xlu1 %5367, %v1953_v17   ;;  %v1959_v17 = vld [vmem:[#allocation2 + $0x138] sm:$0xff] }
 0x26c   : > { %2072 = vperm.xlu2 %5368, %v1957_v43   ;;  %v1963_v43 = vld [vmem:[#allocation2 + $0x168] sm:$0xff] }
 0x26d   : > { %v6529_v21 = vpop.permute.xlu1 %1743 }
 0x26e   : > { %8716 = vst [vmem:[#allocation162_spill] sm:$0xff] %v6529_v21  ;;  %v6531_v12 = vpop.permute.xlu2 %1808  ;;  %2077 = vperm.xlu0 %5366, %v1958_v42   ;;  %v1964_v21 = vld [vmem:[#allocation2 + $0x170] sm:$0xff] }
 0x26f   : > { %8717 = vst [vmem:[#allocation163_spill] sm:$0xff] %v6531_v12 }
 0x270   : > { %v6533_v38 = vpop.permute.xlu0 %1768 }
 0x271   : > { %8718 = vst [vmem:[#allocation164_spill] sm:$0xff] %v6533_v38 }
 0x273   : > { %2067 = vperm.xlu1 %5367, %v1956_v11   ;;  %v1962_v11 = vld [vmem:[#allocation2 + $0x158] sm:$0xff] }
 0x274   : > { %2087 = vperm.xlu2 %5368, %v1960_v0   ;;  %v1967_v0 = vld [vmem:[#allocation2 + $0x198] sm:$0xff] }
 0x275   : > { %v6535_v3 = vpop.permute.xlu1 %1758 }
 0x276   : > { %8719 = vst [vmem:[#allocation165_spill] sm:$0xff] %v6535_v3  ;;  %v6537_v31 = vpop.permute.xlu2 %1823  ;;  %2092 = vperm.xlu0 %5366, %v1961_v5  }
 0x277   : > { %8720 = vst [vmem:[#allocation166_spill] sm:$0xff] %v6537_v31  ;;  %v2197_v31 = vld [vmem:[#allocation2 + $0x49] sm:$0xff] }
 0x278   : > { %v6539_v48 = vpop.permute.xlu0 %1783 }
 0x27b   : > { %2082 = vperm.xlu1 %5367, %v1959_v17  }
 0x27c   : > { %2102 = vperm.xlu2 %5368, %v1963_v43   ;;  %v2195_v43 = vld [vmem:[#allocation2 + $0x31] sm:$0xff] }
 0x27d   : > { %v6541_v42 = vpop.permute.xlu1 %1773 }
 0x27e   : > { %v6543_v12 = vpop.permute.xlu2 %1838  ;;  %2107 = vperm.xlu0 %5366, %v1964_v21  }
 0x27f   : > { %8721 = vst [vmem:[#allocation167_spill] sm:$0xff] %v6543_v12 }
 0x280   : > { %v6545_v38 = vpop.permute.xlu0 %1798 }
 0x283   : > { %2097 = vperm.xlu1 %5367, %v1962_v11   ;;  %v1968_v11 = vld [vmem:[#allocation2 + $0x1a0] sm:$0xff] }
 0x284   : > { %2117 = vperm.xlu2 %5368, %v6304_v58   ;;  %v2201_v58 = vld [vmem:[#allocation2 + $0x79] sm:$0xff] }
 0x285   : > { %v6548_v5 = vpop.permute.xlu1 %1788 }
 0x286   : > { %8722 = vst [vmem:[#allocation168_spill] sm:$0xff] %v6548_v5  ;;  %v6550_v3 = vpop.permute.xlu2 %1853  ;;  %2122 = vperm.xlu0 %5366, %v1967_v0   ;;  %v8759_v5 = vld [vmem:[#allocation30_spill] sm:$0xff] }
 0x287   : > { %8723 = vst [vmem:[#allocation169_spill] sm:$0xff] %v6550_v3 }
 0x288   : > { %v6552_v17 = vpop.permute.xlu0 %1813 }
 0x28b   : > { %2112 = vperm.xlu1 %5367, %v6287_v59   ;;  %v2199_v59 = vld [vmem:[#allocation2 + $0x61] sm:$0xff] }
 0x28c   : > { %2230 = vperm.xlu2 %5368, %v2195_v43   ;;  %v2457_v43 = vld [vmem:[#allocation2 + $0x62] sm:$0xff] }
 0x28d   : > { %v6555_v21 = vpop.permute.xlu1 %1803 }
 0x28e   : > { %8724 = vst [vmem:[#allocation170_spill] sm:$0xff] %v6555_v21  ;;  %v6557_v12 = vpop.permute.xlu2 %1868  ;;  %2240 = vperm.xlu0 %5366, %v2197_v31  }
 0x28f   : > { %8725 = vst [vmem:[#allocation171_spill] sm:$0xff] %v6557_v12 }
 0x290   : > { %v6559_v25 = vpop.permute.xlu0 %1828 }
 0x291   : > { %8726 = vst [vmem:[#allocation172_spill] sm:$0xff] %v6559_v25 }
 0x293   : > { %2127 = vperm.xlu1 %5367, %v1968_v11   ;;  %v2455_v11 = vld [vmem:[#allocation2 + $0x4a] sm:$0xff] }
 0x294   : > { %2260 = vperm.xlu2 %5368, %v2201_v58   ;;  %v2198_v58 = vld [vmem:[#allocation2 + $0x51] sm:$0xff] }
 0x295   : > { %v6561_v0 = vpop.permute.xlu1 %1818 }
 0x296   : > { %8727 = vst [vmem:[#allocation173_spill] sm:$0xff] %v6561_v0  ;;  %v6563_v3 = vpop.permute.xlu2 %1982  ;;  %2488 = vperm.xlu0 %5366, %v2453_v44   ;;  %v2200_v0 = vld [vmem:[#allocation2 + $0x69] sm:$0xff]  ;;  %v6576_v44 = vld [vmem:[%s8454_s1] ss:$0 sm:$0xff] }
 0x297   : > { %8728 = vst [vmem:[#allocation174_spill] sm:$0xff] %v6563_v3  ;;  %v2196_v3 = vld [vmem:[#allocation2 + $0x39] sm:$0xff]  ;;  %v6613_v9 = vmul.f32 %v6576_v44, %v8742_v30  ;;  %v596_v32 = vmul.f32 %v6576_v44, %v8743_v20  ;;  %v585_v30 = vmul.f32 %v6576_v44, %v8746_v6  ;;  %v8748_v20 = vld [vmem:[#allocation20_spill] sm:$0xff]  ;;  %v6638_v34 = vmul.f32 %v6576_v44, %v8750_v50  ;;  %v8754_v50 = vld [vmem:[#allocation25_spill] sm:$0xff] }
 0x298   : > { %v6565_v18 = vpop.permute.xlu0 %1843  ;;  %v6632_v29 = vmul.f32 %v6576_v44, %v8748_v20  ;;  %v8752_v6 = vld [vmem:[#allocation22_spill] sm:$0xff]  ;;  %v6704_v37 = vmul.f32 %v6576_v44, %v8768_v46  ;;  %v8773_v46 = vld [vmem:[#allocation44_spill] sm:$0xff] }
 0x299   : > { %8729 = vst [vmem:[#allocation175_spill] sm:$0xff] %v6565_v18  ;;  %v8747_v18 = vld [vmem:[#allocation18_spill] sm:$0xff]  ;;  %v6646_v35 = vmul.f32 %v6576_v44, %v8752_v6  ;;  %v6723_v22 = vmul.f32 %v6576_v44, %v8773_v46 }
 0x29a   : > { %v599_v15 = vmul.f32 %v6576_v44, %v8747_v18  ;;  %v6653_v20 = vld [vmem:[%s8454_s1 + $0x3] ss:$0 sm:$0xff] }
 0x29b   : > { %2250 = vperm.xlu1 %5367, %v2199_v59   ;;  %v8756_v6 = vld [vmem:[#allocation26_spill] sm:$0xff]  ;;  %8774 = vst [vmem:[#allocation15_spill] sm:$0xff] %v6723_v22 }
 0x29c   : > { %2508 = vperm.xlu2 %5368, %v2457_v43   ;;  %v6667_v13 = vmul.f32 %v6576_v44, %v8756_v6  ;;  %v6684_v6 = vld [vmem:[%s8454_s1 + $0x4] ss:$0 sm:$0xff] }
 0x29d   : > { %v6567_v31 = vpop.permute.xlu1 %1833  ;;  %v8779_v46 = vld [vmem:[#allocation46_spill] sm:$0xff] }
 0x29e   : > { %8730 = vst [vmem:[#allocation176_spill] sm:$0xff] %v6567_v31  ;;  %v6569_v12 = vpop.permute.xlu2 %1997  ;;  %2518 = vperm.xlu0 %5366, %v2459_v23   ;;  %v8736_v23 = vld [vmem:[#allocation8_spill] sm:$0xff]  ;;  %v6741_v22 = vmul.f32 %v6576_v44, %v8779_v46  ;;  %v8788_v46 = vld [vmem:[#allocation62_spill] sm:$0xff] }
 0x29f   : > { %8731 = vst [vmem:[#allocation177_spill] sm:$0xff] %v6569_v12  ;;  %v6586_v31 = vmul.f32 %v6576_v44, %v8736_v23  ;;  %v8740_v23 = vld [vmem:[#allocation12_spill] sm:$0xff] }
 0x2a0   : > { %v6571_v45 = vpop.permute.xlu0 %1858  ;;  %v6607_v8 = vmul.f32 %v6576_v44, %v8740_v23  ;;  %v6624_v23 = vld [vmem:[%s8454_s1 + $0x2] ss:$0 sm:$0xff] }
 0x2a1   : > { %8732 = vst [vmem:[#allocation178_spill] sm:$0xff] %v6571_v45  ;;  %v6595_v45 = vld [vmem:[%s8454_s1 + $0x1] ss:$0 sm:$0xff]  ;;  %v1112_v18 = vmul.f32 %v6624_v23, %v6275_v47  ;;  %v8757_v47 = vld [vmem:[#allocation40_spill] sm:$0xff] }
 0x2a2   : > { %v840_v60 = vmul.f32 %v6595_v45, %v8757_v47  ;;  %v8762_v47 = vld [vmem:[#allocation34_spill] sm:$0xff] }
 0x2a3   : > { %2498 = vperm.xlu1 %5367, %v2455_v11   ;;  %v8737_v11 = vld [vmem:[#allocation10_spill] sm:$0xff] }
 0x2a4   : > { %2245 = vperm.xlu2 %5368, %v2198_v58   ;;  %v6590_v58 = vmul.f32 %v6576_v44, %v8737_v11  ;;  %v8741_v11 = vld [vmem:[#allocation13_spill] sm:$0xff] }
 0x2a5   : > { %v6578_v59 = vpop.permute.xlu1 %1848  ;;  %v582_v24 = vmul.f32 %v6576_v44, %v8741_v11  ;;  %v2456_v11 = vld [vmem:[#allocation2 + $0x52] sm:$0xff] }
 0x2a6   : > { %8733 = vst [vmem:[#allocation179_spill] sm:$0xff] %v6578_v59  ;;  %v6580_v43 = vpop.permute.xlu2 %2012  ;;  %2255 = vperm.xlu0 %5366, %v2200_v0   ;;  %v2454_v59 = vld [vmem:[#allocation2 + $0x3a] sm:$0xff]  ;;  %v6599_v0 = vmul.f32 %v6576_v44, %v8738_v7  ;;  %v8744_v7 = vld [vmem:[#allocation16_spill] sm:$0xff] }
 0x2a7   : > { %8734 = vst [vmem:[#allocation180_spill] sm:$0xff] %v6580_v43  ;;  %v8739_v43 = vld [vmem:[#allocation11_spill] sm:$0xff]  ;;  %v588_v21 = vmul.f32 %v6576_v44, %v8744_v7  ;;  %v6719_v4 = vadd.f32 %v840_v60, %v582_v24  ;;  %v2203_v60 = vld [vmem:[#allocation2 + $0x91] sm:$0xff] }
 0x2a8   : > { %v6582_v12 = vpop.permute.xlu0 %1972  ;;  %v8749_v7 = vld [vmem:[#allocation19_spill] sm:$0xff]  ;;  %v8777_v24 = vld [vmem:[#allocation49_spill] sm:$0xff] }
 0x2a9   : > { %8735 = vst [vmem:[#allocation181_spill] sm:$0xff] %v6582_v12  ;;  %v6603_v12 = vmul.f32 %v6576_v44, %v8739_v43  ;;  %v854_v43 = vmul.f32 %v6595_v45, %v8745_v62  ;;  %v591_v62 = vmul.f32 %v6576_v44, %v8749_v7  ;;  %v6659_v7 = vmul.f32 %v6576_v44, %v8754_v50  ;;  %v8761_v50 = vld [vmem:[#allocation45_spill] sm:$0xff] }
 0x2aa   : > { %v843_v61 = vmul.f32 %v6595_v45, %v8761_v50  ;;  %8772 = vst [vmem:[#allocation14_spill] sm:$0xff] %v6719_v4  ;;  %v6737_v4 = vmul.f32 %v6576_v44, %v8777_v24  ;;  %v8787_v24 = vld [vmem:[#allocation58_spill] sm:$0xff] }
 0x2ab   : > { %2235 = vperm.xlu1 %5367, %v2196_v3   ;;  %v8751_v3 = vld [vmem:[#allocation24_spill] sm:$0xff]  ;;  %v886_v14 = vadd.f32 %v854_v43, %v596_v32  ;;  %v8766_v32 = vld [vmem:[#allocation50_spill] sm:$0xff] }
 0x2ac   : > { %2493 = vperm.xlu2 %5368, %v2454_v59   ;;  %v6642_v63 = vmul.f32 %v6576_v44, %v8751_v3  ;;  %v8755_v3 = vld [vmem:[#allocation29_spill] sm:$0xff]  ;;  %v2202_v43 = vld [vmem:[#allocation2 + $0x81] sm:$0xff]  ;;  %8778 = vst [vmem:[#allocation90_spill] sm:$0xff] %v6737_v4  ;;  %v8793_v4 = vld [vmem:[#allocation70_spill] sm:$0xff] }
 0x2ad   : > { %v6655_v59 = vpop.permute.xlu1 %1863  ;;  %v6663_v36 = vmul.f32 %v6576_v44, %v8755_v3  ;;  %v1370_v3 = vmul.f32 %v6653_v20, %v6348_v19  ;;  %v846_v19 = vmul.f32 %v6595_v45, %v8766_v32  ;;  %v1144_v40 = vadd.f32 %v1112_v18, %v886_v14  ;;  %v2460_v32 = vld [vmem:[#allocation2 + $0x82] sm:$0xff]  ;;  %v8775_v14 = vld [vmem:[#allocation41_spill] sm:$0xff] }
 0x2ae   : > { %8753 = vst [vmem:[#allocation8_spill] sm:$0xff] %v6655_v59  ;;  %v6671_v26 = vpop.permute.xlu2 %2027  ;;  %2503 = vperm.xlu0 %5366, %v2456_v11   ;;  %v6675_v59 = vmul.f32 %v6576_v44, %v8759_v5  ;;  %v8763_v11 = vld [vmem:[#allocation31_spill] sm:$0xff]  ;;  %v6727_v18 = vmul.f32 %v6576_v44, %v8775_v14 }
 0x2af   : > { %8758 = vst [vmem:[#allocation10_spill] sm:$0xff] %v6671_v26  ;;  %v6688_v26 = vmul.f32 %v6576_v44, %v8762_v47  ;;  %v6692_v5 = vmul.f32 %v6576_v44, %v8763_v11  ;;  %v8769_v47 = vld [vmem:[#allocation56_spill] sm:$0xff]  ;;  %v1628_v11 = vmul.f32 %v6684_v6, %v6479_v49  ;;  %v6729_v49 = vadd.f32 %v843_v61, %v585_v30 }
 0x2b0   : > { %8760 = vst [vmem:[#allocation9_spill] sm:$0xff] %v6675_v59  ;;  %v8764_v59 = vld [vmem:[#allocation35_spill] sm:$0xff]  ;;  %v6700_v25 = vpop.permute.xlu0 %1987  ;;  %v849_v41 = vmul.f32 %v6595_v45, %v8769_v47  ;;  %v857_v47 = vmul.f32 %v6595_v45, %v6192_v33  ;;  %v1402_v51 = vadd.f32 %v1370_v3, %v1144_v40  ;;  %v6743_v14 = vadd.f32 %v846_v19, %v588_v21  ;;  %v8781_v61 = vld [vmem:[#allocation52_spill] sm:$0xff]  ;;  %v6760_v21 = vld [vmem:[%s8454_s1 + $0x6] ss:$0 sm:$0xff] }
 0x2b1   : > { %v6696_v50 = vmul.f32 %v6576_v44, %v8764_v59  ;;  %8767 = vst [vmem:[#allocation12_spill] sm:$0xff] %v6700_v25  ;;  %v6713_v59 = vld [vmem:[%s8454_s1 + $0x5] ss:$0 sm:$0xff]  ;;  %v6747_v30 = vmul.f32 %v6576_v44, %v8781_v61  ;;  %v8783_v33 = vld [vmem:[#allocation55_spill] sm:$0xff]  ;;  %v1115_v3 = vmul.f32 %v6624_v23, %v6284_v52  ;;  %v852_v61 = vmul.f32 %v6595_v45, %v8788_v46 }
 0x2b2   : > { %8776 = vst [vmem:[#allocation16_spill] sm:$0xff] %v6729_v49  ;;  %v6751_v40 = vmul.f32 %v6576_v44, %v8783_v33  ;;  %v8789_v33 = vld [vmem:[#allocation67_spill] sm:$0xff]  ;;  %v8791_v49 = vld [vmem:[#allocation68_spill] sm:$0xff] }
 0x2b3   : > { %8765 = vst [vmem:[#allocation11_spill] sm:$0xff] %v6696_v50  ;;  %v8770_v50 = vld [vmem:[#allocation39_spill] sm:$0xff]  ;;  %2265 = vperm.xlu1 %5367, %v2202_v43   ;;  %v1660_v43 = vadd.f32 %v1628_v11, %v1402_v51  ;;  %v889_v11 = vadd.f32 %v857_v47, %v599_v15  ;;  %v8796_v47 = vld [vmem:[#allocation76_spill] sm:$0xff] }
 0x2b4   : > { %v6717_v25 = vmul.f32 %v6576_v44, %v8770_v50  ;;  %v1886_v50 = vmul.f32 %v6713_v59, %v6539_v48  ;;  %8780 = vst [vmem:[#allocation17_spill] sm:$0xff] %v6743_v14  ;;  %2523 = vperm.xlu2 %5368, %v2460_v32   ;;  %v6753_v48 = vadd.f32 %v849_v41, %v591_v62  ;;  %v8790_v62 = vld [vmem:[#allocation64_spill] sm:$0xff] }
 0x2b5   : > { %8782 = vst [vmem:[#allocation18_spill] sm:$0xff] %v6747_v30  ;;  %v6762_v19 = vpop.permute.xlu1 %1977  ;;  %v841_v32 = vmul.f32 %v6595_v45, %v8787_v24  ;;  %v842_v41 = vmul.f32 %v6595_v45, %v8789_v33  ;;  %v844_v52 = vmul.f32 %v6595_v45, %v8790_v62  ;;  %v855_v24 = vmul.f32 %v6595_v45, %v8791_v49  ;;  %v8794_v30 = vld [vmem:[#allocation74_spill] sm:$0xff] }
 0x2b6   : > { %8771 = vst [vmem:[#allocation13_spill] sm:$0xff] %v6717_v25  ;;  %v2043_v51 = vpop.permute.xlu2 %2042  ;;  %2270 = vperm.xlu0 %5366, %v2203_v60   ;;  %v1918_v14 = vadd.f32 %v1886_v50, %v1660_v43  ;;  %v847_v33 = vmul.f32 %v6595_v45, %v8793_v4  ;;  %v858_v62 = vmul.f32 %v6595_v45, %v8794_v30  ;;  %v2458_v60 = vld [vmem:[#allocation2 + $0x6a] sm:$0xff] }
 0x2b7   : > { %8784 = vst [vmem:[#allocation20_spill] sm:$0xff] %v6751_v40  ;;  %v8792_v40 = vld [vmem:[#allocation73_spill] sm:$0xff]  ;;  %v1147_v50 = vadd.f32 %v1115_v3, %v889_v11  ;;  %v1631_v43 = vmul.f32 %v6684_v6, %v6487_v10  ;;  %v6796_v4 = vadd.f32 %v841_v32, %v6590_v58  ;;  %v884_v30 = vadd.f32 %v852_v61, %v6646_v35  ;;  %v8801_v11 = vld [vmem:[#allocation82_spill] sm:$0xff] }
 0x2b8   : > { %8785 = vst [vmem:[#allocation19_spill] sm:$0xff] %v6753_v48  ;;  %v1373_v48 = vmul.f32 %v6653_v20, %v6357_v27  ;;  %v845_v46 = vmul.f32 %v6595_v45, %v8792_v40  ;;  %v6783_v15 = vpop.permute.xlu0 %2002  ;;  %v850_v27 = vmul.f32 %v6595_v45, %v8796_v47  ;;  %v8797_v40 = vld [vmem:[#allocation61_spill] sm:$0xff]  ;;  %v6802_v3 = vadd.f32 %v842_v41, %v6613_v9  ;;  %v8798_v9 = vld [vmem:[#allocation79_spill] sm:$0xff]  ;;  %v8802_v47 = vld [vmem:[#allocation86_spill] sm:$0xff] }
 0x2b9   : > { %8786 = vst [vmem:[#allocation21_spill] sm:$0xff] %v6762_v19  ;;  %v2145_v19 = vmul.f32 %v6760_v21, %v2043_v51  ;;  %v2461_v51 = vld [vmem:[#allocation2 + $0x92] sm:$0xff]  ;;  %v6793_v25 = vmul.f32 %v6576_v44, %v8797_v40  ;;  %v6805_v10 = vadd.f32 %v844_v52, %v6586_v31  ;;  %v2463_v44 = vld [vmem:[#allocation2 + $0xaa] sm:$0xff]  ;;  %v6810_v58 = vadd.f32 %v855_v24, %v6667_v13 }
 0x2ba   : > { %8795 = vst [vmem:[#allocation24_spill] sm:$0xff] %v6783_v15  ;;  %v860_v15 = vmul.f32 %v6595_v45, %v6203_v1  ;;  %v6813_v35 = vadd.f32 %v845_v46, %v6599_v0  ;;  %v6816_v1 = vadd.f32 %v847_v33, %v6632_v29  ;;  %v848_v32 = vmul.f32 %v6595_v45, %v8798_v9  ;;  %v8799_v0 = vld [vmem:[#allocation80_spill] sm:$0xff]  ;;  %v8800_v41 = vld [vmem:[#allocation85_spill] sm:$0xff] }
 0x2bb   : > { %v6789_v49 = vadd.f32 %v2145_v19, %v1918_v14  ;;  %v1405_v14 = vadd.f32 %v1373_v48, %v1147_v50  ;;  %v1889_v19 = vmul.f32 %v6713_v59, %v6545_v38  ;;  %2513 = vperm.xlu1 %5367, %v2458_v60   ;;  %v6821_v31 = vadd.f32 %v858_v62, %v6692_v5  ;;  %v8803_v50 = vld [vmem:[#allocation88_spill] sm:$0xff] }
 0x2bc   : > { %2528 = vperm.xlu2 %5368, %v2461_v51   ;;  %v6824_v38 = vadd.f32 %v850_v27, %v6642_v63  ;;  %v1118_v13 = vmul.f32 %v6624_v23, %v6295_v55  ;;  %v861_v29 = vmul.f32 %v6595_v45, %v8799_v0  ;;  %v851_v52 = vmul.f32 %v6595_v45, %v8800_v41  ;;  %v2205_v51 = vld [vmem:[#allocation2 + $0xa9] sm:$0xff]  ;;  %v2462_v41 = vld [vmem:[#allocation2 + $0x9a] sm:$0xff] }
 0x2bd   : > { %v1663_v48 = vadd.f32 %v1631_v43, %v1405_v14  ;;  %v6828_v61 = vpop.permute.xlu1 %1992  ;;  %v853_v24 = vmul.f32 %v6595_v45, %v8801_v11  ;;  %v892_v5 = vadd.f32 %v860_v15, %v6638_v34  ;;  %v1110_v63 = vmul.f32 %v6624_v23, %v6279_v56  ;;  %v8804_v15 = vld [vmem:[#allocation91_spill] sm:$0xff]  ;;  %v8807_v11 = vld [vmem:[#allocation94_spill] sm:$0xff] }
 0x2be   : > { %v2058_v46 = vpop.permute.xlu2 %2057  ;;  %2538 = vperm.xlu0 %5366, %v2463_v44   ;;  %v1376_v55 = vmul.f32 %v6653_v20, %v6366_v39  ;;  %v6843_v60 = vadd.f32 %v848_v32, %v6603_v12  ;;  %v864_v27 = vmul.f32 %v6595_v45, %v8802_v47  ;;  %v856_v34 = vmul.f32 %v6595_v45, %v8803_v50  ;;  %v8810_v47 = vld [vmem:[#allocation96_spill] sm:$0xff] }
 0x2bf   : > { %v1921_v33 = vadd.f32 %v1889_v19, %v1663_v48  ;;  %v2148_v62 = vmul.f32 %v6760_v21, %v2058_v46  ;;  %v867_v43 = vmul.f32 %v6595_v45, %v8804_v15  ;;  %v1150_v40 = vadd.f32 %v1118_v13, %v892_v5  ;;  %v2206_v19 = vld [vmem:[#allocation2 + $0xb1] sm:$0xff]  ;;  %v8811_v50 = vld [vmem:[#allocation100_spill] sm:$0xff] }
 0x2c0   : > { %v6851_v56 = vpop.permute.xlu0 %2017  ;;  %v1368_v39 = vmul.f32 %v6653_v20, %v6369_v28  ;;  %v1634_v12 = vmul.f32 %v6684_v6, %v6493_v53  ;;  %v6860_v44 = vadd.f32 %v861_v29, %v6704_v37  ;;  %v6863_v9 = vadd.f32 %v851_v52, %v6607_v8 }
 0x2c1   : > { %v6857_v14 = vadd.f32 %v2148_v62, %v1921_v33  ;;  %v885_v32 = vadd.f32 %v853_v24, %v6663_v36  ;;  %v863_v13 = vmul.f32 %v6595_v45, %v6212_v16  ;;  %v1142_v48 = vadd.f32 %v1110_v63, %v884_v30  ;;  %v8806_v30 = vld [vmem:[#allocation92_spill] sm:$0xff]  ;;  %v8808_v24 = vld [vmem:[#allocation95_spill] sm:$0xff] }
 0x2c2   : > { %v1408_v0 = vadd.f32 %v1376_v55, %v1150_v40  ;;  %v1626_v28 = vmul.f32 %v6684_v6, %v6436_v54  ;;  %v1892_v53 = vmul.f32 %v6713_v59, %v6552_v17  ;;  %v6873_v37 = vadd.f32 %v864_v27, %v6727_v18  ;;  %v8809_v63 = vld [vmem:[#allocation139_spill] sm:$0xff] }
 0x2c3   : > { %8805 = vst [vmem:[#allocation22_spill] sm:$0xff] %v6857_v14  ;;  %2280 = vperm.xlu1 %5367, %v2205_v51   ;;  %v6876_v8 = vadd.f32 %v856_v34, %v6688_v26  ;;  %v6879_v36 = vadd.f32 %v867_v43, %v6741_v22  ;;  %v1121_v16 = vmul.f32 %v6624_v23, %v6306_v2  ;;  %v8813_v40 = vld [vmem:[#allocation147_spill] sm:$0xff] }
 0x2c4   : > { %2285 = vperm.xlu2 %5368, %v2206_v19   ;;  %v859_v54 = vmul.f32 %v6595_v45, %v8806_v30  ;;  %v1400_v29 = vadd.f32 %v1368_v39, %v1142_v48  ;;  %v1666_v17 = vadd.f32 %v1634_v12, %v1408_v0  ;;  %v1884_v52 = vmul.f32 %v6713_v59, %v6541_v42  ;;  %v2207_v48 = vld [vmem:[#allocation2 + $0xc1] sm:$0xff]  ;;  %v8815_v0 = vld [vmem:[#allocation13_spill] sm:$0xff] }
 0x2c5   : > { %v6887_v18 = vpop.permute.xlu1 %2007  ;;  %v870_v26 = vmul.f32 %v6595_v45, %v8807_v11  ;;  %v862_v22 = vmul.f32 %v6595_v45, %v8808_v24  ;;  %v895_v5 = vadd.f32 %v863_v13, %v6659_v7  ;;  %v1113_v2 = vmul.f32 %v6624_v23, %v6290_v57  ;;  %v8812_v7 = vld [vmem:[#allocation27_spill] sm:$0xff]  ;;  %v8818_v11 = vld [vmem:[#allocation60_spill] sm:$0xff] }
 0x2c6   : > { %v2073_v46 = vpop.permute.xlu2 %2072  ;;  %2533 = vperm.xlu0 %5366, %v2462_v41   ;;  %v1379_v55 = vmul.f32 %v6653_v20, %v8809_v63  ;;  %v1658_v33 = vadd.f32 %v1626_v28, %v1400_v29  ;;  %v1924_v42 = vadd.f32 %v1892_v53, %v1666_v17  ;;  %v1099_v27 = vmul.f32 %v6624_v23, %v8810_v47  ;;  %v2204_v57 = vld [vmem:[#allocation2 + $0x99] sm:$0xff]  ;;  %v8819_v24 = vld [vmem:[#allocation172_spill] sm:$0xff] }
 0x2c7   : > { %v2151_v62 = vmul.f32 %v6760_v21, %v2073_v46  ;;  %v866_v34 = vmul.f32 %v6595_v45, %v8811_v50  ;;  %v1153_v15 = vadd.f32 %v1121_v16, %v895_v5  ;;  %v1371_v43 = vmul.f32 %v6653_v20, %v8812_v7  ;;  %v8816_v53 = vld [vmem:[#allocation18_spill] sm:$0xff]  ;;  %v8817_v16 = vld [vmem:[#allocation107_spill] sm:$0xff]  ;;  %v8824_v7 = vld [vmem:[#allocation168_spill] sm:$0xff] }
 0x2c8   : > { %v2033_v51 = vpop.permute.xlu0 %2032  ;;  %v1637_v39 = vmul.f32 %v6684_v6, %v8813_v40  ;;  %v1916_v12 = vadd.f32 %v1884_v52, %v1658_v33  ;;  %v6911_v28 = vadd.f32 %v859_v54, %v8815_v0  ;;  %v6914_v41 = vadd.f32 %v870_v26, %v8816_v53  ;;  %v2209_v54 = vld [vmem:[#allocation2 + $0xd9] sm:$0xff] }
 0x2c9   : > { %v6907_v19 = vadd.f32 %v2151_v62, %v1924_v42  ;;  %v2143_v13 = vmul.f32 %v6760_v21, %v2033_v51  ;;  %v1111_v30 = vmul.f32 %v6624_v23, %v8817_v16  ;;  %v1145_v29 = vadd.f32 %v1113_v2, %v6810_v58  ;;  %v8820_v63 = vld [vmem:[#allocation15_spill] sm:$0xff]  ;;  %v8821_v42 = vld [vmem:[#allocation97_spill] sm:$0xff] }
 0x2ca   : > { %v1411_v17 = vadd.f32 %v1379_v55, %v1153_v15  ;;  %v1629_v52 = vmul.f32 %v6684_v6, %v8818_v11  ;;  %v1895_v5 = vmul.f32 %v6713_v59, %v8819_v24  ;;  %v6926_v33 = vadd.f32 %v862_v22, %v8820_v63  ;;  %v8822_v2 = vld [vmem:[#allocation123_spill] sm:$0xff]  ;;  %v8823_v62 = vld [vmem:[#allocation9_spill] sm:$0xff] }
 0x2cb   : > { %8814 = vst [vmem:[#allocation25_spill] sm:$0xff] %v6907_v19  ;;  %2275 = vperm.xlu1 %5367, %v2204_v57   ;;  %v6923_v46 = vadd.f32 %v2143_v13, %v1916_v12  ;;  %v6929_v26 = vadd.f32 %v1099_v27, %v6796_v4  ;;  %v865_v58 = vmul.f32 %v6595_v45, %v8821_v42  ;;  %v8825_v22 = vld [vmem:[#allocation103_spill] sm:$0xff]  ;;  %v2464_v42 = vld [vmem:[#allocation2 + $0xb2] sm:$0xff] }
 0x2cc   : > { %v1124_v55 = vmul.f32 %v6624_v23, %v8822_v2  ;;  %2290 = vperm.xlu2 %5368, %v2207_v48   ;;  %v898_v47 = vadd.f32 %v866_v34, %v8823_v62  ;;  %v1403_v50 = vadd.f32 %v1371_v43, %v1145_v29  ;;  %v1669_v15 = vadd.f32 %v1637_v39, %v1411_v17  ;;  %v8826_v40 = vld [vmem:[#allocation119_spill] sm:$0xff]  ;;  %v8828_v34 = vld [vmem:[#allocation36_spill] sm:$0xff]  ;;  %v8829_v29 = vld [vmem:[#allocation110_spill] sm:$0xff] }
 0x2cd   : > { %v1887_v57 = vmul.f32 %v6713_v59, %v8824_v7  ;;  %v6938_v51 = vpop.permute.xlu1 %2022  ;;  %v869_v4 = vmul.f32 %v6595_v45, %v8825_v22  ;;  %v1143_v27 = vadd.f32 %v1111_v30, %v885_v32  ;;  %v1116_v12 = vmul.f32 %v6624_v23, %v8826_v40  ;;  %v8827_v13 = vld [vmem:[#allocation23_spill] sm:$0xff]  ;;  %v8830_v32 = vld [vmem:[#allocation32_spill] sm:$0xff]  ;;  %v8835_v40 = vld [vmem:[#allocation157_spill] sm:$0xff] }
 0x2ce   : > { %v1369_v0 = vmul.f32 %v6653_v20, %v8827_v13  ;;  %v2088_v48 = vpop.permute.xlu2 %2087  ;;  %2300 = vperm.xlu0 %5366, %v2209_v54   ;;  %v1382_v43 = vmul.f32 %v6653_v20, %v8828_v34  ;;  %v1661_v39 = vadd.f32 %v1629_v52, %v1403_v50  ;;  %v1927_v53 = vadd.f32 %v1895_v5, %v1669_v15  ;;  %v8831_v24 = vld [vmem:[#allocation87_spill] sm:$0xff]  ;;  %v8832_v54 = vld [vmem:[#allocation150_spill] sm:$0xff] }
 0x2cf   : > { %v2154_v16 = vmul.f32 %v6760_v21, %v2088_v48  ;;  %v1114_v17 = vmul.f32 %v6624_v23, %v8829_v29  ;;  %v1156_v11 = vadd.f32 %v1124_v55, %v898_v47  ;;  %v1374_v30 = vmul.f32 %v6653_v20, %v8830_v32  ;;  %v2467_v50 = vld [vmem:[#allocation2 + $0xda] sm:$0xff] }
 0x2d0   : > { %v1627_v63 = vmul.f32 %v6684_v6, %v8831_v24  ;;  %v2048_v2 = vpop.permute.xlu0 %2047  ;;  %v1640_v62 = vmul.f32 %v6684_v6, %v8832_v54  ;;  %v1919_v7 = vadd.f32 %v1887_v57, %v1661_v39  ;;  %v8834_v15 = vld [vmem:[#allocation90_spill] sm:$0xff]  ;;  %v1148_v55 = vadd.f32 %v1116_v12, %v6821_v31  ;;  %v8837_v32 = vld [vmem:[#allocation175_spill] sm:$0xff] }
 0x2d1   : > { %v6957_v52 = vadd.f32 %v2154_v16, %v1927_v53  ;;  %v2146_v5 = vmul.f32 %v6760_v21, %v2048_v2  ;;  %v6961_v22 = vadd.f32 %v865_v58, %v8834_v15  ;;  %v1401_v47 = vadd.f32 %v1369_v0, %v1143_v27  ;;  %v8836_v34 = vld [vmem:[#allocation66_spill] sm:$0xff]  ;;  %v2208_v53 = vld [vmem:[#allocation2 + $0xc9] sm:$0xff]  ;;  %v8840_v24 = vld [vmem:[#allocation11_spill] sm:$0xff] }
 0x2d2   : > { %v1885_v13 = vmul.f32 %v6713_v59, %v8835_v40  ;;  %v1414_v48 = vadd.f32 %v1382_v43, %v1156_v11  ;;  %v1632_v29 = vmul.f32 %v6684_v6, %v8836_v34  ;;  %v1898_v57 = vmul.f32 %v6713_v59, %v8837_v32  ;;  %v8839_v16 = vld [vmem:[#allocation98_spill] sm:$0xff]  ;;  %v8844_v40 = vld [vmem:[#allocation28_spill] sm:$0xff] }
 0x2d3   : > { %8833 = vst [vmem:[#allocation29_spill] sm:$0xff] %v6957_v52  ;;  %2543 = vperm.xlu1 %5367, %v2464_v42   ;;  %v6970_v39 = vadd.f32 %v2146_v5, %v1919_v7  ;;  %v1102_v58 = vmul.f32 %v6624_v23, %v8839_v16  ;;  %v901_v31 = vadd.f32 %v869_v4, %v8840_v24  ;;  %v8841_v27 = vld [vmem:[#allocation126_spill] sm:$0xff]  ;;  %v8843_v5 = vld [vmem:[#allocation121_spill] sm:$0xff] }
 0x2d4   : > { %v1127_v12 = vmul.f32 %v6624_v23, %v8841_v27  ;;  %v1659_v0 = vadd.f32 %v1627_v63, %v1401_v47  ;;  %2558 = vperm.xlu2 %5368, %v2467_v50   ;;  %v1146_v43 = vadd.f32 %v1114_v17, %v6876_v8  ;;  %v1406_v11 = vadd.f32 %v1374_v30, %v1148_v55  ;;  %v8842_v54 = vld [vmem:[#allocation170_spill] sm:$0xff]  ;;  %v8845_v63 = vld [vmem:[#allocation140_spill] sm:$0xff]  ;;  %v8846_v55 = vld [vmem:[#allocation141_spill] sm:$0xff] }
 0x2d5   : > { %8838 = vst [vmem:[#allocation26_spill] sm:$0xff] %v6970_v39  ;;  %v1672_v2 = vadd.f32 %v1640_v62, %v1414_v48  ;;  %v1890_v42 = vmul.f32 %v6713_v59, %v8842_v54  ;;  %v2038_v7 = vpop.permute.xlu1 %2037  ;;  %v1119_v15 = vmul.f32 %v6624_v23, %v8843_v5  ;;  %v1372_v34 = vmul.f32 %v6653_v20, %v8844_v40  ;;  %v8847_v48 = vld [vmem:[#allocation143_spill] sm:$0xff]  ;;  %v8848_v54 = vld [vmem:[#allocation153_spill] sm:$0xff] }
 0x2d6   : > { %v1917_v4 = vadd.f32 %v1885_v13, %v1659_v0  ;;  %v2144_v32 = vmul.f32 %v6760_v21, %v2038_v7  ;;  %v2103_v16 = vpop.permute.xlu2 %2102  ;;  %2295 = vperm.xlu0 %5366, %v2208_v53   ;;  %v1385_v8 = vmul.f32 %v6653_v20, %v8845_v63  ;;  %v1664_v17 = vadd.f32 %v1632_v29, %v1406_v11  ;;  %v2465_v13 = vld [vmem:[#allocation2 + $0xc2] sm:$0xff]  ;;  %v8852_v63 = vld [vmem:[#allocation178_spill] sm:$0xff] }
 0x2d7   : > { %v1930_v30 = vadd.f32 %v1898_v57, %v1672_v2  ;;  %v2157_v62 = vmul.f32 %v6760_v21, %v2103_v16  ;;  %v1159_v50 = vadd.f32 %v1127_v12, %v901_v31  ;;  %v1377_v47 = vmul.f32 %v6653_v20, %v8846_v55  ;;  %v2466_v57 = vld [vmem:[#allocation2 + $0xca] sm:$0xff] }
 0x2d8   : > { %v1630_v24 = vmul.f32 %v6684_v6, %v8847_v48  ;;  %v6992_v27 = vadd.f32 %v2144_v32, %v1917_v4  ;;  %v2063_v0 = vpop.permute.xlu0 %2062  ;;  %v1643_v53 = vmul.f32 %v6684_v6, %v8848_v54  ;;  %v1922_v7 = vadd.f32 %v1890_v42, %v1664_v17  ;;  %v8850_v2 = vld [vmem:[#allocation160_spill] sm:$0xff] }
 0x2d9   : > { %v6996_v5 = vadd.f32 %v2157_v62, %v1930_v30  ;;  %v2149_v29 = vmul.f32 %v6760_v21, %v2063_v0  ;;  %v7000_v31 = vadd.f32 %v1102_v58, %v6805_v10  ;;  %v1151_v12 = vadd.f32 %v1119_v15, %v6860_v44  ;;  %v8851_v32 = vld [vmem:[#allocation72_spill] sm:$0xff]  ;;  %v8853_v62 = vld [vmem:[#allocation99_spill] sm:$0xff]  ;;  %v8854_v58 = vld [vmem:[#allocation101_spill] sm:$0xff] }
 0x2da   : > { %v1404_v11 = vadd.f32 %v1372_v34, %v1146_v43  ;;  %v1888_v40 = vmul.f32 %v6713_v59, %v8850_v2  ;;  %v1417_v4 = vadd.f32 %v1385_v8, %v1159_v50  ;;  %v1635_v16 = vmul.f32 %v6684_v6, %v8851_v32  ;;  %v2468_v30 = vld [vmem:[#allocation2 + $0xe2] sm:$0xff]  ;;  %v8855_v43 = vld [vmem:[#allocation113_spill] sm:$0xff]  ;;  %v8856_v8 = vld [vmem:[#allocation102_spill] sm:$0xff] }
 0x2db   : > { %8849 = vst [vmem:[#allocation40_spill] sm:$0xff] %v6996_v5  ;;  %v1901_v42 = vmul.f32 %v6713_v59, %v8852_v63  ;;  %2548 = vperm.xlu1 %5367, %v2465_v13   ;;  %v7009_v17 = vadd.f32 %v2149_v29, %v1922_v7  ;;  %v868_v10 = vmul.f32 %v6595_v45, %v8853_v62  ;;  %v8857_v13 = vld [vmem:[#allocation173_spill] sm:$0xff]  ;;  %v8858_v7 = vld [vmem:[#allocation104_spill] sm:$0xff] }
 0x2dc   : > { %v1105_v44 = vmul.f32 %v6624_v23, %v8854_v58  ;;  %v1117_v15 = vmul.f32 %v6624_v23, %v8855_v43  ;;  %v1662_v34 = vadd.f32 %v1630_v24, %v1404_v11  ;;  %2553 = vperm.xlu2 %5368, %v2466_v57   ;;  %v871_v50 = vmul.f32 %v6595_v45, %v8856_v8  ;;  %v8859_v2 = vld [vmem:[#allocation33_spill] sm:$0xff]  ;;  %v8860_v57 = vld [vmem:[#allocation124_spill] sm:$0xff] }
 0x2dd   : > { %v1409_v55 = vadd.f32 %v1377_v47, %v1151_v12  ;;  %v1675_v48 = vadd.f32 %v1643_v53, %v1417_v4  ;;  %v1893_v0 = vmul.f32 %v6713_v59, %v8857_v13  ;;  %v2053_v54 = vpop.permute.xlu1 %2052  ;;  %v1108_v29 = vmul.f32 %v6624_v23, %v8858_v7  ;;  %v8861_v11 = vld [vmem:[#allocation105_spill] sm:$0xff] }
 0x2de   : > { %v1375_v32 = vmul.f32 %v6653_v20, %v8859_v2  ;;  %v1920_v63 = vadd.f32 %v1888_v40, %v1662_v34  ;;  %v2147_v62 = vmul.f32 %v6760_v21, %v2053_v54  ;;  %v2118_v24 = vpop.permute.xlu2 %2117  ;;  %2563 = vperm.xlu0 %5366, %v2468_v30   ;;  %v1122_v45 = vmul.f32 %v6624_v23, %v8860_v57  ;;  %v8862_v43 = vld [vmem:[#allocation93_spill] sm:$0xff]  ;;  %v2210_v34 = vld [vmem:[#allocation2 + $0xe1] sm:$0xff]  ;;  %v8864_v30 = vld [vmem:[#allocation42_spill] sm:$0xff] }
 0x2df   : > { %v1667_v47 = vadd.f32 %v1635_v16, %v1409_v55  ;;  %v1933_v53 = vadd.f32 %v1901_v42, %v1675_v48  ;;  %v2160_v12 = vmul.f32 %v6760_v21, %v2118_v24  ;;  %v1100_v4 = vmul.f32 %v6624_v23, %v8861_v11  ;;  %v2213_v55 = vld [vmem:[#allocation2 + $0x109] sm:$0xff]  ;;  %v8868_v57 = vld [vmem:[#allocation78_spill] sm:$0xff] }
 0x2e0   : > { %v1149_v58 = vadd.f32 %v1117_v15, %v6911_v28  ;;  %v1633_v8 = vmul.f32 %v6684_v6, %v8862_v43  ;;  %v7034_v40 = vadd.f32 %v2147_v62, %v1920_v63  ;;  %v2078_v13 = vpop.permute.xlu0 %2077  ;;  %v1380_v54 = vmul.f32 %v6653_v20, %v8864_v30  ;;  %v8866_v48 = vld [vmem:[#allocation20_spill] sm:$0xff]  ;;  %v8867_v63 = vld [vmem:[#allocation163_spill] sm:$0xff]  ;;  %v8904_v5 = vld [vmem:[#allocation129_spill] sm:$0xff] }
 0x2e1   : > { %v1925_v7 = vadd.f32 %v1893_v0, %v1667_v47  ;;  %v7038_v16 = vadd.f32 %v2160_v12, %v1933_v53  ;;  %v2152_v42 = vmul.f32 %v6760_v21, %v2078_v13  ;;  %v7042_v2 = vadd.f32 %v868_v10, %v8866_v48  ;;  %v2469_v10 = vld [vmem:[#allocation2 + $0xf2] sm:$0xff]  ;;  %v8873_v43 = vld [vmem:[#allocation176_spill] sm:$0xff] }
 0x2e2   : > { %8863 = vst [vmem:[#allocation30_spill] sm:$0xff] %v7034_v40  ;;  %v7045_v28 = vadd.f32 %v1105_v44, %v6816_v1  ;;  %v1407_v15 = vadd.f32 %v1375_v32, %v1149_v58  ;;  %v1891_v62 = vmul.f32 %v6713_v59, %v8867_v63  ;;  %v7050_v24 = vadd.f32 %v871_v50, %v6793_v25  ;;  %v8870_v44 = vld [vmem:[#allocation116_spill] sm:$0xff]  ;;  %v8871_v50 = vld [vmem:[#allocation106_spill] sm:$0xff] }
 0x2e3   : > { %8865 = vst [vmem:[#allocation45_spill] sm:$0xff] %v7038_v16  ;;  %v1154_v0 = vadd.f32 %v1122_v45, %v6873_v37  ;;  %v1638_v47 = vmul.f32 %v6684_v6, %v8868_v57  ;;  %2305 = vperm.xlu1 %5367, %v2210_v34   ;;  %v7055_v53 = vadd.f32 %v2152_v42, %v1925_v7  ;;  %v8872_v45 = vld [vmem:[#allocation108_spill] sm:$0xff]  ;;  %v8879_v57 = vld [vmem:[#allocation114_spill] sm:$0xff] }
 0x2e4   : > { %v7058_v12 = vadd.f32 %v1108_v29, %v6824_v38  ;;  %v7061_v1 = vadd.f32 %v1100_v4, %v6802_v3  ;;  %v1120_v32 = vmul.f32 %v6624_v23, %v8870_v44  ;;  %v1665_v25 = vadd.f32 %v1633_v8, %v1407_v15  ;;  %2320 = vperm.xlu2 %5368, %v2213_v55   ;;  %v8874_v29 = vld [vmem:[#allocation109_spill] sm:$0xff]  ;;  %v8875_v4 = vld [vmem:[#allocation38_spill] sm:$0xff]  ;;  %v8876_v42 = vld [vmem:[#allocation112_spill] sm:$0xff] }
 0x2e5   : > { %8869 = vst [vmem:[#allocation34_spill] sm:$0xff] %v7055_v53  ;;  %v1098_v37 = vmul.f32 %v6624_v23, %v8871_v50  ;;  %v1103_v11 = vmul.f32 %v6624_v23, %v8872_v45  ;;  %v1412_v58 = vadd.f32 %v1380_v54, %v1154_v0  ;;  %v1896_v34 = vmul.f32 %v6713_v59, %v8873_v43  ;;  %v2068_v38 = vpop.permute.xlu1 %2067  ;;  %v8877_v54 = vld [vmem:[#allocation111_spill] sm:$0xff]  ;;  %v8887_v16 = vld [vmem:[#allocation84_spill] sm:$0xff] }
 0x2e6   : > { %v1101_v3 = vmul.f32 %v6624_v23, %v8874_v29  ;;  %v1378_v13 = vmul.f32 %v6653_v20, %v8875_v4  ;;  %v1923_v30 = vadd.f32 %v1891_v62, %v1665_v25  ;;  %v2150_v8 = vmul.f32 %v6760_v21, %v2068_v38  ;;  %v7076_v7 = vpop.permute.xlu2 %2230  ;;  %2568 = vperm.xlu0 %5366, %v2469_v10   ;;  %v8878_v15 = vld [vmem:[#allocation127_spill] sm:$0xff]  ;;  %v8880_v25 = vld [vmem:[#allocation144_spill] sm:$0xff]  ;;  %v2211_v10 = vld [vmem:[#allocation2 + $0xf1] sm:$0xff] }
 0x2e7   : > { %v1104_v55 = vmul.f32 %v6624_v23, %v8876_v42  ;;  %v1106_v48 = vmul.f32 %v6624_v23, %v8877_v54  ;;  %v1125_v63 = vmul.f32 %v6624_v23, %v8878_v15  ;;  %v1670_v0 = vadd.f32 %v1638_v47, %v1412_v58  ;;  %v8882_v38 = vld [vmem:[#allocation14_spill] sm:$0xff]  ;;  %v8883_v4 = vld [vmem:[#allocation47_spill] sm:$0xff]  ;;  %v8884_v15 = vld [vmem:[#allocation16_spill] sm:$0xff] }
 0x2e8   : > { %v1109_v44 = vmul.f32 %v6624_v23, %v8879_v57  ;;  %v1152_v62 = vadd.f32 %v1120_v32, %v6926_v33  ;;  %v1636_v50 = vmul.f32 %v6684_v6, %v8880_v25  ;;  %v7089_v45 = vadd.f32 %v2150_v8, %v1923_v30  ;;  %v2093_v43 = vpop.permute.xlu0 %2092  ;;  %v2212_v58 = vld [vmem:[#allocation2 + $0xf9] sm:$0xff]  ;;  %v8886_v25 = vld [vmem:[#allocation117_spill] sm:$0xff] }
 0x2e9   : > { %v7092_v29 = vadd.f32 %v1098_v37, %v8882_v38  ;;  %v1383_v42 = vmul.f32 %v6653_v20, %v8883_v4  ;;  %v1928_v54 = vadd.f32 %v1896_v34, %v1670_v0  ;;  %v2155_v47 = vmul.f32 %v6760_v21, %v2093_v43  ;;  %v8885_v30 = vld [vmem:[#allocation166_spill] sm:$0xff] }
 0x2ea   : > { %8881 = vst [vmem:[#allocation31_spill] sm:$0xff] %v7089_v45  ;;  %v7098_v57 = vadd.f32 %v1101_v3, %v8884_v15  ;;  %v1135_v33 = vadd.f32 %v1103_v11, %v6813_v35  ;;  %v1410_v32 = vadd.f32 %v1378_v13, %v1152_v62  ;;  %v1894_v8 = vmul.f32 %v6713_v59, %v8885_v30  ;;  %v2214_v43 = vld [vmem:[#allocation2 + $0x111] sm:$0xff]  ;;  %v8890_v62 = vld [vmem:[#allocation115_spill] sm:$0xff] }
 0x2eb   : > { %v1123_v37 = vmul.f32 %v6624_v23, %v8886_v25  ;;  %v1157_v38 = vadd.f32 %v1125_v63, %v6879_v36  ;;  %v1641_v34 = vmul.f32 %v6684_v6, %v8887_v16  ;;  %2310 = vperm.xlu1 %5367, %v2211_v10   ;;  %v7108_v0 = vadd.f32 %v2155_v47, %v1928_v54  ;;  %v8889_v3 = vld [vmem:[#allocation17_spill] sm:$0xff]  ;;  %v8891_v63 = vld [vmem:[#allocation118_spill] sm:$0xff]  ;;  %v8892_v54 = vld [vmem:[#allocation179_spill] sm:$0xff] }
 0x2ec   : > { %v7111_v4 = vadd.f32 %v1104_v55, %v8889_v3  ;;  %v1138_v35 = vadd.f32 %v1106_v48, %v6843_v60  ;;  %v7115_v11 = vadd.f32 %v1109_v44, %v6863_v9  ;;  %v1668_v13 = vadd.f32 %v1636_v50, %v1410_v32  ;;  %2315 = vperm.xlu2 %5368, %v2212_v58   ;;  %v8893_v55 = vld [vmem:[#allocation120_spill] sm:$0xff]  ;;  %v8894_v60 = vld [vmem:[#allocation43_spill] sm:$0xff]  ;;  %v8895_v32 = vld [vmem:[#allocation122_spill] sm:$0xff] }
 0x2ed   : > { %8888 = vst [vmem:[#allocation35_spill] sm:$0xff] %v7108_v0  ;;  %v1107_v36 = vmul.f32 %v6624_v23, %v8890_v62  ;;  %v1126_v16 = vmul.f32 %v6624_v23, %v8891_v63  ;;  %v1415_v10 = vadd.f32 %v1383_v42, %v1157_v38  ;;  %v1899_v47 = vmul.f32 %v6713_v59, %v8892_v54  ;;  %v2083_v15 = vpop.permute.xlu1 %2082  ;;  %v8896_v25 = vld [vmem:[#allocation130_spill] sm:$0xff]  ;;  %v8897_v62 = vld [vmem:[#allocation125_spill] sm:$0xff]  ;;  %v8898_v54 = vld [vmem:[#allocation128_spill] sm:$0xff] }
 0x2ee   : > { %v1129_v30 = vmul.f32 %v6624_v23, %v8893_v55  ;;  %v1381_v9 = vmul.f32 %v6653_v20, %v8894_v60  ;;  %v1926_v48 = vadd.f32 %v1894_v8, %v1668_v13  ;;  %v2153_v44 = vmul.f32 %v6760_v21, %v2083_v15  ;;  %v7128_v50 = vpop.permute.xlu2 %2260  ;;  %2325 = vperm.xlu0 %5366, %v2214_v43   ;;  %v8899_v13 = vld [vmem:[#allocation146_spill] sm:$0xff]  ;;  %v2471_v43 = vld [vmem:[#allocation2 + $0x10a] sm:$0xff] }
 0x2ef   : > { %v1155_v58 = vadd.f32 %v1123_v37, %v6961_v22  ;;  %v1358_v42 = vmul.f32 %v6653_v20, %v8895_v32  ;;  %v1128_v38 = vmul.f32 %v6624_v23, %v8896_v25  ;;  %v1673_v3 = vadd.f32 %v1641_v34, %v1415_v10  ;;  %v8901_v37 = vld [vmem:[#allocation19_spill] sm:$0xff]  ;;  %v8902_v32 = vld [vmem:[#allocation53_spill] sm:$0xff] }
 0x2f0   : > { %v1361_v63 = vmul.f32 %v6653_v20, %v8897_v62  ;;  %v1364_v8 = vmul.f32 %v6653_v20, %v8898_v54  ;;  %v1639_v15 = vmul.f32 %v6684_v6, %v8899_v13  ;;  %v7141_v55 = vadd.f32 %v2153_v44, %v1926_v48  ;;  %v2108_v22 = vpop.permute.xlu0 %2107  ;;  %v2472_v10 = vld [vmem:[#allocation2 + $0x112] sm:$0xff]  ;;  %v8903_v13 = vld [vmem:[#allocation167_spill] sm:$0xff] }
 0x2f1   : > { %v1139_v60 = vadd.f32 %v1107_v36, %v8901_v37  ;;  %v1386_v0 = vmul.f32 %v6653_v20, %v8902_v32  ;;  %v1931_v23 = vadd.f32 %v1899_v47, %v1673_v3  ;;  %v2158_v34 = vmul.f32 %v6760_v21, %v2108_v22  ;;  %v8905_v37 = vld [vmem:[#allocation89_spill] sm:$0xff]  ;;  %v2215_v22 = vld [vmem:[#allocation2 + $0x121] sm:$0xff] }
 0x2f2   : > { %8900 = vst [vmem:[#allocation50_spill] sm:$0xff] %v7141_v55  ;;  %v1158_v25 = vadd.f32 %v1126_v16, %v7042_v2  ;;  %v7149_v62 = vadd.f32 %v1129_v30, %v7050_v24  ;;  %v1413_v54 = vadd.f32 %v1381_v9, %v1155_v58  ;;  %v1897_v48 = vmul.f32 %v6713_v59, %v8903_v13 }
 0x2f3   : > { %v1160_v44 = vadd.f32 %v1128_v38, %v6914_v41  ;;  %v1356_v36 = vmul.f32 %v6653_v20, %v8904_v5  ;;  %v1644_v47 = vmul.f32 %v6684_v6, %v8905_v37  ;;  %2578 = vperm.xlu1 %5367, %v2471_v43   ;;  %v7158_v3 = vadd.f32 %v2158_v34, %v1931_v23  ;;  %v8907_v41 = vld [vmem:[#allocation131_spill] sm:$0xff]  ;;  %v8908_v5 = vld [vmem:[#allocation132_spill] sm:$0xff]  ;;  %v8910_v34 = vld [vmem:[#allocation133_spill] sm:$0xff] }
 0x2f4   : > { %v7161_v2 = vadd.f32 %v1358_v42, %v7061_v1  ;;  %v7163_v24 = vadd.f32 %v1361_v63, %v1135_v33  ;;  %v7165_v16 = vadd.f32 %v1364_v8, %v1138_v35  ;;  %v1671_v30 = vadd.f32 %v1639_v15, %v1413_v54  ;;  %2583 = vperm.xlu2 %5368, %v2472_v10   ;;  %v8909_v43 = vld [vmem:[#allocation8_spill] sm:$0xff]  ;;  %v8912_v10 = vld [vmem:[#allocation135_spill] sm:$0xff]  ;;  %v8913_v54 = vld [vmem:[#allocation134_spill] sm:$0xff] }
 0x2f5   : > { %8906 = vst [vmem:[#allocation37_spill] sm:$0xff] %v7158_v3  ;;  %v1367_v9 = vmul.f32 %v6653_v20, %v8907_v41  ;;  %v1359_v58 = vmul.f32 %v6653_v20, %v8908_v5  ;;  %v1418_v38 = vadd.f32 %v1386_v0, %v1160_v44  ;;  %v1902_v32 = vmul.f32 %v6713_v59, %v8909_v43  ;;  %v2098_v23 = vpop.permute.xlu1 %2097  ;;  %v8911_v33 = vld [vmem:[#allocation48_spill] sm:$0xff]  ;;  %v8914_v37 = vld [vmem:[#allocation137_spill] sm:$0xff]  ;;  %v8920_v3 = vld [vmem:[#allocation142_spill] sm:$0xff] }
 0x2f6   : > { %v1357_v1 = vmul.f32 %v6653_v20, %v8910_v34  ;;  %v1384_v35 = vmul.f32 %v6653_v20, %v8911_v33  ;;  %v1929_v42 = vadd.f32 %v1897_v48, %v1671_v30  ;;  %v2156_v63 = vmul.f32 %v6760_v21, %v2098_v23  ;;  %v7178_v8 = vpop.permute.xlu2 %2508  ;;  %2330 = vperm.xlu0 %5366, %v2215_v22   ;;  %v8915_v5 = vld [vmem:[#allocation136_spill] sm:$0xff]  ;;  %v8916_v30 = vld [vmem:[#allocation149_spill] sm:$0xff]  ;;  %v2470_v22 = vld [vmem:[#allocation2 + $0xfa] sm:$0xff] }
 0x2f7   : > { %v1388_v15 = vadd.f32 %v1356_v36, %v7092_v29  ;;  %v1360_v0 = vmul.f32 %v6653_v20, %v8912_v10  ;;  %v1362_v13 = vmul.f32 %v6653_v20, %v8913_v54  ;;  %v1676_v44 = vadd.f32 %v1644_v47, %v1418_v38  ;;  %v8918_v34 = vld [vmem:[#allocation138_spill] sm:$0xff]  ;;  %v2473_v10 = vld [vmem:[#allocation2 + $0x122] sm:$0xff] }
 0x2f8   : > { %v1363_v41 = vmul.f32 %v6653_v20, %v8914_v37  ;;  %v1365_v48 = vmul.f32 %v6653_v20, %v8915_v5  ;;  %v1642_v43 = vmul.f32 %v6684_v6, %v8916_v30  ;;  %v7191_v23 = vadd.f32 %v2156_v63, %v1929_v42  ;;  %v2123_v29 = vpop.permute.xlu0 %2122  ;;  %v8919_v30 = vld [vmem:[#allocation169_spill] sm:$0xff] }
 0x2f9   : > { %v7194_v36 = vadd.f32 %v1367_v9, %v7115_v11  ;;  %v1366_v33 = vmul.f32 %v6653_v20, %v8918_v34  ;;  %v1934_v47 = vadd.f32 %v1902_v32, %v1676_v44  ;;  %v2161_v38 = vmul.f32 %v6760_v21, %v2123_v29  ;;  %v8921_v9 = vld [vmem:[#allocation51_spill] sm:$0xff] }
 0x2fa   : > { %8917 = vst [vmem:[#allocation56_spill] sm:$0xff] %v7191_v23  ;;  %v1389_v54 = vadd.f32 %v1357_v1, %v6929_v26  ;;  %v1391_v37 = vadd.f32 %v1359_v58, %v7098_v57  ;;  %v1416_v5 = vadd.f32 %v1384_v35, %v1158_v25  ;;  %v1900_v42 = vmul.f32 %v6713_v59, %v8919_v30  ;;  %v2475_v44 = vld [vmem:[#allocation2 + $0x13a] sm:$0xff] }
 0x2fb   : > { %v1394_v63 = vadd.f32 %v1362_v13, %v7111_v4  ;;  %v1614_v11 = vmul.f32 %v6684_v6, %v8920_v3  ;;  %v1617_v34 = vmul.f32 %v6684_v6, %v8921_v9  ;;  %2573 = vperm.xlu1 %5367, %v2470_v22   ;;  %v7208_v32 = vadd.f32 %v2161_v38, %v1934_v47  ;;  %v8923_v4 = vld [vmem:[#allocation57_spill] sm:$0xff]  ;;  %v8924_v3 = vld [vmem:[#allocation63_spill] sm:$0xff]  ;;  %v8926_v38 = vld [vmem:[#allocation54_spill] sm:$0xff] }
 0x2fc   : > { %v1392_v26 = vadd.f32 %v1360_v0, %v7000_v31  ;;  %v1395_v57 = vadd.f32 %v1363_v41, %v7045_v28  ;;  %v1397_v25 = vadd.f32 %v1365_v48, %v1139_v60  ;;  %v1674_v58 = vadd.f32 %v1642_v43, %v1416_v5  ;;  %2588 = vperm.xlu2 %5368, %v2473_v10   ;;  %v8925_v29 = vld [vmem:[#allocation59_spill] sm:$0xff]  ;;  %v8927_v0 = vld [vmem:[#allocation69_spill] sm:$0xff] }
 0x2fd   : > { %8922 = vst [vmem:[#allocation39_spill] sm:$0xff] %v7208_v32  ;;  %v1398_v1 = vadd.f32 %v1366_v33, %v7058_v12  ;;  %v1620_v35 = vmul.f32 %v6684_v6, %v8923_v4  ;;  %v1623_v13 = vmul.f32 %v6684_v6, %v8924_v3  ;;  %v1615_v22 = vmul.f32 %v6684_v6, %v8925_v29  ;;  %v2113_v47 = vpop.permute.xlu1 %2112  ;;  %v8928_v33 = vld [vmem:[#allocation65_spill] sm:$0xff]  ;;  %v8929_v5 = vld [vmem:[#allocation75_spill] sm:$0xff] }
 0x2fe   : > { %v1387_v31 = vmul.f32 %v6653_v20, %v8926_v38  ;;  %v1618_v28 = vmul.f32 %v6684_v6, %v8927_v0  ;;  %v1932_v60 = vadd.f32 %v1900_v42, %v1674_v58  ;;  %v2159_v41 = vmul.f32 %v6760_v21, %v2113_v47  ;;  %v7224_v12 = vpop.permute.xlu2 %2245  ;;  %2598 = vperm.xlu0 %5366, %v2475_v44   ;;  %v8930_v9 = vld [vmem:[#allocation71_spill] sm:$0xff]  ;;  %v8931_v4 = vld [vmem:[#allocation81_spill] sm:$0xff]  ;;  %v8932_v58 = vld [vmem:[#allocation152_spill] sm:$0xff] }
 0x2ff   : > { %v1646_v48 = vadd.f32 %v1614_v11, %v1388_v15  ;;  %v7226_v43 = vadd.f32 %v1617_v34, %v1391_v37  ;;  %v1616_v10 = vmul.f32 %v6684_v6, %v8928_v33  ;;  %v1621_v30 = vmul.f32 %v6684_v6, %v8929_v5  ;;  %v2217_v15 = vld [vmem:[#allocation2 + $0x139] sm:$0xff]  ;;  %v8934_v44 = vld [vmem:[#allocation77_spill] sm:$0xff]  ;;  %v8935_v38 = vld [vmem:[#allocation156_spill] sm:$0xff] }
 0x300   : > { %v1619_v20 = vmul.f32 %v6684_v6, %v8930_v9  ;;  %v1624_v42 = vmul.f32 %v6684_v6, %v8931_v4  ;;  %v1645_v3 = vmul.f32 %v6684_v6, %v8932_v58  ;;  %v7238_v29 = vadd.f32 %v2159_v41, %v1932_v60  ;;  %v7240_v37 = vpop.permute.xlu0 %2240  ;;  %v7253_v33 = vld [vmem:[%s8454_s1 + $0x7] ss:$0 sm:$0xff]  ;;  %v2218_v60 = vld [vmem:[#allocation2 + $0x141] sm:$0xff]  ;;  %v8938_v58 = vld [vmem:[#allocation145_spill] sm:$0xff] }
 0x301   : > { %v7242_v11 = vadd.f32 %v1620_v35, %v1394_v63  ;;  %v7244_v34 = vadd.f32 %v1623_v13, %v1397_v25  ;;  %v1622_v47 = vmul.f32 %v6684_v6, %v8934_v44  ;;  %v1872_v0 = vmul.f32 %v6713_v59, %v8935_v38  ;;  %v8936_v63 = vld [vmem:[#allocation171_spill] sm:$0xff]  ;;  %v8939_v38 = vld [vmem:[#allocation181_spill] sm:$0xff] }
 0x302   : > { %8933 = vst [vmem:[#allocation44_spill] sm:$0xff] %v7238_v29  ;;  %v1419_v41 = vadd.f32 %v1387_v31, %v7149_v62  ;;  %v1647_v5 = vadd.f32 %v1615_v22, %v1389_v54  ;;  %v1650_v9 = vadd.f32 %v1618_v28, %v1392_v26  ;;  %v1903_v25 = vmul.f32 %v6713_v59, %v8936_v63  ;;  %v8937_v13 = vld [vmem:[#allocation83_spill] sm:$0xff]  ;;  %v2474_v32 = vld [vmem:[#allocation2 + $0x12a] sm:$0xff] }
 0x303   : > { %v1648_v35 = vadd.f32 %v1616_v10, %v7161_v2  ;;  %v1625_v4 = vmul.f32 %v6684_v6, %v8937_v13  ;;  %v1873_v44 = vmul.f32 %v6713_v59, %v8938_v58  ;;  %v2131_v29 = vmul.f32 %v6760_v21, %v8939_v38  ;;  %2340 = vperm.xlu1 %5367, %v2217_v15   ;;  %v8940_v2 = vld [vmem:[#allocation148_spill] sm:$0xff]  ;;  %v8941_v13 = vld [vmem:[#allocation151_spill] sm:$0xff]  ;;  %v8942_v58 = vld [vmem:[#allocation154_spill] sm:$0xff] }
 0x304   : > { %v1651_v62 = vadd.f32 %v1619_v20, %v7163_v24  ;;  %v1653_v54 = vadd.f32 %v1621_v30, %v1395_v57  ;;  %v1656_v26 = vadd.f32 %v1624_v42, %v1398_v1  ;;  %v1677_v22 = vadd.f32 %v1645_v3, %v1419_v41  ;;  %2345 = vperm.xlu2 %5368, %v2218_v60   ;;  %v7284_v3 = vld [vmem:[%s8454_s1 + $0x8] ss:$0 sm:$0xff]  ;;  %v8945_v60 = vld [vmem:[#allocation158_spill] sm:$0xff] }
 0x305   : > { %v1654_v31 = vadd.f32 %v1622_v47, %v7165_v16  ;;  %v1876_v28 = vmul.f32 %v6713_v59, %v8940_v2  ;;  %v1904_v6 = vadd.f32 %v1872_v0, %v1646_v48  ;;  %v2389_v10 = vmul.f32 %v7253_v33, %v7076_v7  ;;  %v2128_v63 = vpop.permute.xlu1 %2127  ;;  %v8943_v48 = vld [vmem:[#allocation155_spill] sm:$0xff]  ;;  %v7299_v2 = vld [vmem:[%s8455_s2] ss:$0 sm:$0xff] }
 0x306   : > { %v1879_v15 = vmul.f32 %v6713_v59, %v8941_v13  ;;  %v1882_v24 = vmul.f32 %v6713_v59, %v8942_v58  ;;  %v1935_v57 = vadd.f32 %v1903_v25, %v1677_v22  ;;  %v2162_v1 = vmul.f32 %v6760_v21, %v2128_v63  ;;  %v7276_v30 = vpop.permute.xlu2 %2493  ;;  %2593 = vperm.xlu0 %5366, %v2474_v32   ;;  %v8944_v47 = vld [vmem:[#allocation159_spill] sm:$0xff]  ;;  %v8946_v25 = vld [vmem:[#allocation161_spill] sm:$0xff] }
 0x307   : > { %v1657_v16 = vadd.f32 %v1625_v4, %v7194_v36  ;;  %v1905_v20 = vadd.f32 %v1873_v44, %v1647_v5  ;;  %v1874_v42 = vmul.f32 %v6713_v59, %v8943_v48  ;;  %v2163_v7 = vadd.f32 %v2131_v29, %v1904_v6  ;;  %v2216_v5 = vld [vmem:[#allocation2 + $0x129] sm:$0xff]  ;;  %v8948_v29 = vld [vmem:[#allocation162_spill] sm:$0xff] }
 0x308   : > { %v1875_v0 = vmul.f32 %v6713_v59, %v8944_v47  ;;  %v1877_v41 = vmul.f32 %v6713_v59, %v8945_v60  ;;  %v1880_v32 = vmul.f32 %v6713_v59, %v8946_v25  ;;  %v7292_v36 = vadd.f32 %v2162_v1, %v1935_v57  ;;  %v2489_v4 = vpop.permute.xlu0 %2488  ;;  %v2219_v63 = vld [vmem:[#allocation2 + $0x151] sm:$0xff]  ;;  %v8949_v57 = vld [vmem:[#allocation164_spill] sm:$0xff] }
 0x309   : > { %v1908_v44 = vadd.f32 %v1876_v28, %v1650_v9  ;;  %v1878_v38 = vmul.f32 %v6713_v59, %v8948_v29  ;;  %v2421_v22 = vadd.f32 %v2389_v10, %v2163_v7  ;;  %v2647_v6 = vmul.f32 %v7284_v3, %v2489_v4  ;;  %v8950_v48 = vld [vmem:[#allocation165_spill] sm:$0xff]  ;;  %v8951_v7 = vld [vmem:[#allocation174_spill] sm:$0xff] }
 0x30a   : > { %8947 = vst [vmem:[#allocation41_spill] sm:$0xff] %v7292_v36  ;;  %v1911_v13 = vadd.f32 %v1879_v15, %v1653_v54  ;;  %v7302_v58 = vadd.f32 %v1882_v24, %v1656_v26  ;;  %v1883_v1 = vmul.f32 %v6713_v59, %v8949_v57  ;;  %v2135_v9 = vmul.f32 %v6760_v21, %v6828_v61  ;;  %v2221_v25 = vld [vmem:[#allocation2 + $0x169] sm:$0xff] }
 0x30b   : > { %v1906_v28 = vadd.f32 %v1874_v42, %v1648_v35  ;;  %v1881_v10 = vmul.f32 %v6713_v59, %v8950_v48  ;;  %v2133_v47 = vmul.f32 %v6760_v21, %v8951_v7  ;;  %2335 = vperm.xlu1 %5367, %v2216_v5   ;;  %v2679_v60 = vadd.f32 %v2647_v6, %v2421_v22  ;;  %v8952_v24 = vld [vmem:[#allocation24_spill] sm:$0xff]  ;;  %v8956_v48 = vld [vmem:[#allocation177_spill] sm:$0xff] }
 0x30c   : > { %v1907_v54 = vadd.f32 %v1875_v0, %v7226_v43  ;;  %v7313_v26 = vadd.f32 %v1877_v41, %v1651_v62  ;;  %v1912_v15 = vadd.f32 %v1880_v32, %v1654_v31  ;;  %v2137_v4 = vmul.f32 %v6760_v21, %v8952_v24  ;;  %2350 = vperm.xlu2 %5368, %v2219_v63   ;;  %v8953_v35 = vld [vmem:[#allocation180_spill] sm:$0xff]  ;;  %v8955_v32 = vld [vmem:[#allocation21_spill] sm:$0xff] }
 0x30d   : > { %v1910_v61 = vadd.f32 %v1878_v38, %v7242_v11  ;;  %v2139_v59 = vmul.f32 %v6760_v21, %v8953_v35  ;;  %v8954_v42 = vld [vmem:[#allocation12_spill] sm:$0xff]  ;;  %v2251_v5 = vpop.permute.xlu1 %2250  ;;  %v2715_v22 = vadd.f32 %v7299_v2, %v2679_v60  ;;  %v7323_v6 = vadd.f32 %v1883_v1, %v1657_v16 }
 0x30e   : > { %v2134_v29 = vmul.f32 %v6760_v21, %v8954_v42  ;;  %v2167_v43 = vadd.f32 %v2135_v9, %v1908_v44  ;;  %v2395_v62 = vmul.f32 %v7253_v33, %v7128_v50  ;;  %v2393_v31 = vmul.f32 %v7253_v33, %v2251_v5  ;;  %v7328_v0 = vpop.permute.xlu2 %2523  ;;  %2360 = vperm.xlu0 %5366, %v2221_v25   ;;  %v2476_v1 = vld [vmem:[#allocation2 + $0x142] sm:$0xff]  ;;  %v2479_v60 = vld [vmem:[#allocation2 + $0x16a] sm:$0xff] }
 0x30f   : > { %v7331_v11 = vadd.f32 %v1881_v10, %v7244_v34  ;;  %v2165_v41 = vadd.f32 %v2133_v47, %v1906_v28  ;;  %v2132_v38 = vmul.f32 %v6760_v21, %v8955_v32  ;;  %v7335_v63 = vmax.f32 %v2715_v22, 0.0  ;;  %v8957_v10 = vld [vmem:[#allocation10_spill] sm:$0xff] }
 0x310   : > { %v2169_v16 = vadd.f32 %v2137_v4, %v1910_v61  ;;  %v2138_v44 = vmul.f32 %v6760_v21, %v6887_v18  ;;  %v2651_v50 = vmul.f32 %v7284_v3, %v7178_v8  ;;  %v2425_v57 = vadd.f32 %v2393_v31, %v2167_v43  ;;  %v2519_v9 = vpop.permute.xlu0 %2518 }
 0x311   : > { %v7343_v34 = vmul.f32 %v6760_v21, %v8956_v48  ;;  %v7345_v28 = vadd.f32 %v2139_v59, %v1912_v15  ;;  %v7349_v7 = vmul.f32 %v6760_v21, %v8957_v10  ;;  %v2166_v47 = vadd.f32 %v2134_v29, %v1907_v54  ;;  %v2220_v59 = vld [vmem:[#allocation2 + $0x159] sm:$0xff] }
 0x312   : > { %v2427_v25 = vadd.f32 %v2395_v62, %v2169_v16  ;;  %v2683_v18 = vadd.f32 %v2651_v50, %v2425_v57  ;;  %v2811_v24 = vrot.slane %v7335_v63, 2  ;;  %v2653_v8 = vmul.f32 %v7284_v3, %v2519_v9  ;;  %v2477_v9 = vld [vmem:[#allocation2 + $0x152] sm:$0xff] }
 0x313   : > { %v7353_v4 = vadd.f32 %v2132_v38, %v1905_v20  ;;  %v2392_v61 = vmul.f32 %v7253_v33, %v7224_v12  ;;  %v2391_v15 = vmul.f32 %v7253_v33, %v7240_v37  ;;  %v2812_v35 = vrot.slane %v7335_v63, 4  ;;  %2603 = vperm.xlu1 %5367, %v2476_v1  }
 0x314   : > { %v7360_v54 = vadd.f32 %v2138_v44, %v1911_v13  ;;  %v7364_v42 = vmul.f32 %v6760_v21, %v6851_v56  ;;  %v2719_v29 = vadd.f32 %v7299_v2, %v2683_v18  ;;  %v2685_v20 = vadd.f32 %v2653_v8, %v2427_v25  ;;  %2618 = vperm.xlu2 %5368, %v2479_v60   ;;  %v2478_v60 = vld [vmem:[#allocation2 + $0x15a] sm:$0xff] }
 0x315   : > { %v7369_v12 = vmul.f32 %v6760_v21, %v6938_v51  ;;  %v8495_v37 = vrot.slane %v7335_v63, 6  ;;  %v5136_v5 = vrot.slane %v7335_v63, 9  ;;  %v2499_v22 = vpop.permute.xlu1 %2498  ;;  %v5137_v43 = vrot.slane %v2811_v24, 9 }
 0x316   : > { %v2751_v13 = vmax.f32 %v2719_v29, 0.0  ;;  %v2649_v62 = vmul.f32 %v7284_v3, %v2499_v22  ;;  %v2721_v56 = vadd.f32 %v7299_v2, %v2685_v20  ;;  %v7375_v31 = vpop.permute.xlu2 %2528  ;;  %2355 = vperm.xlu0 %5366, %v2220_v59   ;;  %v8958_v32 = vmov 0.0   ;;  %v2480_v22 = vld [vmem:[#allocation2 + $0x172] sm:$0xff] }
 0x317   : > { %3580 = vst.msk [vmem:[#allocation3] sm:$0xff] %vm3579_vm3, %v8958_v32  ;;  %v7379_v21 = vadd.f32 %v2392_v61, %v2166_v47  ;;  %v2423_v51 = vadd.f32 %v2391_v15, %v2165_v41  ;;  %v7383_v38 = vmul.f32 %v7284_v3, %v7276_v30  ;;  %v5138_v16 = vrot.slane %v2812_v35, 9 }
 0x318   : > { %3584 = vst.msk [vmem:[#allocation3 + $0x90] sm:$0xff] %vm3579_vm3, %v8958_v32  ;;  %v2823_v44 = vrot.slane %v2751_v13, 2  ;;  %v2824_v50 = vrot.slane %v2751_v13, 4  ;;  %v2825_v57 = vrot.slane %v2751_v13, 6  ;;  %v5152_v1 = vrot.slane %v2751_v13, 9  ;;  %v7387_v48 = vpop.permute.xlu0 %2255 }
 0x319   : > { %v5139_v10 = vrot.slane %v8495_v37, 9  ;;  %v7392_v41 = vmax.f32 %v7335_v63, %v5136_v5  ;;  %v2681_v47 = vadd.f32 %v2649_v62, %v2423_v51  ;;  %v2753_v30 = vmax.f32 %v2721_v56, 0.0  ;;  %3582 = vst.msk [vmem:[#allocation3 + $0x8] sm:$0x3] %vm3581_vm7, %v8958_v32 }
 0x31a   : > { %v5153_v25 = vrot.slane %v2823_v44, 9  ;;  %v5154_v18 = vrot.slane %v2824_v50, 9  ;;  %v5155_v8 = vrot.slane %v2825_v57, 9  ;;  %v7394_v61 = vmax.f32 %v2811_v24, %v5137_v43  ;;  %3585 = vst.msk [vmem:[#allocation3 + $0x98] sm:$0x3] %vm3581_vm7, %v8958_v32 }
 0x31b   : > { %v2717_v15 = vadd.f32 %v7299_v2, %v2681_v47  ;;  %v2829_v59 = vrot.slane %v2753_v30, 2  ;;  %v2830_v29 = vrot.slane %v2753_v30, 4  ;;  %v2831_v20 = vrot.slane %v2753_v30, 6  ;;  %2608 = vperm.xlu1 %5367, %v2477_v9   ;;  %3598 = vst.msk [vmem:[#allocation3 + $0x19] sm:$0x1] %vm3586_vm8, %v8958_v32 }
 0x31c   : > { %v3403_v36 = vmax.f32 %v2751_v13, %v5152_v1  ;;  %v3404_v37 = vmax.f32 %v2823_v44, %v5153_v25  ;;  %v3389_v23 = vmax.f32 %v2812_v35, %v5138_v16  ;;  %v5160_v5 = vrot.slane %v2753_v30, 9  ;;  %2613 = vperm.xlu2 %5368, %v2478_v60   ;;  %3587 = vst.msk [vmem:[#allocation3] sm:$0x1] %vm3586_vm8, %v8958_v32 }
 0x31d   : > { %v2749_v62 = vmax.f32 %v2717_v15, 0.0  ;;  %v5161_v56 = vrot.slane %v2829_v59, 9  ;;  %v5162_v51 = vrot.slane %v2830_v29, 9  ;;  %v5163_v53 = vrot.slane %v2831_v20, 9  ;;  %v2236_v52 = vpop.permute.xlu1 %2235  ;;  %v2222_v15 = vld [vmem:[#allocation2 + $0x171] sm:$0xff] }
 0x31e   : > { %v3405_v24 = vmax.f32 %v2824_v50, %v5154_v18  ;;  %v3406_v43 = vmax.f32 %v2825_v57, %v5155_v8  ;;  %v3411_v47 = vmax.f32 %v2753_v30, %v5160_v5  ;;  %v2390_v55 = vmul.f32 %v7253_v33, %v2236_v52  ;;  %2623 = vperm.xlu0 %5366, %v2480_v22   ;;  %v7398_v19 = vpop.permute.xlu2 %2285  ;;  %v2225_v8 = vld [vmem:[#allocation2 + $0x199] sm:$0xff] }
 0x31f   : > { %v2817_v9 = vrot.slane %v2749_v62, 2  ;;  %v2818_v13 = vrot.slane %v2749_v62, 4  ;;  %v2819_v44 = vrot.slane %v2749_v62, 6  ;;  %v5144_v35 = vrot.slane %v2749_v62, 9  ;;  %3588 = vst.msk [vmem:[#allocation3 + $0x10] sm:$0x1] %vm3586_vm8, %v8958_v32 }
 0x320   : > { %v3412_v16 = vmax.f32 %v2829_v59, %v5161_v56  ;;  %v3413_v1 = vmax.f32 %v2830_v29, %v5162_v51  ;;  %v3414_v60 = vmax.f32 %v2831_v20, %v5163_v53  ;;  %v3523_v25 = vmax.f32 %v3403_v36, %v3411_v47  ;;  %v2504_v14 = vpop.permute.xlu0 %2503  ;;  %v2481_v36 = vld [vmem:[#allocation2 + $0x182] sm:$0xff]  ;;  %3589 = vst.msk [vmem:[#allocation3 + $0x20] sm:$0x1] %vm3586_vm8, %v8958_v32 }
 0x321   : > { %v5145_v50 = vrot.slane %v2817_v9, 9  ;;  %v5146_v57 = vrot.slane %v2818_v13, 9  ;;  %v5147_v18 = vrot.slane %v2819_v44, 9  ;;  %v3395_v30 = vmax.f32 %v2749_v62, %v5144_v35  ;;  %3590 = vst.msk [vmem:[#allocation3 + $0x30] sm:$0x1] %vm3586_vm8, %v8958_v32 }
 0x322   : > { %v8959_v52 = vrot.slane %v7335_v63, 6  ;;  %v3524_v5 = vmax.f32 %v3404_v37, %v3412_v16  ;;  %v3525_v45 = vmax.f32 %v3405_v24, %v3413_v1  ;;  %v3526_v40 = vmax.f32 %v3406_v43, %v3414_v60  ;;  %3591 = vst.msk [vmem:[#allocation3 + $0x40] sm:$0x1] %vm3586_vm8, %v8958_v32 }
 0x323   : > { %v3396_v39 = vmax.f32 %v2817_v9, %v5145_v50  ;;  %v3397_v59 = vmax.f32 %v2818_v13, %v5146_v57  ;;  %v3398_v29 = vmax.f32 %v2819_v44, %v5147_v18  ;;  %v3515_v53 = vmax.f32 %v7392_v41, %v3395_v30  ;;  %2365 = vperm.xlu1 %5367, %v2222_v15  }
 0x324   : > { %v3390_v22 = vmax.f32 %v8959_v52, %v5139_v10  ;;  %v3679_v20 = vperm.slane %v3523_v25, 0  ;;  %v3680_v56 = vperm.slane %v3524_v5, 0  ;;  %v3681_v51 = vperm.slane %v3525_v45, 0  ;;  %2380 = vperm.xlu2 %5368, %v2225_v8   ;;  %v2224_v25 = vld [vmem:[#allocation2 + $0x189] sm:$0xff]  ;;  %v2226_v8 = vld [vmem:[#allocation2 + $0x1a1] sm:$0xff] }
 0x325   : > { %v2422_v47 = vadd.f32 %v2390_v55, %v7353_v4  ;;  %v2654_v63 = vmul.f32 %v7284_v3, %v7328_v0  ;;  %v3516_v37 = vmax.f32 %v7394_v61, %v3396_v39  ;;  %v3517_v10 = vmax.f32 %v3389_v23, %v3397_v59  ;;  %v2266_v24 = vpop.permute.xlu1 %2265  ;;  %v2223_v61 = vld [vmem:[#allocation2 + $0x181] sm:$0xff]  ;;  %v4165_v52 = vld [vmem:[%s8456_s3 + $0x118] sm:$0xff]  ;;  %3592 = vst.msk [vmem:[#allocation3 + $0x50] sm:$0x1] %vm3586_vm8, %v8958_v32 }
 0x326   : > { %v3518_v62 = vmax.f32 %v3390_v22, %v3398_v29  ;;  %v3682_v43 = vperm.slane %v3526_v40, 0  ;;  %v3749_v9 = vsel %vm3735_vm4, %v3680_v56, %v3679_v20  ;;  %v2396_v13 = vmul.f32 %v7253_v33, %v2266_v24  ;;  %2628 = vperm.xlu0 %5366, %v2481_v36   ;;  %v7422_v18 = vpop.permute.xlu2 %2290  ;;  %4288 = vmatpush.msra.mxu2 %v4165_v52  ;;  %v4164_v36 = vld [vmem:[%s8456_s3 + $0x110] sm:$0xff] }
 0x327   : > { %v2680_v41 = vadd.f32 %v7383_v38, %v2422_v47  ;;  %v3671_v45 = vperm.slane %v3515_v53, 0  ;;  %v3672_v44 = vperm.slane %v3516_v37, 0  ;;  %v3673_v55 = vperm.slane %v3517_v10, 0  ;;  %3593 = vst.msk [vmem:[#allocation3 + $0x60] sm:$0x1] %vm3586_vm8, %v8958_v32 }
 0x328   : > { %v3750_v4 = vsel %vm3737_vm5, %v3681_v51, %v3749_v9  ;;  %v2655_v39 = vmul.f32 %v7284_v3, %v7375_v31  ;;  %v2428_v23 = vadd.f32 %v2396_v13, %v7360_v54  ;;  %v2271_v38 = vpop.permute.xlu0 %2270  ;;  %v3674_v35 = vperm.slane %v3518_v62, 0  ;;  %4289 = vmatpush.msra.mxu2 %v4164_v36  ;;  %3594 = vst.msk [vmem:[#allocation3 + $0x70] sm:$0x1] %vm3586_vm8, %v8958_v32 }
 0x329   : > { %v7412_v0 = vsel %vm3739_vm6, %v3682_v43, %v3750_v4  ;;  %v2716_v40 = vadd.f32 %v7299_v2, %v2680_v41  ;;  %v3736_v16 = vsel %vm3735_vm4, %v3672_v44, %v3671_v45  ;;  %v2650_v1 = vmul.f32 %v7284_v3, %v2504_v14  ;;  %3595 = vst.msk [vmem:[#allocation3 + $0x80] sm:$0x1] %vm3586_vm8, %v8958_v32 }
 0x32a   : > { %v2397_v60 = vmul.f32 %v7253_v33, %v2271_v38  ;;  %v3738_v15 = vsel %vm3737_vm5, %v3673_v55, %v3736_v16  ;;  %v2686_v57 = vadd.f32 %v2654_v63, %v2428_v23  ;;  %v2394_v54 = vmul.f32 %v7253_v33, %v7387_v48  ;;  %v4162_v16 = vld [vmem:[%s8456_s3 + $0x100] sm:$0xff]  ;;  %3596 = vst.msk [vmem:[#allocation3 + $0x90] sm:$0x1] %vm3586_vm8, %v8958_v32 }
 0x32b   : > { %v2748_v50 = vmax.f32 %v2716_v40, 0.0  ;;  %v7425_v31 = vsel %vm3739_vm6, %v3674_v35, %v3738_v15  ;;  %v2682_v30 = vadd.f32 %v2650_v1, %v7379_v21  ;;  %2370 = vperm.xlu1 %5367, %v2223_v61   ;;  %v2168_v20 = vadd.f32 %v7343_v34, %v7313_v26  ;;  %v4163_v26 = vld [vmem:[%s8456_s3 + $0x108] sm:$0xff]  ;;  %3597 = vst.msk [vmem:[#allocation3 + $0x9] sm:$0x1] %vm3586_vm8, %v8958_v32 }
 0x32c   : > { %v2429_v14 = vadd.f32 %v2397_v60, %v7345_v28  ;;  %2375 = vperm.xlu2 %5368, %v2224_v25   ;;  %v2722_v48 = vadd.f32 %v7299_v2, %v2686_v57  ;;  %v2174_v56 = vadd.f32 %v7349_v7, %v7323_v6  ;;  %v7451_v63 = vadd.f32 %v7364_v42, %v7331_v11  ;;  %v2483_v7 = vld [vmem:[#allocation2 + $0x19a] sm:$0xff] }
 0x32d   : > { %v2814_v22 = vrot.slane %v2748_v50, 2  ;;  %v2815_v5 = vrot.slane %v2748_v50, 4  ;;  %v2816_v59 = vrot.slane %v2748_v50, 6  ;;  %v5140_v29 = vrot.slane %v2748_v50, 9  ;;  %v2514_v53 = vpop.permute.xlu1 %2513  ;;  %4290 = vmatpush.msra.mxu2 %v4163_v26  ;;  %3599 = vst.msk [vmem:[#allocation3 + $0x29] sm:$0x1] %vm3586_vm8, %v8958_v32 }
 0x32e   : > { %v2718_v21 = vadd.f32 %v7299_v2, %v2682_v30  ;;  %v2687_v28 = vadd.f32 %v2655_v39, %v2429_v14  ;;  %2385 = vperm.xlu0 %5366, %v2226_v8   ;;  %v7453_v10 = vmax.f32 %v2722_v48, 0.0  ;;  %v7462_v6 = vadd.f32 %v7369_v12, %v7302_v58  ;;  %v2484_v12 = vld [vmem:[#allocation2 + $0x1a2] sm:$0xff]  ;;  %v7480_v35 = vpop.permute.xlu2 %2558  ;;  %3600 = vst.msk [vmem:[#allocation3 + $0x39] sm:$0x1] %vm3586_vm8, %v8958_v32 }
 0x32f   : > { %v5141_v51 = vrot.slane %v2814_v22, 9  ;;  %v5142_v47 = vrot.slane %v2815_v5, 9  ;;  %v5143_v37 = vrot.slane %v2816_v59, 9  ;;  %v2426_v34 = vadd.f32 %v2394_v54, %v2168_v20  ;;  %4291 = vmatpush.msra.mxu2 %v4162_v16  ;;  %3601 = vst.msk [vmem:[#allocation3 + $0x49] sm:$0x1] %vm3586_vm8, %v8958_v32 }
 0x330   : > { %v2750_v62 = vmax.f32 %v2718_v21, 0.0  ;;  %v2400_v11 = vmul.f32 %v7253_v33, %v7398_v19  ;;  %v7466_v42 = vpop.permute.xlu0 %2538  ;;  %v3391_v24 = vmax.f32 %v2748_v50, %v5140_v29  ;;  %v2832_v43 = vrot.slane %v7453_v10, 2  ;;  %3602 = vst.msk [vmem:[#allocation3 + $0x59] sm:$0x1] %vm3586_vm8, %v8958_v32 }
 0x331   : > { %v2652_v9 = vmul.f32 %v7284_v3, %v2514_v53  ;;  %v2723_v58 = vadd.f32 %v7299_v2, %v2687_v28  ;;  %v3392_v44 = vmax.f32 %v2814_v22, %v5141_v51  ;;  %v3393_v55 = vmax.f32 %v2815_v5, %v5142_v47  ;;  %v2482_v53 = vld [vmem:[#allocation2 + $0x18a] sm:$0xff]  ;;  %3603 = vst.msk [vmem:[#allocation3 + $0x69] sm:$0x1] %vm3586_vm8, %v8958_v32 }
 0x332   : > { %v2820_v19 = vrot.slane %v2750_v62, 2  ;;  %v2821_v41 = vrot.slane %v2750_v62, 4  ;;  %v2822_v13 = vrot.slane %v2750_v62, 6  ;;  %v5148_v45 = vrot.slane %v2750_v62, 9  ;;  %3604 = vst.msk [vmem:[#allocation3 + $0x79] sm:$0x1] %vm3586_vm8, %v8958_v32 }
 0x333   : > { %v3394_v4 = vmax.f32 %v2816_v59, %v5143_v37  ;;  %v2833_v39 = vrot.slane %v7453_v10, 4  ;;  %2638 = vperm.xlu1 %5367, %v2483_v7   ;;  %v2834_v1 = vrot.slane %v7453_v10, 6  ;;  %v5164_v60 = vrot.slane %v7453_v10, 9  ;;  %3605 = vst.msk [vmem:[#allocation3 + $0x89] sm:$0x1] %vm3586_vm8, %v8958_v32 }
 0x334   : > { %v5149_v40 = vrot.slane %v2820_v19, 9  ;;  %v5150_v23 = vrot.slane %v2821_v41, 9  ;;  %v5151_v61 = vrot.slane %v2822_v13, 9  ;;  %v3399_v38 = vmax.f32 %v2750_v62, %v5148_v45  ;;  %2643 = vperm.xlu2 %5368, %v2484_v12   ;;  %3606 = vst.msk [vmem:[#allocation3 + $0x99] sm:$0x1] %vm3586_vm8, %v8958_v32 }
 0x335   : > { %v5165_v25 = vrot.slane %v2832_v43, 9  ;;  %v2684_v15 = vadd.f32 %v2652_v9, %v2426_v34  ;;  %v2281_v50 = vpop.permute.xlu1 %2280  ;;  %v7493_v8 = vadd.f32 %v2400_v11, %v2174_v56  ;;  %v5166_v52 = vrot.slane %v2833_v39, 9  ;;  %4526 = vst.msk [vmem:[#allocation4] sm:$0x3f] %vm4525_vm15, %v8958_v32 }
 0x336   : > { %v3400_v57 = vmax.f32 %v2820_v19, %v5149_v40  ;;  %v3401_v54 = vmax.f32 %v2821_v41, %v5150_v23  ;;  %v3402_v30 = vmax.f32 %v2822_v13, %v5151_v61  ;;  %v3519_v14 = vmax.f32 %v3391_v24, %v3399_v38  ;;  %4530 = vst.msk [vmem:[#allocation4] sm:$0x1] %vm4529_vm0, %v8958_v32 }
 0x337   : > { %v7497_v22 = vmul.f32 %v7253_v33, %v7422_v18  ;;  %v2720_v5 = vadd.f32 %v7299_v2, %v2684_v15  ;;  %v5167_v36 = vrot.slane %v2834_v1, 9  ;;  %v3415_v20 = vmax.f32 %v7453_v10, %v5164_v60  ;;  %4531 = vst.msk [vmem:[#allocation4 + $0x8] sm:$0x1] %vm4529_vm0, %v8958_v32 }
 0x338   : > { %v3520_v59 = vmax.f32 %v3392_v44, %v3400_v57  ;;  %v3521_v29 = vmax.f32 %v3393_v55, %v3401_v54  ;;  %v3522_v48 = vmax.f32 %v3394_v4, %v3402_v30  ;;  %v3675_v21 = vperm.slane %v3519_v14, 0  ;;  %v2534_v28 = vpop.permute.xlu0 %2533  ;;  %v7525_v4 = vpop.permute.xlu2 %2553  ;;  %4537 = vst.msk [vmem:[#allocation4 + $0xd] sm:$0x1] %vm4529_vm0, %v8958_v32 }
 0x339   : > { %v3416_v18 = vmax.f32 %v2832_v43, %v5165_v25  ;;  %v2752_v56 = vmax.f32 %v2720_v5, 0.0  ;;  %v7509_v62 = vmax.f32 %v2723_v58, 0.0  ;;  %v3417_v10 = vmax.f32 %v2833_v39, %v5166_v52  ;;  %4528 = vst.msk [vmem:[#allocation4 + $0x28] sm:$0x3f] %vm4525_vm15, %v8958_v32 }
 0x33a   : > { %v3676_v51 = vperm.slane %v3520_v59, 0  ;;  %v3677_v47 = vperm.slane %v3521_v29, 0  ;;  %v3742_v37 = vsel %vm3741_vm9, %v3675_v21, %v7425_v31  ;;  %v3678_v24 = vperm.slane %v3522_v48, 0  ;;  %4532 = vst.msk [vmem:[#allocation4 + $0x10] sm:$0x1] %vm4529_vm0, %v8958_v32 }
 0x33b   : > { %v2826_v26 = vrot.slane %v2752_v56, 2  ;;  %v2827_v34 = vrot.slane %v2752_v56, 4  ;;  %v2828_v11 = vrot.slane %v2752_v56, 6  ;;  %v5156_v7 = vrot.slane %v2752_v56, 9  ;;  %2633 = vperm.xlu1 %5367, %v2482_v53   ;;  %4533 = vst.msk [vmem:[#allocation4 + $0x18] sm:$0x1] %vm4529_vm0, %v8958_v32 }
 0x33c   : > { %v3744_v43 = vsel %vm3743_vm10, %v3676_v51, %v3742_v37  ;;  %v2399_v9 = vmul.f32 %v7253_v33, %v2281_v50  ;;  %v3418_v13 = vmax.f32 %v2834_v1, %v5167_v36  ;;  %v2657_v55 = vmul.f32 %v7284_v3, %v7466_v42  ;;  %v3823_v36 = vld [vmem:[#allocation3 + $0x1] sm:$0xff]  ;;  %4534 = vst.msk [vmem:[#allocation4 + $0x20] sm:$0x1] %vm4529_vm0, %v8958_v32 }
 0x33d   : > { %v3746_v31 = vsel %vm3745_vm11, %v3677_v47, %v3744_v43  ;;  %v5157_v58 = vrot.slane %v2826_v26, 9  ;;  %v5158_v12 = vrot.slane %v2827_v34, 9  ;;  %v5159_v19 = vrot.slane %v2828_v11, 9  ;;  %v2276_v41 = vpop.permute.xlu1 %2275  ;;  %4536 = vst.msk [vmem:[#allocation4 + $0x5] sm:$0x1] %vm4529_vm0, %v8958_v32 }
 0x33e   : > { %v3748_v45 = vsel %vm3747_vm12, %v3678_v24, %v3746_v31  ;;  %v3407_v44 = vmax.f32 %v2752_v56, %v5156_v7  ;;  %v2835_v61 = vrot.slane %v7509_v62, 2  ;;  %v2836_v16 = vrot.slane %v7509_v62, 4  ;;  %4538 = vst.msk [vmem:[#allocation4 + $0x15] sm:$0x1] %vm4529_vm0, %v8958_v32 }
 0x33f   : > { %3807 = vst.msk [vmem:[#allocation3 + $0x11] sm:$0xff] %vm3579_vm3, %v3748_v45  ;;  %v3408_v39 = vmax.f32 %v2826_v26, %v5157_v58  ;;  %v3409_v40 = vmax.f32 %v2827_v34, %v5158_v12  ;;  %v3410_v23 = vmax.f32 %v2828_v11, %v5159_v19  ;;  %v2661_v1 = vmul.f32 %v7284_v3, %v7480_v35 }
 0x340   : > { %v3527_v38 = vmax.f32 %v3407_v44, %v3415_v20  ;;  %v2431_v42 = vadd.f32 %v2399_v9, %v7462_v6  ;;  %v2301_v60 = vpop.permute.xlu0 %2300  ;;  %v2837_v57 = vrot.slane %v7509_v62, 6  ;;  %v2398_v14 = vmul.f32 %v7253_v33, %v2276_v41  ;;  %v2321_v58 = vpop.permute.xlu2 %2320  ;;  %4539 = vst.msk [vmem:[#allocation4 + $0x1d] sm:$0x1] %vm4529_vm0, %v8958_v32 }
 0x341   : > { %v3528_v25 = vmax.f32 %v3408_v39, %v3416_v18  ;;  %v3529_v15 = vmax.f32 %v3409_v40, %v3417_v10  ;;  %v3530_v50 = vmax.f32 %v3410_v23, %v3418_v13  ;;  %v2656_v35 = vmul.f32 %v7284_v3, %v2534_v28  ;;  %4540 = vst.msk [vmem:[#allocation4 + $0x25] sm:$0x1] %vm4529_vm0, %v8958_v32 }
 0x342   : > { %v3683_v54 = vperm.slane %v3527_v38, 0  ;;  %v2689_v30 = vadd.f32 %v2657_v55, %v2431_v42  ;;  %v5168_v5 = vrot.slane %v7509_v62, 9  ;;  %v5169_v59 = vrot.slane %v2835_v61, 9  ;;  %4535 = vst.msk [vmem:[#allocation4 + $0x28] sm:$0x1] %vm4529_vm0, %v8958_v32 }
 0x343   : > { %v3684_v6 = vperm.slane %v3528_v25, 0  ;;  %v3685_v52 = vperm.slane %v3529_v15, 0  ;;  %v2430_v21 = vadd.f32 %v2398_v14, %v7451_v63  ;;  %v2403_v53 = vmul.f32 %v7253_v33, %v2301_v60  ;;  %4541 = vst.msk [vmem:[#allocation4 + $0x2d] sm:$0x1] %vm4529_vm0, %v8958_v32 }
 0x344   : > { %v3752_v29 = vsel %vm3741_vm9, %v3683_v54, %v7412_v0  ;;  %v2725_v48 = vadd.f32 %v7299_v2, %v2689_v30  ;;  %v3686_v20 = vperm.slane %v3530_v50, 0  ;;  %v5170_v18 = vrot.slane %v2836_v16, 9 }
 0x345   : > { %v3753_v28 = vsel %vm3743_vm10, %v3684_v6, %v3752_v29  ;;  %v5171_v56 = vrot.slane %v2837_v57, 9  ;;  %v2544_v51 = vpop.permute.xlu1 %2543  ;;  %v2688_v26 = vadd.f32 %v2656_v35, %v2430_v21  ;;  %v3419_v63 = vmax.f32 %v7509_v62, %v5168_v5 }
 0x346   : > { %v3754_v47 = vsel %vm3745_vm11, %v3685_v52, %v3753_v28  ;;  %v2757_v37 = vmax.f32 %v2725_v48, 0.0  ;;  %v2658_v34 = vmul.f32 %v7284_v3, %v2544_v51  ;;  %v7553_v0 = vld [vmem:[#allocation3 + $0x12] sm:$0xff]  ;;  %v2435_v7 = vadd.f32 %v2403_v53, %v6789_v49 }
 0x347   : > { %v3755_v11 = vsel %vm3747_vm12, %v3686_v20, %v3754_v47  ;;  %v5369_v10 = vpack.i.bf16 %v7553_v0, %v3823_v36  ;;  %v3420_v19 = vmax.f32 %v2835_v61, %v5169_v59  ;;  %v2724_v41 = vadd.f32 %v7299_v2, %v2688_v26 }
 0x348   : > { %3808 = vst.msk [vmem:[#allocation3 + $0x21] sm:$0xff] %vm3579_vm3, %v3755_v11  ;;  %v2841_v24 = vrot.slane %v2757_v37, 2  ;;  %v2842_v43 = vrot.slane %v2757_v37, 4  ;;  %v2843_v9 = vrot.slane %v2757_v37, 6  ;;  %v5176_v31 = vrot.slane %v2757_v37, 9  ;;  %v7560_v12 = vpop.permute.xlu0 %2295  ;;  %v2316_v47 = vpop.permute.xlu2 %2315 }
 0x349   : > { %v2690_v13 = vadd.f32 %v2658_v34, %v7493_v8  ;;  %v2693_v45 = vadd.f32 %v2661_v1, %v2435_v7  ;;  %5370 = vrot.lane.b32.xlu0 %v5369_v10, %s5576_s18  ;;  %v3421_v39 = vmax.f32 %v2836_v16, %v5170_v18  ;;  %v3422_v40 = vmax.f32 %v2837_v57, %v5171_v56 }
 0x34a   : > { %v5177_v49 = vrot.slane %v2841_v24, 9  ;;  %v5178_v62 = vrot.slane %v2842_v43, 9  ;;  %v5179_v44 = vrot.slane %v2843_v9, 9  ;;  %v3427_v55 = vmax.f32 %v2757_v37, %v5176_v31 }
 0x34b   : > { %v2756_v23 = vmax.f32 %v2724_v41, 0.0  ;;  %v2726_v38 = vadd.f32 %v7299_v2, %v2690_v13  ;;  %v2729_v1 = vadd.f32 %v7299_v2, %v2693_v45  ;;  %v7569_v30 = vadd.f32 %v7497_v22, %v6923_v46 }
 0x34c   : > { %v3428_v42 = vmax.f32 %v2841_v24, %v5177_v49  ;;  %v3429_v60 = vmax.f32 %v2842_v43, %v5178_v62  ;;  %v3430_v61 = vmax.f32 %v2843_v9, %v5179_v44  ;;  %v3531_v25 = vmax.f32 %v3419_v63, %v3427_v55  ;;  %v3831_v44 = vld [vmem:[#allocation3 + $0x2] sm:$0xff] }
 0x34d   : > { %v2838_v15 = vrot.slane %v2756_v23, 2  ;;  %v2839_v50 = vrot.slane %v2756_v23, 4  ;;  %v2840_v8 = vrot.slane %v2756_v23, 6  ;;  %v2549_v54 = vpop.permute.xlu1 %2548  ;;  %v7573_v35 = vmul.f32 %v7284_v3, %v7525_v4 }
 0x34e   : > { %v3532_v14 = vmax.f32 %v3420_v19, %v3428_v42  ;;  %v3533_v16 = vmax.f32 %v3421_v39, %v3429_v60  ;;  %v3534_v57 = vmax.f32 %v3422_v40, %v3430_v61  ;;  %v5172_v6 = vrot.slane %v2756_v23, 9 }
 0x34f   : > { %v5173_v52 = vrot.slane %v2838_v15, 9  ;;  %v2407_v5 = vmul.f32 %v7253_v33, %v2321_v58  ;;  %v7576_v59 = vld [vmem:[#allocation3 + $0x22] sm:$0xff]  ;;  %v3687_v29 = vperm.slane %v3531_v25, 0  ;;  %v2758_v53 = vmax.f32 %v2726_v38, 0.0 }
 0x350   : > { %v3688_v48 = vperm.slane %v3532_v14, 0  ;;  %v3689_v21 = vperm.slane %v3533_v16, 0  ;;  %5264 = vmatmul.msk.f32.vlgmr.msra.gmra.mxu2 %vm3579_vm3, %v7576_v59  ;;  %v7580_v46 = vpop.permute.xlu0 %2563  ;;  %v3690_v22 = vperm.slane %v3534_v57, 0  ;;  %v5174_v36 = vrot.slane %v2839_v50, 9  ;;  %v7589_v62 = vld [vmem:[#allocation3 + $0x21] sm:$0xff] }
 0x351   : > { %v5175_v20 = vrot.slane %v2840_v8, 9  ;;  %v7582_v4 = vmax.f32 %v2729_v1, 0.0  ;;  %v2844_v18 = vrot.slane %v2758_v53, 2  ;;  %v2845_v56 = vrot.slane %v2758_v53, 4  ;;  %v7591_v55 = vld [vmem:[#allocation3 + $0x20] sm:$0xff] }
 0x352   : > { %v3756_v28 = vsel %vm3735_vm4, %v3688_v48, %v3687_v29  ;;  %v2846_v51 = vrot.slane %v2758_v53, 6  ;;  %v3423_v26 = vmax.f32 %v2756_v23, %v5172_v6  ;;  %v3424_v34 = vmax.f32 %v2838_v15, %v5173_v52  ;;  %v3839_v15 = vld [vmem:[#allocation3 + $0x10] sm:$0xff] }
 0x353   : > { %v3757_v37 = vsel %vm3737_vm5, %v3689_v21, %v3756_v28  ;;  %v5180_v11 = vrot.slane %v2758_v53, 9  ;;  %v5181_v7 = vrot.slane %v2844_v18, 9  ;;  %v5182_v10 = vrot.slane %v2845_v56, 9 }
 0x354   : > { %v3758_v63 = vsel %vm3739_vm6, %v3690_v22, %v3757_v37  ;;  %v5183_v24 = vrot.slane %v2846_v51, 9  ;;  %v3425_v43 = vmax.f32 %v2839_v50, %v5174_v36  ;;  %v3426_v9 = vmax.f32 %v2840_v8, %v5175_v20 }
 0x355   : > { %v3431_v31 = vmax.f32 %v2758_v53, %v5180_v11  ;;  %v2853_v58 = vrot.slane %v7582_v4, 2  ;;  %v2306_v19 = vpop.permute.xlu1 %2305  ;;  %v3432_v41 = vmax.f32 %v2844_v18, %v5181_v7  ;;  %v3433_v13 = vmax.f32 %v2845_v56, %v5182_v10 }
 0x356   : > { %v3434_v45 = vmax.f32 %v2846_v51, %v5183_v24  ;;  %v2854_v49 = vrot.slane %v7582_v4, 4  ;;  %v7594_v39 = vadd.f32 %v2407_v5, %v7009_v17  ;;  %v2855_v23 = vrot.slane %v7582_v4, 6  ;;  %v3824_v5 = vld [vmem:[#allocation3 + $0x11] sm:$0xff] }
 0x357   : > { %v3535_v40 = vmax.f32 %v3423_v26, %v3431_v31  ;;  %v2402_v38 = vmul.f32 %v7253_v33, %v7560_v12  ;;  %v3536_v42 = vmax.f32 %v3424_v34, %v3432_v41  ;;  %v3537_v60 = vmax.f32 %v3425_v43, %v3433_v13  ;;  %v8960_v26 = vld [vmem:[#allocation26_spill] sm:$0xff] }
 0x358   : > { %v3538_v61 = vmax.f32 %v3426_v9, %v3434_v45  ;;  %v5192_v25 = vrot.slane %v7582_v4, 9  ;;  %v2569_v50 = vpop.permute.xlu0 %2568  ;;  %v5193_v1 = vrot.slane %v2853_v58, 9  ;;  %v5379_v14 = vpack.i.bf16 %v7589_v62, %v3839_v15  ;;  %v8961_v41 = vld [vmem:[#allocation30_spill] sm:$0xff] }
 0x359   : > { %v3691_v8 = vperm.slane %v3535_v40, 0  ;;  %v5374_v17 = vpack.i.bf16 %v7591_v55, %v3831_v44  ;;  %v3692_v16 = vperm.slane %v3536_v42, 0  ;;  %v3693_v57 = vperm.slane %v3537_v60, 0 }
 0x35a   : > { %v5194_v6 = vrot.slane %v2854_v49, 9  ;;  %v2659_v52 = vmul.f32 %v7284_v3, %v2549_v54  ;;  %v5195_v29 = vrot.slane %v2855_v23, 9  ;;  %5380 = vrot.lane.b32.xlu2 %v5379_v14, %s5577_s19  ;;  %v2434_v48 = vadd.f32 %v2402_v38, %v6992_v27  ;;  %v2584_v54 = vpop.permute.xlu2 %2583 }
 0x35b   : > { %v3759_v12 = vsel %vm3741_vm9, %v3691_v8, %v3758_v63  ;;  %5375 = vrot.lane.b32.xlu1 %v5374_v17, %s5578_s20  ;;  %v5384_v21 = vpack.i.bf16 %v7576_v59, %v3824_v5  ;;  %v3694_v53 = vperm.slane %v3538_v61, 0  ;;  %v2404_v20 = vmul.f32 %v7253_v33, %v2306_v19 }
 0x35c   : > { %v3760_v22 = vsel %vm3743_vm10, %v3692_v16, %v3759_v12  ;;  %v2691_v36 = vadd.f32 %v2659_v52, %v7569_v30  ;;  %v7613_v18 = vmul.f32 %v7253_v33, %v2316_v47  ;;  %v2692_v56 = vadd.f32 %v7573_v35, %v2434_v48 }
 0x35d   : > { %v3761_v28 = vsel %vm3745_vm11, %v3693_v57, %v3760_v22  ;;  %5385 = vrot.lane.b32.xlu0 %v5384_v21, %s5576_s18  ;;  %v2662_v27 = vmul.f32 %v7284_v3, %v7580_v46  ;;  %v2311_v51 = vpop.permute.xlu1 %2310  ;;  %v2436_v34 = vadd.f32 %v2404_v20, %v8960_v26  ;;  %v3443_v47 = vmax.f32 %v7582_v4, %v5192_v25  ;;  %v7634_v4 = vld [vmem:[%s8454_s1 + $0x7] ss:$0 sm:$0xff] }
 0x35e   : > { %v3762_v37 = vsel %vm3747_vm12, %v3694_v53, %v3761_v28  ;;  %v2727_v30 = vadd.f32 %v7299_v2, %v2691_v36  ;;  %v2405_v11 = vmul.f32 %v7253_v33, %v2311_v51  ;;  %v3444_v63 = vmax.f32 %v2853_v58, %v5193_v1 }
 0x35f   : > { %3809 = vst.msk [vmem:[#allocation3 + $0x31] sm:$0xff] %vm3579_vm3, %v3762_v37  ;;  %v3445_v35 = vmax.f32 %v2854_v49, %v5194_v6  ;;  %v2728_v7 = vadd.f32 %v7299_v2, %v2692_v56  ;;  %v3446_v10 = vmax.f32 %v2855_v23, %v5195_v29  ;;  %v7627_v46 = vmul.f32 %v7284_v3, %v2584_v54 }
 0x360   : > { %v2759_v24 = vmax.f32 %v2727_v30, 0.0  ;;  %v2663_v43 = vmul.f32 %v7284_v3, %v2569_v50  ;;  %v2326_v9 = vpop.permute.xlu0 %2325  ;;  %v2694_v19 = vadd.f32 %v2662_v27, %v2436_v34  ;;  %v2437_v33 = vadd.f32 %v2405_v11, %v8961_v41 }
 0x361   : > { %v2760_v31 = vmax.f32 %v2728_v7, 0.0  ;;  %v2408_v58 = vmul.f32 %v7634_v4, %v2326_v9 }
 0x362   : > { %v2847_v13 = vrot.slane %v2759_v24, 2  ;;  %v2848_v45 = vrot.slane %v2759_v24, 4  ;;  %v2849_v49 = vrot.slane %v2759_v24, 6  ;;  %v5184_v44 = vrot.slane %v2759_v24, 9  ;;  %v7639_v52 = vpop.permute.xlu2 %2588 }
 0x363   : > { %v2850_v40 = vrot.slane %v2760_v31, 2  ;;  %v2851_v23 = vrot.slane %v2760_v31, 4  ;;  %v2852_v38 = vrot.slane %v2760_v31, 6  ;;  %v5188_v3 = vrot.slane %v2760_v31, 9 }
 0x364   : > { %v5185_v42 = vrot.slane %v2847_v13, 9  ;;  %v5186_v60 = vrot.slane %v2848_v45, 9  ;;  %v5187_v61 = vrot.slane %v2849_v49, 9  ;;  %v3435_v25 = vmax.f32 %v2759_v24, %v5184_v44 }
 0x365   : > { %v5189_v15 = vrot.slane %v2850_v40, 9  ;;  %v5190_v50 = vrot.slane %v2851_v23, 9  ;;  %v5191_v8 = vrot.slane %v2852_v38, 9  ;;  %v7637_v1 = vmax.f32 %v2760_v31, %v5188_v3  ;;  %v2579_v14 = vpop.permute.xlu1 %2578 }
 0x366   : > { %v3436_v17 = vmax.f32 %v2847_v13, %v5185_v42  ;;  %v3437_v16 = vmax.f32 %v2848_v45, %v5186_v60  ;;  %v3438_v57 = vmax.f32 %v2849_v49, %v5187_v61  ;;  %v3539_v6 = vmax.f32 %v3435_v25, %v3443_v47  ;;  %v7641_v5 = vld [vmem:[#allocation3 + $0x32] sm:$0xff] }
 0x367   : > { %v7643_v12 = vld [vmem:[#allocation3 + $0x31] sm:$0xff]  ;;  %v3440_v48 = vmax.f32 %v2850_v40, %v5189_v15  ;;  %v3441_v21 = vmax.f32 %v2851_v23, %v5190_v50  ;;  %v3442_v53 = vmax.f32 %v2852_v38, %v5191_v8  ;;  %v2730_v22 = vadd.f32 %v7299_v2, %v2694_v19  ;;  %5265 = vmatmul.msk.f32.gmra.mxu2 %vm3579_vm3, %v7641_v5 }
 0x368   : > { %v7645_v29 = vld [vmem:[#allocation3 + $0x30] sm:$0xff]  ;;  %v3540_v36 = vmax.f32 %v3436_v17, %v3444_v63  ;;  %v3541_v54 = vmax.f32 %v3437_v16, %v3445_v35  ;;  %v3542_v20 = vmax.f32 %v3438_v57, %v3446_v10  ;;  %v3695_v28 = vperm.slane %v3539_v6, 0  ;;  %v7650_v56 = vpop.permute.xlu0 %2330  ;;  %v8963_v57 = vld [vmem:[#allocation22_spill] sm:$0xff] }
 0x369   : > { %v2762_v27 = vmax.f32 %v2730_v22, 0.0  ;;  %v2695_v51 = vadd.f32 %v2663_v43, %v2437_v33  ;;  %v5394_v37 = vpack.i.bf16 %v7643_v12, %v7591_v55  ;;  %v5389_v30 = vpack.i.bf16 %v7645_v29, %v7553_v0  ;;  %v7664_v0 = vld [vmem:[%s8455_s2] ss:$0 sm:$0xff]  ;;  %v8962_v43 = vld [vmem:[#allocation31_spill] sm:$0xff] }
 0x36a   : > { %v3696_v26 = vperm.slane %v3540_v36, 0  ;;  %v3697_v34 = vperm.slane %v3541_v54, 0  ;;  %v3698_v2 = vperm.slane %v3542_v20, 0  ;;  %v5399_v11 = vpack.i.bf16 %v7641_v5, %v7589_v62  ;;  %v7671_v62 = vld [vmem:[%s8454_s1 + $0x8] ss:$0 sm:$0xff]  ;;  %v2346_v15 = vpop.permute.xlu2 %2345 }
 0x36b   : > { %v2856_v47 = vrot.slane %v2762_v27, 2  ;;  %v2857_v63 = vrot.slane %v2762_v27, 4  ;;  %v2858_v35 = vrot.slane %v2762_v27, 6  ;;  %v5196_v7 = vrot.slane %v2762_v27, 9  ;;  %5395 = vrot.lane.b32.xlu2 %v5394_v37, %s5577_s19  ;;  %5390 = vrot.lane.b32.xlu1 %v5389_v30, %s5578_s20 }
 0x36c   : > { %v3763_v10 = vsel %vm3735_vm4, %v3696_v26, %v3695_v28  ;;  %v2731_v55 = vadd.f32 %v7664_v0, %v2695_v51  ;;  %5400 = vrot.lane.b32.xlu0 %v5399_v11, %s5576_s18  ;;  %v2665_v24 = vmul.f32 %v7671_v62, %v2579_v14  ;;  %v2440_v9 = vadd.f32 %v2408_v58, %v8962_v43 }
 0x36d   : > { %v3764_v31 = vsel %vm3737_vm5, %v3697_v34, %v3763_v10  ;;  %v5197_v19 = vrot.slane %v2856_v47, 9  ;;  %v5198_v41 = vrot.slane %v2857_v63, 9  ;;  %v5199_v33 = vrot.slane %v2858_v35, 9  ;;  %v2574_v13 = vpop.permute.xlu1 %2573  ;;  %v8964_v10 = vld [vmem:[#allocation25_spill] sm:$0xff] }
 0x36e   : > { %v3765_v45 = vsel %vm3739_vm6, %v3698_v2, %v3764_v31  ;;  %v3447_v49 = vmax.f32 %v2762_v27, %v5196_v7  ;;  %v2763_v44 = vmax.f32 %v2731_v55, 0.0  ;;  %v2697_v40 = vadd.f32 %v2665_v24, %v7594_v39 }
 0x36f   : > { %v3448_v23 = vmax.f32 %v2856_v47, %v5197_v19  ;;  %v3449_v38 = vmax.f32 %v2857_v63, %v5198_v41  ;;  %v3450_v3 = vmax.f32 %v2858_v35, %v5199_v33  ;;  %v2698_v42 = vadd.f32 %v7627_v46, %v2440_v9 }
 0x370   : > { %v3543_v60 = vmax.f32 %v7637_v1, %v3447_v49  ;;  %v2859_v58 = vrot.slane %v2763_v44, 2  ;;  %v2860_v61 = vrot.slane %v2763_v44, 4  ;;  %v2861_v25 = vrot.slane %v2763_v44, 6  ;;  %v2599_v50 = vpop.permute.xlu0 %2598 }
 0x371   : > { %v3544_v8 = vmax.f32 %v3440_v48, %v3448_v23  ;;  %v3545_v14 = vmax.f32 %v3441_v21, %v3449_v38  ;;  %v3546_v17 = vmax.f32 %v3442_v53, %v3450_v3  ;;  %v5200_v16 = vrot.slane %v2763_v44, 9 }
 0x372   : > { %v2438_v6 = vadd.f32 %v7613_v18, %v8963_v57  ;;  %v3699_v39 = vperm.slane %v3543_v60, 0  ;;  %v5201_v22 = vrot.slane %v2859_v58, 9  ;;  %v2667_v46 = vmul.f32 %v7671_v62, %v7639_v52  ;;  %v7707_v49 = vpop.permute.xlu2 %2350 }
 0x373   : > { %v3700_v36 = vperm.slane %v3544_v8, 0  ;;  %v3701_v54 = vperm.slane %v3545_v14, 0  ;;  %v5202_v1 = vrot.slane %v2860_v61, 9  ;;  %v3702_v20 = vperm.slane %v3546_v17, 0 }
 0x374   : > { %v3766_v28 = vsel %vm3741_vm9, %v3699_v39, %v3765_v45  ;;  %v5203_v27 = vrot.slane %v2861_v25, 9  ;;  %v7686_v48 = vmul.f32 %v7634_v4, %v2346_v15  ;;  %v3451_v53 = vmax.f32 %v2763_v44, %v5200_v16 }
 0x375   : > { %v3767_v21 = vsel %vm3743_vm10, %v3700_v36, %v3766_v28  ;;  %v2733_v18 = vadd.f32 %v7664_v0, %v2697_v40  ;;  %v2734_v51 = vadd.f32 %v7664_v0, %v2698_v42  ;;  %v2341_v37 = vpop.permute.xlu1 %2340  ;;  %v3452_v26 = vmax.f32 %v2859_v58, %v5201_v22 }
 0x376   : > { %v3768_v30 = vsel %vm3745_vm11, %v3701_v54, %v3767_v21  ;;  %v2664_v52 = vmul.f32 %v7671_v62, %v2574_v13  ;;  %v2409_v34 = vmul.f32 %v7634_v4, %v7650_v56  ;;  %v3453_v11 = vmax.f32 %v2860_v61, %v5202_v1  ;;  %v8965_v21 = vld [vmem:[#allocation50_spill] sm:$0xff] }
 0x377   : > { %v3769_v2 = vsel %vm3747_vm12, %v3702_v20, %v3768_v30  ;;  %v2765_v47 = vmax.f32 %v2733_v18, 0.0  ;;  %v7696_v63 = vmax.f32 %v2734_v51, 0.0  ;;  %v3454_v35 = vmax.f32 %v2861_v25, %v5203_v27 }
 0x378   : > { %3810 = vst.msk [vmem:[#allocation3 + $0x41] sm:$0xff] %vm3579_vm3, %v3769_v2  ;;  %v2696_v7 = vadd.f32 %v2664_v52, %v2438_v6  ;;  %v2441_v55 = vadd.f32 %v2409_v34, %v8964_v10  ;;  %v2411_v24 = vmul.f32 %v7634_v4, %v2341_v37  ;;  %v7701_v43 = vpop.permute.xlu0 %2593  ;;  %v2669_v58 = vmul.f32 %v7671_v62, %v2599_v50 }
 0x379   : > { %v2865_v9 = vrot.slane %v2765_v47, 2  ;;  %v2866_v31 = vrot.slane %v2765_v47, 4  ;;  %v2867_v19 = vrot.slane %v2765_v47, 6  ;;  %v5208_v56 = vrot.slane %v2765_v47, 9 }
 0x37a   : > { %v2868_v41 = vrot.slane %v7696_v63, 2  ;;  %v2869_v33 = vrot.slane %v7696_v63, 4  ;;  %v2870_v13 = vrot.slane %v7696_v63, 6  ;;  %v5212_v45 = vrot.slane %v7696_v63, 9 }
 0x37b   : > { %v5209_v44 = vrot.slane %v2865_v9, 9  ;;  %v5210_v40 = vrot.slane %v2866_v31, 9  ;;  %v5211_v23 = vrot.slane %v2867_v19, 9  ;;  %v3459_v38 = vmax.f32 %v2765_v47, %v5208_v56 }
 0x37c   : > { %v5213_v3 = vrot.slane %v2868_v41, 9  ;;  %v5214_v42 = vrot.slane %v2869_v33, 9  ;;  %v5215_v60 = vrot.slane %v2870_v13, 9  ;;  %v3463_v17 = vmax.f32 %v7696_v63, %v5212_v45 }
 0x37d   : > { %v3460_v61 = vmax.f32 %v2865_v9, %v5209_v44  ;;  %v3461_v25 = vmax.f32 %v2866_v31, %v5210_v40  ;;  %v3462_v15 = vmax.f32 %v2867_v19, %v5211_v23  ;;  %v3547_v8 = vmax.f32 %v3451_v53, %v3459_v38  ;;  %v7710_v14 = vpop.permute.xlu1 %2335 }
 0x37e   : > { %v3464_v16 = vmax.f32 %v2868_v41, %v5213_v3  ;;  %v3465_v57 = vmax.f32 %v2869_v33, %v5214_v42  ;;  %v2732_v6 = vadd.f32 %v7664_v0, %v2696_v7  ;;  %v2699_v27 = vadd.f32 %v2667_v46, %v2441_v55 }
 0x37f   : > { %v3548_v39 = vmax.f32 %v3452_v26, %v3460_v61  ;;  %v3549_v22 = vmax.f32 %v3453_v11, %v3461_v25  ;;  %v3550_v36 = vmax.f32 %v3454_v35, %v3462_v15  ;;  %v3703_v54 = vperm.slane %v3547_v8, 0  ;;  %v7714_v1 = vld [vmem:[#allocation3 + $0x42] sm:$0xff] }
 0x380   : > { %v7716_v20 = vld [vmem:[#allocation3 + $0x41] sm:$0xff]  ;;  %v2764_v28 = vmax.f32 %v2732_v6, 0.0  ;;  %5266 = vmatmul.msk.f32.gmra.mxu2 %vm3579_vm3, %v7714_v1  ;;  %v2443_v53 = vadd.f32 %v2411_v24, %v8965_v21  ;;  %v2361_v51 = vpop.permute.xlu0 %2360  ;;  %v2735_v63 = vadd.f32 %v7664_v0, %v2699_v27  ;;  %v2619_v24 = vpop.permute.xlu2 %2618  ;;  %v3466_v31 = vmax.f32 %v2870_v13, %v5215_v60 }
 0x381   : > { %v7718_v50 = vld [vmem:[#allocation3 + $0x40] sm:$0xff]  ;;  %v5409_v18 = vpack.i.bf16 %v7716_v20, %v7645_v29  ;;  %v3704_v37 = vperm.slane %v3548_v39, 0  ;;  %v3705_v30 = vperm.slane %v3549_v22, 0  ;;  %v3706_v26 = vperm.slane %v3550_v36, 0 }
 0x382   : > { %v5404_v52 = vpack.i.bf16 %v7718_v50, %v7576_v59  ;;  %v2862_v34 = vrot.slane %v2764_v28, 2  ;;  %v2863_v2 = vrot.slane %v2764_v28, 4  ;;  %v2864_v11 = vrot.slane %v2764_v28, 6  ;;  %v8966_v15 = vld [vmem:[#allocation29_spill] sm:$0xff] }
 0x383   : > { %v5204_v47 = vrot.slane %v2764_v28, 9  ;;  %5410 = vrot.lane.b32.xlu2 %v5409_v18, %s5577_s19  ;;  %v3770_v46 = vsel %vm3735_vm4, %v3704_v37, %v3703_v54  ;;  %v2701_v35 = vadd.f32 %v2669_v58, %v2443_v53  ;;  %v5414_v29 = vpack.i.bf16 %v7714_v1, %v7643_v12 }
 0x384   : > { %5405 = vrot.lane.b32.xlu1 %v5404_v52, %s5578_s20  ;;  %v3771_v7 = vsel %vm3737_vm5, %v3705_v30, %v3770_v46  ;;  %v5205_v10 = vrot.slane %v2862_v34, 9  ;;  %v5206_v59 = vrot.slane %v2863_v2, 9  ;;  %v5207_v55 = vrot.slane %v2864_v11, 9 }
 0x385   : > { %v3772_v9 = vsel %vm3739_vm6, %v3706_v26, %v3771_v7  ;;  %v3455_v19 = vmax.f32 %v2764_v28, %v5204_v47  ;;  %v2767_v56 = vmax.f32 %v2735_v63, 0.0  ;;  %5415 = vrot.lane.b32.xlu0 %v5414_v29, %s5576_s18  ;;  %v2604_v41 = vpop.permute.xlu1 %2603  ;;  %v2737_v40 = vadd.f32 %v7664_v0, %v2701_v35  ;;  %v8967_v35 = vld [vmem:[#allocation34_spill] sm:$0xff] }
 0x386   : > { %v3456_v33 = vmax.f32 %v2862_v34, %v5205_v10  ;;  %v3457_v45 = vmax.f32 %v2863_v2, %v5206_v59  ;;  %v3458_v44 = vmax.f32 %v2864_v11, %v5207_v55  ;;  %v2444_v13 = vadd.f32 %v7686_v48, %v8966_v15 }
 0x387   : > { %v3551_v12 = vmax.f32 %v3455_v19, %v3463_v17  ;;  %v2871_v23 = vrot.slane %v2767_v56, 2  ;;  %v2872_v38 = vrot.slane %v2767_v56, 4  ;;  %v2873_v3 = vrot.slane %v2767_v56, 6 }
 0x388   : > { %v3552_v42 = vmax.f32 %v3456_v33, %v3464_v16  ;;  %v3553_v58 = vmax.f32 %v3457_v45, %v3465_v57  ;;  %v3554_v61 = vmax.f32 %v3458_v44, %v3466_v31  ;;  %v5216_v25 = vrot.slane %v2767_v56, 9  ;;  %v7740_v54 = vpop.permute.xlu0 %2355  ;;  %v7754_v46 = vpop.permute.xlu2 %2613 }
 0x389   : > { %v3707_v60 = vperm.slane %v3551_v12, 0  ;;  %v5217_v8 = vrot.slane %v2871_v23, 9  ;;  %v5218_v22 = vrot.slane %v2872_v38, 9  ;;  %v2673_v36 = vmul.f32 %v7671_v62, %v2619_v24 }
 0x38a   : > { %v3708_v6 = vperm.slane %v3552_v42, 0  ;;  %v3709_v39 = vperm.slane %v3553_v58, 0  ;;  %v3710_v17 = vperm.slane %v3554_v61, 0  ;;  %v5219_v27 = vrot.slane %v2873_v3, 9 }
 0x38b   : > { %v3773_v28 = vsel %vm3741_vm9, %v3707_v60, %v3772_v9  ;;  %v3467_v16 = vmax.f32 %v2767_v56, %v5216_v25  ;;  %v3468_v21 = vmax.f32 %v2871_v23, %v5217_v8  ;;  %v2769_v53 = vmax.f32 %v2737_v40, 0.0 }
 0x38c   : > { %v3774_v57 = vsel %vm3743_vm10, %v3708_v6, %v3773_v28  ;;  %v2410_v48 = vmul.f32 %v7634_v4, %v7710_v14  ;;  %v2668_v37 = vmul.f32 %v7671_v62, %v7701_v43  ;;  %v2670_v30 = vmul.f32 %v7671_v62, %v2604_v41 }
 0x38d   : > { %v3775_v18 = vsel %vm3745_vm11, %v3709_v39, %v3774_v57  ;;  %v2415_v26 = vmul.f32 %v7634_v4, %v2361_v51  ;;  %v7751_v52 = vpop.permute.xlu1 %2608  ;;  %v2877_v2 = vrot.slane %v2769_v53, 2  ;;  %v2878_v11 = vrot.slane %v2769_v53, 4  ;;  %v8968_v51 = vld [vmem:[#allocation40_spill] sm:$0xff] }
 0x38e   : > { %v3776_v34 = vsel %vm3747_vm12, %v3710_v17, %v3775_v18  ;;  %v2879_v47 = vrot.slane %v2769_v53, 6  ;;  %v3469_v14 = vmax.f32 %v2872_v38, %v5218_v22  ;;  %v5224_v63 = vrot.slane %v2769_v53, 9 }
 0x38f   : > { %3811 = vst.msk [vmem:[#allocation3 + $0x51] sm:$0xff] %vm3579_vm3, %v3776_v34  ;;  %v2442_v29 = vadd.f32 %v2410_v48, %v8967_v35  ;;  %v2702_v43 = vadd.f32 %v2670_v30, %v2444_v13  ;;  %v5225_v7 = vrot.slane %v2877_v2, 9  ;;  %v5226_v10 = vrot.slane %v2878_v11, 9  ;;  %v4161_v30 = vld [vmem:[%s8456_s3 + $0xf8] sm:$0xff] }
 0x390   : > { %v5227_v59 = vrot.slane %v2879_v47, 9  ;;  %v2447_v55 = vadd.f32 %v2415_v26, %v8968_v51  ;;  %v3470_v24 = vmax.f32 %v2873_v3, %v5219_v27  ;;  %v3475_v9 = vmax.f32 %v2769_v53, %v5224_v63  ;;  %v7766_v61 = vpop.permute.xlu0 %2623  ;;  %4235 = vmatpush.msra.mxu1 %v4161_v30 }
 0x391   : > { %v2700_v31 = vadd.f32 %v2668_v37, %v2442_v29  ;;  %v2738_v19 = vadd.f32 %v7664_v0, %v2702_v43  ;;  %v3476_v56 = vmax.f32 %v2877_v2, %v5225_v7  ;;  %v3477_v41 = vmax.f32 %v2878_v11, %v5226_v10  ;;  %v4145_v37 = vld [vmem:[%s8456_s3 + $0x78] sm:$0xff] }
 0x392   : > { %v3478_v33 = vmax.f32 %v2879_v47, %v5227_v59  ;;  %v2705_v45 = vadd.f32 %v2673_v36, %v2447_v55  ;;  %v7762_v44 = vmul.f32 %v7634_v4, %v7707_v49  ;;  %v3555_v40 = vmax.f32 %v3467_v16, %v3475_v9  ;;  %4194 = vmatpush.msra.mxu0 %v4145_v37 }
 0x393   : > { %v2736_v12 = vadd.f32 %v7664_v0, %v2700_v31  ;;  %v2770_v23 = vmax.f32 %v2738_v19, 0.0  ;;  %v3556_v38 = vmax.f32 %v3468_v21, %v3476_v56  ;;  %v3557_v42 = vmax.f32 %v3469_v14, %v3477_v41  ;;  %v2381_v21 = vpop.permute.xlu2 %2380 }
 0x394   : > { %v3558_v58 = vmax.f32 %v3470_v24, %v3478_v33  ;;  %v2741_v3 = vadd.f32 %v7664_v0, %v2705_v45  ;;  %v3711_v25 = vperm.slane %v3555_v40, 0 }
 0x395   : > { %v2768_v15 = vmax.f32 %v2736_v12, 0.0  ;;  %v2880_v13 = vrot.slane %v2770_v23, 2  ;;  %v2881_v60 = vrot.slane %v2770_v23, 4  ;;  %v7768_v8 = vpop.permute.xlu1 %2365  ;;  %v3712_v6 = vperm.slane %v3556_v38, 0 }
 0x396   : > { %v3713_v49 = vperm.slane %v3557_v42, 0  ;;  %v3714_v39 = vperm.slane %v3558_v58, 0  ;;  %v2882_v22 = vrot.slane %v2770_v23, 6  ;;  %v7770_v36 = vld [vmem:[#allocation3 + $0x52] sm:$0xff]  ;;  %v5228_v53 = vrot.slane %v2770_v23, 9 }
 0x397   : > { %v2874_v17 = vrot.slane %v2768_v15, 2  ;;  %v2875_v28 = vrot.slane %v2768_v15, 4  ;;  %v2876_v27 = vrot.slane %v2768_v15, 6  ;;  %v5220_v16 = vrot.slane %v2768_v15, 9  ;;  %5267 = vmatmul.msk.f32.gmra.mxu2 %vm3579_vm3, %v7770_v36  ;;  %v7783_v29 = vld [vmem:[#allocation3 + $0x51] sm:$0xff] }
 0x398   : > { %v3777_v57 = vsel %vm3735_vm4, %v3712_v6, %v3711_v25  ;;  %v5229_v48 = vrot.slane %v2880_v13, 9  ;;  %v5230_v18 = vrot.slane %v2881_v60, 9  ;;  %v5231_v63 = vrot.slane %v2882_v22, 9  ;;  %v7785_v43 = vld [vmem:[#allocation3 + $0x50] sm:$0xff]  ;;  %v2629_v38 = vpop.permute.xlu0 %2628  ;;  %v4144_v42 = vld [vmem:[%s8456_s3 + $0x70] sm:$0xff] }
 0x399   : > { %v3778_v26 = vsel %vm3737_vm5, %v3713_v49, %v3777_v57  ;;  %v5221_v34 = vrot.slane %v2874_v17, 9  ;;  %v5222_v2 = vrot.slane %v2875_v28, 9  ;;  %v5223_v11 = vrot.slane %v2876_v27, 9  ;;  %v4160_v58 = vld [vmem:[%s8456_s3 + $0xf0] sm:$0xff]  ;;  %4195 = vmatpush.msra.mxu0 %v4144_v42  ;;  %v4159_v6 = vld [vmem:[%s8456_s3 + $0xe8] sm:$0xff] }
 0x39a   : > { %v3779_v47 = vsel %vm3739_vm6, %v3714_v39, %v3778_v26  ;;  %v3471_v14 = vmax.f32 %v2768_v15, %v5220_v16  ;;  %v3479_v35 = vmax.f32 %v2770_v23, %v5228_v53  ;;  %v3480_v51 = vmax.f32 %v2880_v13, %v5229_v48  ;;  %4236 = vmatpush.msra.mxu1 %v4160_v58  ;;  %v4142_v53 = vld [vmem:[%s8456_s3 + $0x60] sm:$0xff] }
 0x39b   : > { %v3472_v7 = vmax.f32 %v2874_v17, %v5221_v34  ;;  %v3473_v10 = vmax.f32 %v2875_v28, %v5222_v2  ;;  %v3474_v59 = vmax.f32 %v2876_v27, %v5223_v11  ;;  %v3481_v55 = vmax.f32 %v2881_v60, %v5230_v18  ;;  %v4143_v60 = vld [vmem:[%s8456_s3 + $0x68] sm:$0xff]  ;;  %v7820_v27 = vpop.permute.xlu2 %2375  ;;  %v4158_v48 = vld [vmem:[%s8456_s3 + $0xe0] sm:$0xff]  ;;  %v4157_v11 = vld [vmem:[%s8456_s3 + $0xd8] sm:$0xff] }
 0x39c   : > { %v3482_v24 = vmax.f32 %v2882_v22, %v5231_v63  ;;  %v3559_v9 = vmax.f32 %v3471_v14, %v3479_v35  ;;  %v7787_v31 = vmax.f32 %v2741_v3, 0.0  ;;  %v5424_v56 = vpack.i.bf16 %v7783_v29, %v7718_v50  ;;  %4196 = vmatpush.msra.mxu0 %v4143_v60  ;;  %4237 = vmatpush.msra.mxu1 %v4159_v6  ;;  %v4154_v60 = vld [vmem:[%s8456_s3 + $0xc0] sm:$0xff] }
 0x39d   : > { %v3560_v19 = vmax.f32 %v3472_v7, %v3480_v51  ;;  %v5419_v41 = vpack.i.bf16 %v7785_v43, %v7641_v5  ;;  %v5429_v33 = vpack.i.bf16 %v7770_v36, %v7716_v20  ;;  %v3561_v45 = vmax.f32 %v3473_v10, %v3481_v55  ;;  %v2371_v23 = vpop.permute.xlu1 %2370  ;;  %v8969_v5 = vld [vmem:[#allocation35_spill] sm:$0xff]  ;;  %v4156_v51 = vld [vmem:[%s8456_s3 + $0xd0] sm:$0xff] }
 0x39e   : > { %v3562_v40 = vmax.f32 %v3474_v59, %v3482_v24  ;;  %v3715_v12 = vperm.slane %v3559_v9, 0  ;;  %v2889_v3 = vrot.slane %v7787_v31, 2  ;;  %5425 = vrot.lane.b32.xlu2 %v5424_v56, %s5577_s19  ;;  %v2445_v25 = vadd.f32 %v7762_v44, %v8969_v5  ;;  %4197 = vmatpush.msra.mxu0 %v4142_v53  ;;  %v4140_v59 = vld [vmem:[%s8456_s3 + $0x50] sm:$0xff]  ;;  %v8972_v55 = vld [vmem:[#allocation39_spill] sm:$0xff] }
 0x39f   : > { %v3716_v50 = vperm.slane %v3560_v19, 0  ;;  %5420 = vrot.lane.b32.xlu1 %v5419_v41, %s5578_s20  ;;  %v3717_v15 = vperm.slane %v3561_v45, 0  ;;  %5430 = vrot.lane.b32.xlu0 %v5429_v33, %s5576_s18  ;;  %v2890_v22 = vrot.slane %v7787_v31, 4  ;;  %v2891_v44 = vrot.slane %v7787_v31, 6  ;;  %v8973_v19 = vld [vmem:[#allocation44_spill] sm:$0xff] }
 0x3a0   : > { %v3780_v13 = vsel %vm3741_vm9, %v3715_v12, %v3779_v47  ;;  %v3718_v49 = vperm.slane %v3562_v40, 0  ;;  %v2672_v17 = vmul.f32 %v7671_v62, %v7754_v46  ;;  %v2671_v16 = vmul.f32 %v7671_v62, %v7751_v52  ;;  %v8970_v52 = vld [vmem:[#allocation56_spill] sm:$0xff]  ;;  %4238 = vmatpush.msra.mxu1 %v4158_v48  ;;  %v4137_v48 = vld [vmem:[%s8456_s3 + $0x38] sm:$0xff] }
 0x3a1   : > { %v3781_v39 = vsel %vm3743_vm10, %v3716_v50, %v3780_v13  ;;  %v2414_v57 = vmul.f32 %v7634_v4, %v7740_v54  ;;  %v2419_v46 = vmul.f32 %v7634_v4, %v2381_v21  ;;  %v5240_v37 = vrot.slane %v7787_v31, 9  ;;  %v4141_v21 = vld [vmem:[%s8456_s3 + $0x58] sm:$0xff]  ;;  %v4138_v13 = vld [vmem:[%s8456_s3 + $0x40] sm:$0xff] }
 0x3a2   : > { %v3782_v28 = vsel %vm3745_vm11, %v3717_v15, %v3781_v39  ;;  %v5241_v30 = vrot.slane %v2889_v3, 9  ;;  %v2703_v54 = vadd.f32 %v2671_v16, %v2445_v25  ;;  %v2416_v34 = vmul.f32 %v7634_v4, %v7768_v8  ;;  %4198 = vmatpush.msra.mxu0 %v4141_v21  ;;  %4239 = vmatpush.msra.mxu1 %v4157_v11  ;;  %v4136_v21 = vld [vmem:[%s8456_s3 + $0x30] sm:$0xff] }
 0x3a3   : > { %v3783_v18 = vsel %vm3747_vm12, %v3718_v49, %v3782_v28  ;;  %v2446_v26 = vadd.f32 %v2414_v57, %v8970_v52  ;;  %v2674_v2 = vmul.f32 %v7671_v62, %v7766_v61  ;;  %v5242_v47 = vrot.slane %v2890_v22, 9  ;;  %v8971_v61 = vld [vmem:[#allocation37_spill] sm:$0xff]  ;;  %v2644_v53 = vpop.permute.xlu2 %2643  ;;  %v4152_v11 = vld [vmem:[%s8456_s3 + $0xb0] sm:$0xff] }
 0x3a4   : > { %3812 = vst.msk [vmem:[#allocation3 + $0x61] sm:$0xff] %vm3579_vm3, %v3783_v18  ;;  %v5243_v14 = vrot.slane %v2891_v44, 9  ;;  %v2417_v63 = vmul.f32 %v7634_v4, %v2371_v23  ;;  %v2675_v35 = vmul.f32 %v7671_v62, %v2629_v38  ;;  %v2739_v8 = vadd.f32 %v7664_v0, %v2703_v54  ;;  %v2386_v23 = vpop.permute.xlu0 %2385  ;;  %v4139_v38 = vld [vmem:[%s8456_s3 + $0x48] sm:$0xff]  ;;  %4199 = vmatpush.msra.mxu0 %v4140_v59 }
 0x3a5   : > { %v2704_v7 = vadd.f32 %v2672_v17, %v2446_v26  ;;  %v2448_v10 = vadd.f32 %v2416_v34, %v8971_v61  ;;  %v7858_v24 = vadd.f32 %v2419_v46, %v8972_v55  ;;  %v7861_v9 = vmax.f32 %v7787_v31, %v5240_v37  ;;  %v2639_v12 = vpop.permute.xlu1 %2638  ;;  %v4155_v31 = vld [vmem:[%s8456_s3 + $0xc8] sm:$0xff]  ;;  %4240 = vmatpush.msra.mxu1 %v4156_v51  ;;  %v4153_v46 = vld [vmem:[%s8456_s3 + $0xb8] sm:$0xff] }
 0x3a6   : > { %v2449_v56 = vadd.f32 %v2417_v63, %v8973_v19  ;;  %v7864_v41 = vmax.f32 %v2889_v3, %v5241_v30  ;;  %v2771_v33 = vmax.f32 %v2739_v8, 0.0  ;;  %v3493_v42 = vmax.f32 %v2890_v22, %v5242_v47  ;;  %4200 = vmatpush.msra.mxu0 %v4139_v38  ;;  %v4135_v51 = vld [vmem:[%s8456_s3 + $0x28] sm:$0xff] }
 0x3a7   : > { %v2740_v45 = vadd.f32 %v7664_v0, %v2704_v7  ;;  %v2706_v40 = vadd.f32 %v2674_v2, %v2448_v10  ;;  %v7873_v58 = vmax.f32 %v2891_v44, %v5243_v14  ;;  %v2677_v22 = vmul.f32 %v7671_v62, %v2639_v12  ;;  %4241 = vmatpush.msra.mxu1 %v4155_v31  ;;  %v4150_v12 = vld [vmem:[%s8456_s3 + $0xa0] sm:$0xff] }
 0x3a8   : > { %v2707_v50 = vadd.f32 %v2675_v35, %v2449_v56  ;;  %v2883_v3 = vrot.slane %v2771_v33, 2  ;;  %v2884_v5 = vrot.slane %v2771_v33, 4  ;;  %v2885_v25 = vrot.slane %v2771_v33, 6  ;;  %4201 = vmatpush.msra.mxu0 %v4138_v13  ;;  %v8974_v35 = vld [vmem:[#allocation41_spill] sm:$0xff] }
 0x3a9   : > { %v5232_v15 = vrot.slane %v2771_v33, 9  ;;  %v7881_v6 = vmax.f32 %v2740_v45, 0.0  ;;  %v2742_v49 = vadd.f32 %v7664_v0, %v2706_v40  ;;  %v2420_v44 = vmul.f32 %v7634_v4, %v2386_v23  ;;  %4242 = vmatpush.msra.mxu1 %v4154_v60  ;;  %v4134_v40 = vld [vmem:[%s8456_s3 + $0x20] sm:$0xff] }
 0x3aa   : > { %v5233_v17 = vrot.slane %v2883_v3, 9  ;;  %v5234_v28 = vrot.slane %v2884_v5, 9  ;;  %v5235_v16 = vrot.slane %v2885_v25, 9  ;;  %v2743_v54 = vadd.f32 %v7664_v0, %v2707_v50  ;;  %4202 = vmatpush.msra.mxu0 %v4137_v48 }
 0x3ab   : > { %v7884_v39 = vld [vmem:[#allocation3 + $0x62] sm:$0xff]  ;;  %v3483_v57 = vmax.f32 %v2771_v33, %v5232_v15  ;;  %v2886_v18 = vrot.slane %v7881_v6, 2  ;;  %v2887_v37 = vrot.slane %v7881_v6, 4  ;;  %v2888_v30 = vrot.slane %v7881_v6, 6  ;;  %4243 = vmatpush.msra.mxu1 %v4153_v46 }
 0x3ac   : > { %5268 = vmatmul.msk.f32.gmra.mxu2 %vm3579_vm3, %v7884_v39  ;;  %v3484_v52 = vmax.f32 %v2883_v3, %v5233_v17  ;;  %v3485_v26 = vmax.f32 %v2884_v5, %v5234_v28  ;;  %v3486_v34 = vmax.f32 %v2885_v25, %v5235_v16  ;;  %v7909_v47 = vmul.f32 %v7634_v4, %v7820_v27  ;;  %v4151_v4 = vld [vmem:[%s8456_s3 + $0xa8] sm:$0xff]  ;;  %v4133_v5 = vld [vmem:[%s8456_s3 + $0x18] sm:$0xff]  ;;  %v4132_v28 = vld [vmem:[%s8456_s3 + $0x10] sm:$0xff] }
 0x3ad   : > { %v3563_v2 = vmax.f32 %v3483_v57, %v7861_v9  ;;  %v5236_v14 = vrot.slane %v7881_v6, 9  ;;  %v2678_v63 = vmul.f32 %v7671_v62, %v2644_v53  ;;  %v2452_v8 = vadd.f32 %v2420_v44, %v8974_v35  ;;  %4203 = vmatpush.msra.mxu0 %v4136_v21  ;;  %4244 = vmatpush.msra.mxu1 %v4152_v11  ;;  %v4149_v25 = vld [vmem:[%s8456_s3 + $0x98] sm:$0xff] }
 0x3ae   : > { %v3564_v7 = vmax.f32 %v3484_v52, %v7864_v41  ;;  %v3565_v61 = vmax.f32 %v3485_v26, %v3493_v42  ;;  %v3566_v10 = vmax.f32 %v3486_v34, %v7873_v58  ;;  %v5237_v59 = vrot.slane %v2886_v18, 9  ;;  %v7945_v46 = vld [vmem:[#allocation3 + $0x61] sm:$0xff]  ;;  %v4131_v34 = vld [vmem:[%s8456_s3 + $0x8] sm:$0xff] }
 0x3af   : > { %v5238_v27 = vrot.slane %v2887_v37, 9  ;;  %v5239_v55 = vrot.slane %v2888_v30, 9  ;;  %v2774_v9 = vmax.f32 %v2742_v49, 0.0  ;;  %v2709_v19 = vadd.f32 %v2677_v22, %v7858_v24  ;;  %4204 = vmatpush.msra.mxu0 %v4135_v51  ;;  %4245 = vmatpush.msra.mxu1 %v4151_v4 }
 0x3b0   : > { %v3719_v56 = vperm.slane %v3563_v2, 0  ;;  %v3720_v41 = vperm.slane %v3564_v7, 0  ;;  %v3721_v33 = vperm.slane %v3565_v61, 0  ;;  %v7923_v45 = vmax.f32 %v2743_v54, 0.0 }
 0x3b1   : > { %v2892_v23 = vrot.slane %v2774_v9, 2  ;;  %v2893_v38 = vrot.slane %v2774_v9, 4  ;;  %v2894_v31 = vrot.slane %v2774_v9, 6  ;;  %v5244_v42 = vrot.slane %v2774_v9, 9  ;;  %4205 = vmatpush.msra.mxu0 %v4134_v40  ;;  %4246 = vmatpush.msra.mxu1 %v4150_v12 }
 0x3b2   : > { %v3722_v24 = vperm.slane %v3566_v10, 0  ;;  %v3784_v58 = vsel %vm3735_vm4, %v3720_v41, %v3719_v56  ;;  %v3487_v50 = vmax.f32 %v7881_v6, %v5236_v14  ;;  %v3488_v3 = vmax.f32 %v2886_v18, %v5237_v59  ;;  %v7947_v18 = vld [vmem:[#allocation3 + $0x60] sm:$0xff]  ;;  %v4146_v41 = vld [vmem:[%s8456_s3 + $0x80] sm:$0xff] }
 0x3b3   : > { %v3785_v15 = vsel %vm3737_vm5, %v3721_v33, %v3784_v58  ;;  %v5245_v13 = vrot.slane %v2892_v23, 9  ;;  %v5246_v60 = vrot.slane %v2893_v38, 9  ;;  %v5247_v49 = vrot.slane %v2894_v31, 9  ;;  %4206 = vmatpush.msra.mxu0 %v4133_v5  ;;  %4247 = vmatpush.msra.mxu1 %v4149_v25  ;;  %v8975_v58 = vld [vmem:[#allocation45_spill] sm:$0xff] }
 0x3b4   : > { %v3786_v22 = vsel %vm3739_vm6, %v3722_v24, %v3785_v15  ;;  %v3489_v44 = vmax.f32 %v2887_v37, %v5238_v27  ;;  %v3490_v6 = vmax.f32 %v2888_v30, %v5239_v55  ;;  %v3495_v17 = vmax.f32 %v2774_v9, %v5244_v42  ;;  %v4148_v37 = vld [vmem:[%s8456_s3 + $0x90] sm:$0xff]  ;;  %v4130_v55 = vld [vmem:[%s8456_s3] sm:$0xff] }
 0x3b5   : > { %v3496_v16 = vmax.f32 %v2892_v23, %v5245_v13  ;;  %v3497_v57 = vmax.f32 %v2893_v38, %v5246_v60  ;;  %v3498_v53 = vmax.f32 %v2894_v31, %v5247_v49  ;;  %v2895_v48 = vrot.slane %v7923_v45, 2  ;;  %4207 = vmatpush.msra.mxu0 %v4132_v28  ;;  %4248 = vmatpush.msra.mxu1 %v4148_v37 }
 0x3b6   : > { %v3567_v30 = vmax.f32 %v3487_v50, %v3495_v17  ;;  %v2896_v54 = vrot.slane %v7923_v45, 4  ;;  %v2745_v52 = vadd.f32 %v7664_v0, %v2709_v19  ;;  %v2710_v26 = vadd.f32 %v2678_v63, %v2452_v8  ;;  %v2634_v63 = vpop.permute.xlu1 %2633  ;;  %v4147_v8 = vld [vmem:[%s8456_s3 + $0x88] sm:$0xff] }
 0x3b7   : > { %v3568_v2 = vmax.f32 %v3488_v3, %v3496_v16  ;;  %v3569_v21 = vmax.f32 %v3489_v44, %v3497_v57  ;;  %v3570_v11 = vmax.f32 %v3490_v6, %v3498_v53  ;;  %v2897_v14 = vrot.slane %v7923_v45, 6  ;;  %4208 = vmatpush.msra.mxu0 %v4131_v34  ;;  %4249 = vmatpush.msra.mxu1 %v4147_v8 }
 0x3b8   : > { %v3723_v35 = vperm.slane %v3567_v30, 0  ;;  %v5248_v7 = vrot.slane %v7923_v45, 9  ;;  %v5439_v61 = vpack.i.bf16 %v7945_v46, %v7785_v43  ;;  %v5434_v10 = vpack.i.bf16 %v7947_v18, %v7714_v1 }
 0x3b9   : > { %v3724_v59 = vperm.slane %v3568_v2, 0  ;;  %v3725_v51 = vperm.slane %v3569_v21, 0  ;;  %v5249_v4 = vrot.slane %v2895_v48, 9  ;;  %v5444_v27 = vpack.i.bf16 %v7884_v39, %v7783_v29  ;;  %4209 = vmatpush.msra.mxu0 %v4130_v55  ;;  %4250 = vmatpush.msra.mxu1 %v4146_v41 }
 0x3ba   : > { %v3787_v9 = vsel %vm3741_vm9, %v3723_v35, %v3786_v22  ;;  %v5250_v1 = vrot.slane %v2896_v54, 9  ;;  %5440 = vrot.lane.b32.xlu2 %v5439_v61, %s5577_s19  ;;  %5435 = vrot.lane.b32.xlu1 %v5434_v10, %s5578_s20  ;;  %v2777_v19 = vmax.f32 %v2745_v52, 0.0  ;;  %v2746_v56 = vadd.f32 %v7664_v0, %v2710_v26  ;;  %v7987_v26 = vpop.permute.xlu2 %5380 }
 0x3bb   : > { %v3726_v33 = vperm.slane %v3570_v11, 0  ;;  %v3788_v40 = vsel %vm3743_vm10, %v3724_v59, %v3787_v9  ;;  %v5251_v12 = vrot.slane %v2897_v14, 9  ;;  %5445 = vrot.lane.b32.xlu0 %v5444_v27, %s5576_s18  ;;  %v2676_v23 = vmul.f32 %v7671_v62, %v2634_v63 }
 0x3bc   : > { %v3789_v38 = vsel %vm3745_vm11, %v3725_v51, %v3788_v40  ;;  %v2901_v31 = vrot.slane %v2777_v19, 2  ;;  %v2902_v42 = vrot.slane %v2777_v19, 4  ;;  %v2903_v24 = vrot.slane %v2777_v19, 6 }
 0x3bd   : > { %v2450_v50 = vadd.f32 %v7909_v47, %v8975_v58  ;;  %v3790_v3 = vsel %vm3747_vm12, %v3726_v33, %v3789_v38  ;;  %v5256_v5 = vrot.slane %v2777_v19, 9  ;;  %v2778_v25 = vmax.f32 %v2746_v56, 0.0  ;;  %v3815_v58 = vld [vmem:[#allocation3] sm:$0xff] }
 0x3be   : > { %3813 = vst.msk [vmem:[#allocation3 + $0x71] sm:$0xff] %vm3579_vm3, %v3790_v3  ;;  %v3499_v15 = vmax.f32 %v7923_v45, %v5248_v7  ;;  %v5257_v62 = vrot.slane %v2901_v31, 9  ;;  %v5258_v13 = vrot.slane %v2902_v42, 9  ;;  %v5259_v60 = vrot.slane %v2903_v24, 9 }
 0x3bf   : > { %v3500_v49 = vmax.f32 %v2895_v48, %v5249_v4  ;;  %v3501_v22 = vmax.f32 %v2896_v54, %v5250_v1  ;;  %v3502_v44 = vmax.f32 %v2897_v14, %v5251_v12  ;;  %v3507_v6 = vmax.f32 %v2777_v19, %v5256_v5  ;;  %v5371_v4 = vpop.permute.xlu0 %5370 }
 0x3c0   : > { %v3508_v17 = vmax.f32 %v2901_v31, %v5257_v62  ;;  %v3509_v28 = vmax.f32 %v2902_v42, %v5258_v13  ;;  %v3510_v16 = vmax.f32 %v2903_v24, %v5259_v60  ;;  %v2708_v47 = vadd.f32 %v2676_v23, %v2450_v50 }
 0x3c1   : > { %v3571_v57 = vmax.f32 %v3499_v15, %v3507_v6  ;;  %v2904_v53 = vrot.slane %v2778_v25, 2  ;;  %v2905_v34 = vrot.slane %v2778_v25, 4  ;;  %v2906_v45 = vrot.slane %v2778_v25, 6  ;;  %v3847_v6 = vld [vmem:[#allocation3 + $0x11] sm:$0xff] }
 0x3c2   : > { %v3572_v37 = vmax.f32 %v3500_v49, %v3508_v17  ;;  %v3573_v30 = vmax.f32 %v3501_v22, %v3509_v28  ;;  %v3574_v52 = vmax.f32 %v3502_v44, %v3510_v16  ;;  %v2744_v48 = vadd.f32 %v7664_v0, %v2708_v47 }
 0x3c3   : > { %v3727_v2 = vperm.slane %v3571_v57, 0  ;;  %v5260_v14 = vrot.slane %v2778_v25, 9  ;;  %v5261_v35 = vrot.slane %v2904_v53, 9  ;;  %v5382_v7 = vunpack.i.l.bf16 %v7987_v26 }
 0x3c4   : > { %v3728_v21 = vperm.slane %v3572_v37, 0  ;;  %v3729_v11 = vperm.slane %v3573_v30, 0  ;;  %v3730_v54 = vperm.slane %v3574_v52, 0  ;;  %v2776_v59 = vmax.f32 %v2744_v48, 0.0 }
 0x3c5   : > { %v7991_v61 = vld [vmem:[#allocation3 + $0x72] sm:$0xff]  ;;  %v5262_v55 = vrot.slane %v2905_v34, 9  ;;  %v5263_v9 = vrot.slane %v2906_v45, 9  ;;  %v3511_v40 = vmax.f32 %v2778_v25, %v5260_v14  ;;  %v5372_v23 = vunpack.i.l.bf16 %v5371_v4 }
 0x3c6   : > { %v7993_v10 = vld [vmem:[#allocation3 + $0x71] sm:$0xff]  ;;  %v3791_v8 = vsel %vm3735_vm4, %v3728_v21, %v3727_v2  ;;  %5269 = vmatmul.msk.f32.gmra.mxu2 %vm3579_vm3, %v7991_v61  ;;  %v5459_v1 = vpack.i.bf16 %v7991_v61, %v7945_v46  ;;  %v2898_v56 = vrot.slane %v2776_v59, 2  ;;  %v2899_v41 = vrot.slane %v2776_v59, 4 }
 0x3c7   : > { %v7995_v63 = vld [vmem:[#allocation3 + $0x70] sm:$0xff]  ;;  %v5454_v0 = vpack.i.bf16 %v7993_v10, %v7947_v18  ;;  %v3792_v27 = vsel %vm3737_vm5, %v3729_v11, %v3791_v8  ;;  %v2900_v33 = vrot.slane %v2776_v59, 6  ;;  %v5252_v12 = vrot.slane %v2776_v59, 9 }
 0x3c8   : > { %v5449_v51 = vpack.i.bf16 %v7995_v63, %v7770_v36  ;;  %v3793_v19 = vsel %vm3739_vm6, %v3730_v54, %v3792_v27  ;;  %5460 = vrot.lane.b32.xlu0 %v5459_v1, %s5576_s18  ;;  %v5373_v36 = vunpack.i.h.bf16 %v5371_v4  ;;  %v3512_v38 = vmax.f32 %v2904_v53, %v5261_v35  ;;  %v5396_v35 = vpop.permute.xlu2 %5395  ;;  %v3848_v4 = vld [vmem:[#allocation3 + $0x21] sm:$0xff] }
 0x3c9   : > { %5455 = vrot.lane.b32.xlu2 %v5454_v0, %s5577_s19  ;;  %v5253_v31 = vrot.slane %v2898_v56, 9  ;;  %v5254_v42 = vrot.slane %v2899_v41, 9  ;;  %v5255_v24 = vrot.slane %v2900_v33, 9  ;;  %v3513_v50 = vmax.f32 %v2905_v34, %v5262_v55 }
 0x3ca   : > { %5450 = vrot.lane.b32.xlu1 %v5449_v51, %s5578_s20  ;;  %v3514_v3 = vmax.f32 %v2906_v45, %v5263_v9  ;;  %v3503_v5 = vmax.f32 %v2776_v59, %v5252_v12  ;;  %v4080_v44 = vsel %vm3579_vm3, %v3815_v58, %v5372_v23  ;;  %v4106_v47 = vsel %vm3579_vm3, %v3847_v6, %v5373_v36  ;;  %v3816_v51 = vld [vmem:[#allocation3 + $0x10] sm:$0xff] }
 0x3cb   : > { %v3504_v62 = vmax.f32 %v2898_v56, %v5253_v31  ;;  %v3505_v13 = vmax.f32 %v2899_v41, %v5254_v42  ;;  %v3506_v60 = vmax.f32 %v2900_v33, %v5255_v24  ;;  %v5383_v57 = vunpack.i.h.bf16 %v7987_v26  ;;  %v3879_v24 = vld [vmem:[#allocation3 + $0x91] sm:$0xff] }
 0x3cc   : > { %v3575_v25 = vmax.f32 %v3503_v5, %v3511_v40  ;;  %v5397_v27 = vunpack.i.l.bf16 %v5396_v35 }
 0x3cd   : > { %v5376_v15 = vpop.permute.xlu1 %5375  ;;  %v3576_v17 = vmax.f32 %v3504_v62, %v3512_v38  ;;  %v3577_v28 = vmax.f32 %v3505_v13, %v3513_v50  ;;  %v3578_v16 = vmax.f32 %v3506_v60, %v3514_v3 }
 0x3ce   : > { %v5378_v49 = vunpack.i.h.bf16 %v5376_v15  ;;  %v5377_v22 = vunpack.i.l.bf16 %v5376_v15  ;;  %v3731_v53 = vperm.slane %v3575_v25, 0  ;;  %v3817_v25 = vld [vmem:[#allocation3 + $0x20] sm:$0xff] }
 0x3cf   : > { %v3732_v52 = vperm.slane %v3576_v17, 0  ;;  %v3733_v34 = vperm.slane %v3577_v28, 0  ;;  %v3734_v11 = vperm.slane %v3578_v16, 0  ;;  %v5386_v14 = vpop.permute.xlu0 %5385 }
 0x3d0   : > { %v4089_v37 = vsel %vm4088_vm13, %v4080_v44, %v5377_v22  ;;  %v4114_v30 = vsel %vm4088_vm13, %v4106_v47, %v5378_v49  ;;  %v3794_v2 = vsel %vm3741_vm9, %v3731_v53, %v3793_v19  ;;  %v5387_v8 = vunpack.i.l.bf16 %v5386_v14  ;;  %v3849_v22 = vld [vmem:[#allocation3 + $0x31] sm:$0xff] }
 0x3d1   : > { %v4098_v45 = vsel %vm4097_vm14, %v4089_v37, %v5382_v7  ;;  %v4122_v21 = vsel %vm4097_vm14, %v4114_v30, %v5383_v57  ;;  %v3795_v48 = vsel %vm3743_vm10, %v3732_v52, %v3794_v2  ;;  %v5388_v59 = vunpack.i.h.bf16 %v5386_v14 }
 0x3d2   : > { %4210 = vmatmul.f32.vlgmr.msra.gmra.mxu0 %v4098_v45  ;;  %4251 = vmatmul.f32.vlgmr.msra.gmra.mxu1 %v4122_v21  ;;  %v3796_v26 = vsel %vm3745_vm11, %v3733_v34, %v3795_v48  ;;  %v5398_v7 = vunpack.i.h.bf16 %v5396_v35  ;;  %v4081_v41 = vsel %vm3579_vm3, %v3816_v51, %v5387_v8  ;;  %v3818_v21 = vld [vmem:[#allocation3 + $0x30] sm:$0xff] }
 0x3d3   : > { %v3797_v54 = vsel %vm3747_vm12, %v3734_v11, %v3796_v26  ;;  %v4107_v36 = vsel %vm3579_vm3, %v3848_v4, %v5388_v59 }
 0x3d4   : > { %3814 = vst.msk [vmem:[#allocation3 + $0x81] sm:$0xff] %vm3579_vm3, %v3797_v54 }
 0x3db   : > { %v3886_v55 = vld [vmem:[#allocation3 + $0x82] sm:$0xff] }
 0x3dc   : > { %v8023_v9 = vld [vmem:[#allocation3 + $0x81] sm:$0xff]  ;;  %5270 = vmatmul.msk.f32.gmra.mxu2 %vm3579_vm3, %v3886_v55  ;;  %v5474_v12 = vpack.i.bf16 %v3886_v55, %v7993_v10 }
 0x3dd   : > { %v5391_v0 = vpop.permute.xlu1 %5390  ;;  %v3870_v1 = vld [vmem:[#allocation3 + $0x80] sm:$0xff]  ;;  %v5469_v33 = vpack.i.bf16 %v8023_v9, %v7995_v63  ;;  %v5411_v62 = vpop.permute.xlu2 %5410 }
 0x3de   : > { %v5393_v19 = vunpack.i.h.bf16 %v5391_v0  ;;  %v5392_v56 = vunpack.i.l.bf16 %v5391_v0  ;;  %v5464_v40 = vpack.i.bf16 %v3870_v1, %v7884_v39  ;;  %5475 = vrot.lane.b32.xlu0 %v5474_v12, %s5576_s18  ;;  %v3871_v39 = vld [vmem:[#allocation3 + $0x90] sm:$0xff]  ;;  %v5484_v50 = vpack.i.bf16 %v3879_v24, %v3870_v1  ;;  %v5401_v3 = vpop.permute.xlu0 %5400 }
 0x3df   : > { %5470 = vrot.lane.b32.xlu2 %v5469_v33, %s5577_s19  ;;  %v5479_v58 = vpack.i.bf16 %v3871_v39, %v7991_v61  ;;  %v5403_v5 = vunpack.i.h.bf16 %v5401_v3  ;;  %v5402_v15 = vunpack.i.l.bf16 %v5401_v3  ;;  %v5413_v44 = vunpack.i.h.bf16 %v5411_v62  ;;  %v3887_v3 = vld [vmem:[#allocation3 + $0x92] sm:$0xff] }
 0x3e0   : > { %v4090_v23 = vsel %vm4088_vm13, %v4081_v41, %v5392_v56  ;;  %v4115_v38 = vsel %vm4088_vm13, %v4107_v36, %v5393_v19  ;;  %5465 = vrot.lane.b32.xlu1 %v5464_v40, %s5578_s20  ;;  %v5412_v6 = vunpack.i.l.bf16 %v5411_v62 }
 0x3e1   : > { %v4099_v31 = vsel %vm4097_vm14, %v4090_v23, %v5397_v27  ;;  %v4123_v42 = vsel %vm4097_vm14, %v4115_v38, %v5398_v7  ;;  %v4082_v17 = vsel %vm3579_vm3, %v3817_v25, %v5402_v15  ;;  %v4108_v61 = vsel %vm3579_vm3, %v3849_v22, %v5403_v5 }
 0x3e2   : > { %4213 = vmatmul.f32.gmra.mxu0 %v4099_v31  ;;  %4254 = vmatmul.f32.gmra.mxu1 %v4123_v42 }
 0x3e4   : > { %5271 = vmatmul.msk.f32.gmra.mxu2 %vm3579_vm3, %v3887_v3 }
 0x3e7   : > { %5485 = vrot.lane.b32.xlu2 %v5484_v50, %s5577_s19  ;;  %s269_s19 = sand.u32 1, %s5564_s25  }
 0x3e8   : > { %5480 = vrot.lane.b32.xlu1 %v5479_v58, %s5578_s20  ;;  %s5133_s8 = sshll.u32 %s269_s19, 2  ;;  %s5052_s28 = scalar_lea.sflag [#allocation6], %s269_s19 }
 0x3f6   : > { %v5406_v13 = vpop.permute.xlu1 %5405 }
 0x3f7   : > { %v5408_v60 = vunpack.i.h.bf16 %v5406_v13  ;;  %v5407_v49 = vunpack.i.l.bf16 %v5406_v13  ;;  %v5416_v53 = vpop.permute.xlu0 %5415 }
 0x3f8   : > { %v5418_v37 = vunpack.i.h.bf16 %v5416_v53  ;;  %v5417_v30 = vunpack.i.l.bf16 %v5416_v53  ;;  %v5426_v52 = vpop.permute.xlu2 %5425 }
 0x3f9   : > { %v4091_v28 = vsel %vm4088_vm13, %v4082_v17, %v5407_v49  ;;  %v4116_v16 = vsel %vm4088_vm13, %v4108_v61, %v5408_v60  ;;  %v5428_v11 = vunpack.i.h.bf16 %v5426_v52  ;;  %v5427_v48 = vunpack.i.l.bf16 %v5426_v52 }
 0x3fa   : > { %v4100_v47 = vsel %vm4097_vm14, %v4091_v28, %v5412_v6  ;;  %v4124_v57 = vsel %vm4097_vm14, %v4116_v16, %v5413_v44  ;;  %v4083_v26 = vsel %vm3579_vm3, %v3818_v21, %v5417_v30  ;;  %v4109_v54 = vsel %vm3579_vm3, %v7716_v20, %v5418_v37  ;;  %v5509_v20 = vld [vmem:[#allocation3 + $0x40] sm:$0xff] }
 0x3fb   : > { %4216 = vmatmul.f32.gmra.mxu0 %v4100_v47  ;;  %4257 = vmatmul.f32.gmra.mxu1 %v4124_v57 }
 0x411   : > { %v5421_v34 = vpop.permute.xlu1 %5420  ;;  %v5431_v7 = vpop.permute.xlu0 %5430 }
 0x412   : > { %v5423_v45 = vunpack.i.h.bf16 %v5421_v34  ;;  %v5422_v2 = vunpack.i.l.bf16 %v5421_v34  ;;  %v5433_v0 = vunpack.i.h.bf16 %v5431_v7  ;;  %v5432_v51 = vunpack.i.l.bf16 %v5431_v7 }
 0x414   : > { %v4092_v14 = vsel %vm4088_vm13, %v4083_v26, %v5422_v2  ;;  %v4117_v35 = vsel %vm4088_vm13, %v4109_v54, %v5423_v45  ;;  %v5441_v4 = vpop.permute.xlu2 %5440  ;;  %v4084_v41 = vsel %vm3579_vm3, %v5509_v20, %v5432_v51  ;;  %v4110_v33 = vsel %vm3579_vm3, %v7783_v29, %v5433_v0  ;;  %v4293_v54 = vpop.f32.mrf.mxu2 }
 0x415   : > { %v4101_v8 = vsel %vm4097_vm14, %v4092_v14, %v5427_v48  ;;  %v4125_v59 = vsel %vm4097_vm14, %v4117_v35, %v5428_v11  ;;  %v5443_v19 = vunpack.i.h.bf16 %v5441_v4  ;;  %v5442_v56 = vunpack.i.l.bf16 %v5441_v4  ;;  %v4596_v48 = vld [vmem:[#allocation4] sm:$0xf] }
 0x416   : > { %4219 = vmatmul.f32.gmra.mxu0 %v4101_v8  ;;  %4260 = vmatmul.f32.gmra.mxu1 %v4125_v59  ;;  %4637 = vst [vmem:[#allocation1] ss:$2 sm:$0xff] %v4596_v48 }
 0x423   : > { %v5456_v39 = vpop.permute.xlu2 %5455 }
 0x424   : > { %v5458_v5 = vunpack.i.h.bf16 %v5456_v39  ;;  %v5457_v29 = vunpack.i.l.bf16 %v5456_v39 }
 0x42c   : > { %v5436_v27 = vpop.permute.xlu1 %5435 }
 0x42d   : > { %v5438_v55 = vunpack.i.h.bf16 %v5436_v27  ;;  %v5437_v1 = vunpack.i.l.bf16 %v5436_v27  ;;  %v5446_v38 = vpop.permute.xlu0 %5445 }
 0x42e   : > { %v5448_v31 = vunpack.i.h.bf16 %v5446_v38  ;;  %v5447_v42 = vunpack.i.l.bf16 %v5446_v38 }
 0x42f   : > { %v4093_v40 = vsel %vm4088_vm13, %v4084_v41, %v5437_v1  ;;  %v4118_v12 = vsel %vm4088_vm13, %v4110_v33, %v5438_v55 }
 0x430   : > { %v4102_v36 = vsel %vm4097_vm14, %v4093_v40, %v5442_v56  ;;  %v4126_v23 = vsel %vm4097_vm14, %v4118_v12, %v5443_v19  ;;  %v4085_v15 = vsel %vm3579_vm3, %v7785_v43, %v5447_v42  ;;  %v4111_v62 = vsel %vm3579_vm3, %v7945_v46, %v5448_v31  ;;  %v8074_v43 = vld [vmem:[%s8457_s4] ss:$0 sm:$0xff] }
 0x431   : > { %4222 = vmatmul.f32.gmra.mxu0 %v4102_v36  ;;  %4263 = vmatmul.f32.gmra.mxu1 %v4126_v23 }
 0x439   : > { %v5471_v46 = vpop.permute.xlu2 %5470 }
 0x43a   : > { %v5461_v22 = vpop.permute.xlu0 %5460  ;;  %v5473_v57 = vunpack.i.h.bf16 %v5471_v46  ;;  %v5472_v53 = vunpack.i.l.bf16 %v5471_v46 }
 0x43b   : > { %v5463_v6 = vunpack.i.h.bf16 %v5461_v22  ;;  %v5462_v17 = vunpack.i.l.bf16 %v5461_v22 }
 0x43c   : > { %v5451_v24 = vpop.permute.xlu1 %5450 }
 0x43d   : > { %v5453_v58 = vunpack.i.h.bf16 %v5451_v24  ;;  %v5452_v50 = vunpack.i.l.bf16 %v5451_v24  ;;  %v4086_v37 = vsel %vm3579_vm3, %v7947_v18, %v5462_v17  ;;  %v4112_v30 = vsel %vm3579_vm3, %v7993_v10, %v5463_v6 }
 0x43f   : > { %v4094_v13 = vsel %vm4088_vm13, %v4085_v15, %v5452_v50  ;;  %v4119_v60 = vsel %vm4088_vm13, %v4111_v62, %v5453_v58 }
 0x440   : > { %v4103_v49 = vsel %vm4097_vm14, %v4094_v13, %v5457_v29  ;;  %v4127_v25 = vsel %vm4097_vm14, %v4119_v60, %v5458_v5 }
 0x441   : > { %4225 = vmatmul.f32.gmra.mxu0 %v4103_v49  ;;  %4266 = vmatmul.f32.gmra.mxu1 %v4127_v25  ;;  %v5486_v14 = vpop.permute.xlu2 %5485 }
 0x442   : > { %v5488_v0 = vunpack.i.h.bf16 %v5486_v14  ;;  %v5487_v51 = vunpack.i.l.bf16 %v5486_v14 }
 0x44f   : > { %v4211_v44 = vpop.f32.mrf.mxu0  ;;  %v4252_v34 = vpop.f32.mrf.mxu1 }
 0x450   : > { %v4212_v28 = vadd.f32 %v8074_v43, %v4211_v44  ;;  %v5476_v52 = vpop.permute.xlu0 %5475 }
 0x451   : > { %v5478_v10 = vunpack.i.h.bf16 %v5476_v52  ;;  %v5477_v26 = vunpack.i.l.bf16 %v5476_v52 }
 0x452   : > { %v5466_v61 = vpop.permute.xlu1 %5465  ;;  %v4253_v21 = vadd.f32 %v4252_v34, %v4212_v28 }
 0x453   : > { %v5468_v16 = vunpack.i.h.bf16 %v5466_v61  ;;  %v5467_v47 = vunpack.i.l.bf16 %v5466_v61  ;;  %v4087_v4 = vsel %vm3579_vm3, %v7995_v63, %v5477_v26  ;;  %v4113_v27 = vsel %vm3579_vm3, %v8023_v9, %v5478_v10  ;;  %v4296_v9 = vpop.f32.mrf.mxu2 }
 0x454   : > { %v4294_v35 = vadd.f32 %v4293_v54, %v4253_v21  ;;  %v4604_v54 = vld [vmem:[#allocation4 + $0x2] sm:$0xf] }
 0x455   : > { %v4095_v45 = vsel %vm4088_vm13, %v4086_v37, %v5467_v47  ;;  %v4120_v2 = vsel %vm4088_vm13, %v4112_v30, %v5468_v16 }
 0x456   : > { %v4104_v11 = vsel %vm4097_vm14, %v4095_v45, %v5472_v53  ;;  %v4128_v18 = vsel %vm4097_vm14, %v4120_v2, %v5473_v57  ;;  %v4317_v19 = vmax.f32 %v4294_v35, 0.0  ;;  %v4600_v2 = vld [vmem:[#allocation4 + $0x1] sm:$0xf] }
 0x457   : > { %4228 = vmatmul.f32.gmra.mxu0 %v4104_v11  ;;  %4269 = vmatmul.f32.gmra.mxu1 %v4128_v18 }
 0x458   : > { %v4333_v12 = vrot.slane %v4317_v19, 2  ;;  %v4334_v36 = vrot.slane %v4317_v19, 4  ;;  %v4335_v32 = vrot.slane %v4317_v19, 6  ;;  %v5272_v38 = vrot.slane %v4317_v19, 9 }
 0x45a   : > { %v5481_v8 = vpop.permute.xlu1 %5480  ;;  %v5273_v42 = vrot.slane %v4333_v12, 9  ;;  %v5274_v39 = vrot.slane %v4334_v36, 9  ;;  %v5275_v24 = vrot.slane %v4335_v32, 9  ;;  %v4477_v29 = vmax.f32 %v4317_v19, %v5272_v38 }
 0x45b   : > { %v5483_v59 = vunpack.i.h.bf16 %v5481_v8  ;;  %v5482_v7 = vunpack.i.l.bf16 %v5481_v8  ;;  %v4299_v8 = vpop.f32.mrf.mxu2 }
 0x45c   : > { %v4478_v49 = vmax.f32 %v4333_v12, %v5273_v42  ;;  %v4479_v25 = vmax.f32 %v4334_v36, %v5274_v39  ;;  %v4480_v22 = vmax.f32 %v4335_v32, %v5275_v24 }
 0x45d   : > { %v4096_v55 = vsel %vm4088_vm13, %v4087_v4, %v5482_v7  ;;  %v4121_v1 = vsel %vm4088_vm13, %v4113_v27, %v5483_v59 }
 0x45e   : > { %v4105_v56 = vsel %vm4097_vm14, %v4096_v55, %v5487_v51  ;;  %v4129_v20 = vsel %vm4097_vm14, %v4121_v1, %v5488_v0 }
 0x45f   : > { %v4214_v41 = vpop.f32.mrf.mxu0  ;;  %4231 = vmatmul.f32.gmra.mxu0 %v4105_v56  ;;  %4272 = vmatmul.f32.gmra.mxu1 %v4129_v20  ;;  %v4255_v33 = vpop.f32.mrf.mxu1 }
 0x460   : > { %v4215_v63 = vadd.f32 %v8074_v43, %v4214_v41 }
 0x462   : > { %v4256_v40 = vadd.f32 %v4255_v33, %v4215_v63 }
 0x463   : > { %v4302_v19 = vpop.f32.mrf.mxu2 }
 0x464   : > { %v4297_v23 = vadd.f32 %v4296_v9, %v4256_v40 }
 0x466   : > { %v4318_v31 = vmax.f32 %v4297_v23, 0.0 }
 0x468   : > { %v4336_v58 = vrot.slane %v4318_v31, 2  ;;  %v4337_v50 = vrot.slane %v4318_v31, 4  ;;  %v4338_v3 = vrot.slane %v4318_v31, 6  ;;  %v5276_v5 = vrot.slane %v4318_v31, 9 }
 0x46a   : > { %v5277_v15 = vrot.slane %v4336_v58, 9  ;;  %v5278_v62 = vrot.slane %v4337_v50, 9  ;;  %v5279_v13 = vrot.slane %v4338_v3, 9  ;;  %v4481_v60 = vmax.f32 %v4318_v31, %v5276_v5 }
 0x46c   : > { %v4482_v46 = vmax.f32 %v4336_v58, %v5277_v15  ;;  %v4483_v44 = vmax.f32 %v4337_v50, %v5278_v62  ;;  %v4484_v6 = vmax.f32 %v4338_v3, %v5279_v13  ;;  %v4509_v17 = vmax.f32 %v4477_v29, %v4481_v60 }
 0x46e   : > { %v4510_v61 = vmax.f32 %v4478_v49, %v4482_v46  ;;  %v4511_v28 = vmax.f32 %v4479_v25, %v4483_v44  ;;  %v4512_v16 = vmax.f32 %v4480_v22, %v4484_v6  ;;  %v4558_v47 = vperm.slane %v4509_v17, 0 }
 0x470   : > { %v4559_v57 = vperm.slane %v4510_v61, 0  ;;  %v4560_v53 = vperm.slane %v4511_v28, 0  ;;  %v4561_v37 = vperm.slane %v4512_v16, 0 }
 0x472   : > { %v4574_v30 = vsel %vm3735_vm4, %v4559_v57, %v4558_v47 }
 0x473   : > { %v4575_v52 = vsel %vm3737_vm5, %v4560_v53, %v4574_v30 }
 0x474   : > { %v4576_v34 = vsel %vm3739_vm6, %v4561_v37, %v4575_v52 }
 0x475   : > { %4592 = vst.msk [vmem:[#allocation4 + $0x9] sm:$0xf] %vm4591_vm1, %v4576_v34  ;;  %v4305_v34 = vpop.f32.mrf.mxu2 }
 0x478   : > { %v4217_v18 = vpop.f32.mrf.mxu0  ;;  %v4258_v10 = vpop.f32.mrf.mxu1 }
 0x479   : > { %v4218_v48 = vadd.f32 %v8074_v43, %v4217_v18 }
 0x47b   : > { %v4259_v26 = vadd.f32 %v4258_v10, %v4218_v48 }
 0x47c   : > { %v4597_v45 = vld [vmem:[#allocation4 + $0x8] sm:$0xf] }
 0x47d   : > { %4639 = vst [vmem:[#allocation1 + $0x1] ss:$2 sm:$0xff] %v4597_v45  ;;  %v4601_v21 = vld [vmem:[#allocation4 + $0x9] sm:$0xf]  ;;  %v4300_v59 = vadd.f32 %v4299_v8, %v4259_v26 }
 0x47e   : > { %v4605_v14 = vld [vmem:[#allocation4 + $0xa] sm:$0xf] }
 0x47f   : > { %v4319_v7 = vmax.f32 %v4300_v59, 0.0  ;;  %v4608_v27 = vld [vmem:[#allocation4 + $0x8] sm:$0xf] }
 0x480   : > { %v4612_v45 = vld [vmem:[#allocation4 + $0x9] sm:$0xf] }
 0x481   : > { %v4339_v56 = vrot.slane %v4319_v7, 2  ;;  %v4340_v20 = vrot.slane %v4319_v7, 4  ;;  %v4341_v41 = vrot.slane %v4319_v7, 6  ;;  %v5280_v33 = vrot.slane %v4319_v7, 9 }
 0x483   : > { %v5281_v9 = vrot.slane %v4339_v56, 9  ;;  %v5282_v12 = vrot.slane %v4340_v20, 9  ;;  %v5283_v36 = vrot.slane %v4341_v41, 9  ;;  %v4485_v42 = vmax.f32 %v4319_v7, %v5280_v33 }
 0x484   : > { %v8124_v11 = vld.sshfl [vmem:[#allocation1] sm:$0xff pattern:$0x75316420] }
 0x485   : > { %4654 = vst [vmem:[#allocation1 + $0x1] ss:$2 sm:$0xff] %v4601_v21  ;;  %v4486_v3 = vmax.f32 %v4339_v56, %v5281_v9  ;;  %v4487_v5 = vmax.f32 %v4340_v20, %v5282_v12  ;;  %v4488_v29 = vmax.f32 %v4341_v41, %v5283_v36 }
 0x486   : > { %4652 = vst [vmem:[#allocation1] ss:$2 sm:$0xff] %v4600_v2 }
 0x48d   : > { %v4659_v35 = vld.sshfl [vmem:[#allocation1] sm:$0xff pattern:$0x75316420] }
 0x48e   : > { %4661 = vrot.lane.b32.xlu0 %v4659_v35, %s5578_s20  ;;  %4673 = vst [vmem:[#allocation1 + $0x1] ss:$2 sm:$0xff] %v4605_v14  ;;  %v4308_v35 = vpop.f32.mrf.mxu2 }
 0x48f   : > { %4671 = vst [vmem:[#allocation1] ss:$2 sm:$0xff] %v4604_v54 }
 0x493   : > { %v4220_v0 = vpop.f32.mrf.mxu0  ;;  %v4261_v4 = vpop.f32.mrf.mxu1 }
 0x494   : > { %v4221_v51 = vadd.f32 %v8074_v43, %v4220_v0 }
 0x496   : > { %v4262_v55 = vadd.f32 %v4261_v4, %v4221_v51  ;;  %v8129_v1 = vld.sshfl [vmem:[#allocation1] sm:$0xff pattern:$0x75316420] }
 0x497   : > { %4686 = vst [vmem:[#allocation1] ss:$2 sm:$0xff] %v4608_v27  ;;  %v4616_v51 = vld [vmem:[#allocation4 + $0xa] sm:$0xf] }
 0x498   : > { %v4303_v63 = vadd.f32 %v4302_v19, %v4262_v55 }
 0x49a   : > { %v4320_v40 = vmax.f32 %v4303_v63, 0.0 }
 0x49c   : > { %v4342_v32 = vrot.slane %v4320_v40, 2  ;;  %v4343_v23 = vrot.slane %v4320_v40, 4  ;;  %v4344_v38 = vrot.slane %v4320_v40, 6  ;;  %v5284_v31 = vrot.slane %v4320_v40, 9 }
 0x49e   : > { %v5285_v39 = vrot.slane %v4342_v32, 9  ;;  %v5286_v24 = vrot.slane %v4343_v23, 9  ;;  %v5287_v58 = vrot.slane %v4344_v38, 9  ;;  %v4489_v50 = vmax.f32 %v4320_v40, %v5284_v31 }
 0x4a0   : > { %v4490_v15 = vmax.f32 %v4342_v32, %v5285_v39  ;;  %v4491_v62 = vmax.f32 %v4343_v23, %v5286_v24  ;;  %v4492_v13 = vmax.f32 %v4344_v38, %v5287_v58  ;;  %v4513_v60 = vmax.f32 %v4485_v42, %v4489_v50 }
 0x4a2   : > { %v4514_v49 = vmax.f32 %v4486_v3, %v4490_v15  ;;  %v4515_v25 = vmax.f32 %v4487_v5, %v4491_v62  ;;  %v4516_v22 = vmax.f32 %v4488_v29, %v4492_v13  ;;  %v4562_v46 = vperm.slane %v4513_v60, 0 }
 0x4a4   : > { %v4563_v44 = vperm.slane %v4514_v49, 0  ;;  %v4564_v6 = vperm.slane %v4515_v25, 0  ;;  %v4565_v17 = vperm.slane %v4516_v22, 0 }
 0x4a6   : > { %v4577_v61 = vsel %vm3735_vm4, %v4563_v44, %v4562_v46 }
 0x4a7   : > { %v4578_v28 = vsel %vm3737_vm5, %v4564_v6, %v4577_v61 }
 0x4a8   : > { %v4579_v16 = vsel %vm3739_vm6, %v4565_v17, %v4578_v28  ;;  %v4805_v17 = vld [vmem:[%s8458_s5 + $0x78] sm:$0xff] }
 0x4a9   : > { %4593 = vst.msk [vmem:[#allocation4 + $0x11] sm:$0xf] %vm4591_vm1, %v4579_v16  ;;  %4870 = vmatpush.msra.mxu3 %v4805_v17  ;;  %v4804_v16 = vld [vmem:[%s8458_s5 + $0x70] sm:$0xff] }
 0x4ab   : > { %4871 = vmatpush.msra.mxu3 %v4804_v16 }
 0x4ae   : > { %v4223_v57 = vpop.f32.mrf.mxu0  ;;  %v4264_v30 = vpop.f32.mrf.mxu1 }
 0x4af   : > { %v4224_v37 = vadd.f32 %v8074_v43, %v4223_v57  ;;  %v4311_v57 = vpop.f32.mrf.mxu2 }
 0x4b0   : > { %v4598_v47 = vld [vmem:[#allocation4 + $0x10] sm:$0xf] }
 0x4b1   : > { %v4609_v53 = vld [vmem:[#allocation4 + $0x10] sm:$0xf]  ;;  %4641 = vst [vmem:[#allocation1 + $0x10] ss:$2 sm:$0xff] %v4598_v47  ;;  %v4265_v52 = vadd.f32 %v4264_v30, %v4224_v37  ;;  %v4802_v30 = vld [vmem:[%s8458_s5 + $0x60] sm:$0xff] }
 0x4b2   : > { %4688 = vst [vmem:[#allocation1 + $0x1] ss:$2 sm:$0xff] %v4609_v53  ;;  %v4613_v18 = vld [vmem:[#allocation4 + $0x11] sm:$0xf] }
 0x4b3   : > { %v4306_v2 = vadd.f32 %v4305_v34, %v4265_v52  ;;  %v4617_v55 = vld [vmem:[#allocation4 + $0x12] sm:$0xf] }
 0x4b4   : > { %v4621_v5 = vld [vmem:[#allocation4 + $0x10] sm:$0xf] }
 0x4b5   : > { %v4321_v48 = vmax.f32 %v4306_v2, 0.0  ;;  %v4803_v53 = vld [vmem:[%s8458_s5 + $0x68] sm:$0xff] }
 0x4b6   : > { %4872 = vmatpush.msra.mxu3 %v4803_v53 }
 0x4b7   : > { %v4345_v8 = vrot.slane %v4321_v48, 2  ;;  %v4346_v59 = vrot.slane %v4321_v48, 4  ;;  %v4347_v7 = vrot.slane %v4321_v48, 6  ;;  %v5288_v27 = vrot.slane %v4321_v48, 9 }
 0x4b8   : > { %4873 = vmatpush.msra.mxu3 %v4802_v30  ;;  %v4791_v30 = vld [vmem:[%s8458_s5 + $0x8] sm:$0xff] }
 0x4b9   : > { %v4693_v21 = vld.sshfl [vmem:[#allocation1] sm:$0xff pattern:$0x75316420]  ;;  %v5289_v56 = vrot.slane %v4345_v8, 9  ;;  %v5290_v20 = vrot.slane %v4346_v59, 9  ;;  %v5291_v41 = vrot.slane %v4347_v7, 9  ;;  %v4493_v12 = vmax.f32 %v4321_v48, %v5288_v27 }
 0x4ba   : > { %4695 = vrot.lane.b32.xlu2 %v4693_v21, %s5578_s20  ;;  %4705 = vst [vmem:[#allocation1] ss:$2 sm:$0xff] %v4612_v45  ;;  %v4801_v21 = vld [vmem:[%s8458_s5 + $0x58] sm:$0xff] }
 0x4bb   : > { %4707 = vst [vmem:[#allocation1 + $0x1] ss:$2 sm:$0xff] %v4613_v18  ;;  %v4494_v31 = vmax.f32 %v4345_v8, %v5289_v56  ;;  %v4495_v42 = vmax.f32 %v4346_v59, %v5290_v20  ;;  %v4496_v39 = vmax.f32 %v4347_v7, %v5291_v41  ;;  %4874 = vmatpush.msra.mxu3 %v4801_v21 }
 0x4be   : > { %v4226_v10 = vpop.f32.mrf.mxu0  ;;  %v4267_v54 = vpop.f32.mrf.mxu1 }
 0x4bf   : > { %v4227_v26 = vadd.f32 %v8074_v43, %v4226_v10  ;;  %v4800_v10 = vld [vmem:[%s8458_s5 + $0x50] sm:$0xff] }
 0x4c0   : > { %4875 = vmatpush.msra.mxu3 %v4800_v10 }
 0x4c1   : > { %v4268_v14 = vadd.f32 %v4267_v54, %v4227_v26  ;;  %v4314_v54 = vpop.f32.mrf.mxu2 }
 0x4c2   : > { %v8138_v4 = vld.sshfl [vmem:[#allocation1] sm:$0xff pattern:$0x75316420] }
 0x4c3   : > { %v4309_v0 = vadd.f32 %v4308_v35, %v4268_v14  ;;  %4720 = vst [vmem:[#allocation1] ss:$2 sm:$0xff] %v4616_v51  ;;  %v4799_v35 = vld [vmem:[%s8458_s5 + $0x48] sm:$0xff] }
 0x4c4   : > { %4722 = vst [vmem:[#allocation1 + $0x1] ss:$2 sm:$0xff] %v4617_v55  ;;  %4876 = vmatpush.msra.mxu3 %v4799_v35  ;;  %v4602_v51 = vld [vmem:[#allocation4 + $0x11] sm:$0xf]  ;;  %v4797_v55 = vld [vmem:[%s8458_s5 + $0x38] sm:$0xff] }
 0x4c5   : > { %v4322_v19 = vmax.f32 %v4309_v0, 0.0 }
 0x4c7   : > { %v4348_v63 = vrot.slane %v4322_v19, 2  ;;  %v4349_v33 = vrot.slane %v4322_v19, 4  ;;  %v4350_v40 = vrot.slane %v4322_v19, 6  ;;  %v5292_v9 = vrot.slane %v4322_v19, 9 }
 0x4c9   : > { %v5293_v36 = vrot.slane %v4348_v63, 9  ;;  %v5294_v32 = vrot.slane %v4349_v33, 9  ;;  %v5295_v23 = vrot.slane %v4350_v40, 9  ;;  %v4497_v38 = vmax.f32 %v4322_v19, %v5292_v9  ;;  %v4796_v9 = vld [vmem:[%s8458_s5 + $0x30] sm:$0xff] }
 0x4cb   : > { %v4498_v24 = vmax.f32 %v4348_v63, %v5293_v36  ;;  %v4499_v58 = vmax.f32 %v4349_v33, %v5294_v32  ;;  %v4500_v50 = vmax.f32 %v4350_v40, %v5295_v23  ;;  %v4517_v3 = vmax.f32 %v4493_v12, %v4497_v38  ;;  %v8140_v29 = vld.sshfl [vmem:[#allocation1] sm:$0xff pattern:$0x75316420]  ;;  %v4625_v40 = vld [vmem:[#allocation4 + $0x11] sm:$0xf] }
 0x4cc   : > { %4739 = vst [vmem:[#allocation1] ss:$2 sm:$0xff] %v4621_v5 }
 0x4cd   : > { %v4518_v15 = vmax.f32 %v4494_v31, %v4498_v24  ;;  %v4519_v62 = vmax.f32 %v4495_v42, %v4499_v58  ;;  %v4520_v13 = vmax.f32 %v4496_v39, %v4500_v50  ;;  %v4566_v60 = vperm.slane %v4517_v3, 0  ;;  %v4795_v39 = vld [vmem:[%s8458_s5 + $0x28] sm:$0xff] }
 0x4cf   : > { %v4567_v49 = vperm.slane %v4518_v15, 0  ;;  %v4568_v25 = vperm.slane %v4519_v62, 0  ;;  %v4569_v22 = vperm.slane %v4520_v13, 0  ;;  %v4794_v13 = vld [vmem:[%s8458_s5 + $0x20] sm:$0xff] }
 0x4d1   : > { %v4580_v46 = vsel %vm3735_vm4, %v4567_v49, %v4566_v60 }
 0x4d2   : > { %v4581_v44 = vsel %vm3737_vm5, %v4568_v25, %v4580_v46  ;;  %v4793_v46 = vld [vmem:[%s8458_s5 + $0x18] sm:$0xff] }
 0x4d3   : > { %v4582_v6 = vsel %vm3739_vm6, %v4569_v22, %v4581_v44  ;;  %v4606_v44 = vld [vmem:[#allocation4 + $0x12] sm:$0xf] }
 0x4d4   : > { %4594 = vst.msk [vmem:[#allocation4 + $0x19] sm:$0xf] %vm4591_vm1, %v4582_v6  ;;  %v4229_v61 = vpop.f32.mrf.mxu0  ;;  %v4270_v28 = vpop.f32.mrf.mxu1 }
 0x4d5   : > { %v4230_v47 = vadd.f32 %v8074_v43, %v4229_v61 }
 0x4d7   : > { %v4271_v37 = vadd.f32 %v4270_v28, %v4230_v47  ;;  %v4792_v47 = vld [vmem:[%s8458_s5 + $0x10] sm:$0xff] }
 0x4d9   : > { %v4312_v52 = vadd.f32 %v4311_v57, %v4271_v37 }
 0x4db   : > { %v4599_v34 = vld [vmem:[#allocation4 + $0x18] sm:$0xf]  ;;  %v4323_v45 = vmax.f32 %v4312_v52, 0.0  ;;  %v4629_v52 = vld [vmem:[#allocation4 + $0x12] sm:$0xf] }
 0x4dc   : > { %4643 = vst [vmem:[#allocation1 + $0x11] ss:$2 sm:$0xff] %v4599_v34  ;;  %v4232_v2 = vpop.f32.mrf.mxu0  ;;  %v4622_v48 = vld [vmem:[#allocation4 + $0x18] sm:$0xf]  ;;  %v4273_v26 = vpop.f32.mrf.mxu1 }
 0x4dd   : > { %v4233_v18 = vadd.f32 %v8074_v43, %v4232_v2  ;;  %4741 = vst [vmem:[#allocation1 + $0x1] ss:$2 sm:$0xff] %v4622_v48  ;;  %v4351_v8 = vrot.slane %v4323_v45, 2  ;;  %v4352_v59 = vrot.slane %v4323_v45, 4  ;;  %v4353_v7 = vrot.slane %v4323_v45, 6  ;;  %v4798_v43 = vld [vmem:[%s8458_s5 + $0x40] sm:$0xff] }
 0x4de   : > { %v5296_v27 = vrot.slane %v4323_v45, 9  ;;  %v4603_v19 = vld [vmem:[#allocation4 + $0x19] sm:$0xf]  ;;  %4877 = vmatpush.msra.mxu3 %v4798_v43  ;;  %v4790_v48 = vld [vmem:[%s8458_s5] sm:$0xff] }
 0x4df   : > { %v4274_v14 = vadd.f32 %v4273_v26, %v4233_v18  ;;  %v5297_v41 = vrot.slane %v4351_v8, 9  ;;  %v5298_v63 = vrot.slane %v4352_v59, 9  ;;  %v5299_v33 = vrot.slane %v4353_v7, 9  ;;  %v4626_v31 = vld [vmem:[#allocation4 + $0x19] sm:$0xf] }
 0x4e0   : > { %4878 = vmatpush.msra.mxu3 %v4797_v55  ;;  %v4501_v38 = vmax.f32 %v4323_v45, %v5296_v27  ;;  %v4607_v28 = vld [vmem:[#allocation4 + $0x1a] sm:$0xf]  ;;  %v4819_v55 = vld [vmem:[%s8458_s5 + $0xe8] sm:$0xff] }
 0x4e1   : > { %v4315_v0 = vadd.f32 %v4314_v54, %v4274_v14  ;;  %v4502_v5 = vmax.f32 %v4351_v8, %v5297_v41  ;;  %v4503_v15 = vmax.f32 %v4352_v59, %v5298_v63  ;;  %v4504_v62 = vmax.f32 %v4353_v7, %v5299_v33  ;;  %v4630_v21 = vld [vmem:[#allocation4 + $0x1a] sm:$0xf]  ;;  %v4818_v33 = vld [vmem:[%s8458_s5 + $0xe0] sm:$0xff] }
 0x4e2   : > { %4879 = vmatpush.msra.mxu3 %v4796_v9  ;;  %v4610_v26 = vld [vmem:[#allocation4 + $0x18] sm:$0xf] }
 0x4e3   : > { %v8175_v56 = vld.sshfl [vmem:[#allocation1 + $0x10] sm:$0xff pattern:$0x75316420]  ;;  %v4324_v20 = vmax.f32 %v4315_v0, 0.0  ;;  %v4821_v0 = vld [vmem:[%s8458_s5 + $0xf8] sm:$0xff] }
 0x4e4   : > { %4658 = vst [vmem:[#allocation1 + $0x11] ss:$2 sm:$0xff] %v4603_v19  ;;  %v8180_v42 = vld.sshfl [vmem:[#allocation1] sm:$0xff pattern:$0x75316420]  ;;  %4880 = vmatpush.msra.mxu3 %v4795_v39  ;;  %v4820_v27 = vld [vmem:[%s8458_s5 + $0xf0] sm:$0xff] }
 0x4e5   : > { %4656 = vst [vmem:[#allocation1 + $0x10] ss:$2 sm:$0xff] %v4602_v51  ;;  %v4354_v12 = vrot.slane %v4324_v20, 2  ;;  %v4355_v36 = vrot.slane %v4324_v20, 4  ;;  %v4356_v32 = vrot.slane %v4324_v20, 6  ;;  %v5300_v23 = vrot.slane %v4324_v20, 9 }
 0x4e6   : > { %4754 = vst [vmem:[#allocation1] ss:$2 sm:$0xff] %v4625_v40  ;;  %4881 = vmatpush.msra.mxu3 %v4794_v13  ;;  %v4614_v59 = vld [vmem:[#allocation4 + $0x19] sm:$0xf]  ;;  %v4835_v19 = vld [vmem:[%s8458_s5 + $0x168] sm:$0xff]  ;;  %v4834_v40 = vld [vmem:[%s8458_s5 + $0x160] sm:$0xff] }
 0x4e7   : > { %v5301_v24 = vrot.slane %v4354_v12, 9  ;;  %v5302_v58 = vrot.slane %v4355_v36, 9  ;;  %v5303_v50 = vrot.slane %v4356_v32, 9  ;;  %v4505_v3 = vmax.f32 %v4324_v20, %v5300_v23  ;;  %4756 = vst [vmem:[#allocation1 + $0x1] ss:$2 sm:$0xff] %v4626_v31  ;;  %v4853_v20 = vld [vmem:[%s8458_s5 + $0x1f8] sm:$0xff] }
 0x4e8   : > { %4882 = vmatpush.msra.mxu3 %v4793_v46  ;;  %v4618_v51 = vld [vmem:[#allocation4 + $0x1a] sm:$0xf]  ;;  %4939 = vmatpush.msrb.mxu0 %v4853_v20  ;;  %v4850_v23 = vld [vmem:[%s8458_s5 + $0x1e0] sm:$0xff]  ;;  %v4849_v39 = vld [vmem:[%s8458_s5 + $0x1d8] sm:$0xff] }
 0x4e9   : > { %v4506_v60 = vmax.f32 %v4354_v12, %v5301_v24  ;;  %v4507_v49 = vmax.f32 %v4355_v36, %v5302_v58  ;;  %v4508_v25 = vmax.f32 %v4356_v32, %v5303_v50  ;;  %v4521_v22 = vmax.f32 %v4501_v38, %v4505_v3  ;;  %v4852_v9 = vld [vmem:[%s8458_s5 + $0x1f0] sm:$0xff]  ;;  %v4851_v12 = vld [vmem:[%s8458_s5 + $0x1e8] sm:$0xff]  ;;  %v4817_v36 = vld [vmem:[%s8458_s5 + $0xd8] sm:$0xff] }
 0x4ea   : > { %4883 = vmatpush.msra.mxu3 %v4792_v47  ;;  %v4833_v32 = vld [vmem:[%s8458_s5 + $0x158] sm:$0xff]  ;;  %4940 = vmatpush.msrb.mxu0 %v4852_v9  ;;  %v4816_v38 = vld [vmem:[%s8458_s5 + $0xd0] sm:$0xff]  ;;  %v4815_v24 = vld [vmem:[%s8458_s5 + $0xc8] sm:$0xff] }
 0x4eb   : > { %v4522_v6 = vmax.f32 %v4502_v5, %v4506_v60  ;;  %v4523_v17 = vmax.f32 %v4503_v15, %v4507_v49  ;;  %v4524_v61 = vmax.f32 %v4504_v62, %v4508_v25  ;;  %v4570_v57 = vperm.slane %v4521_v22, 0  ;;  %v4832_v31 = vld [vmem:[%s8458_s5 + $0x150] sm:$0xff]  ;;  %v4831_v58 = vld [vmem:[%s8458_s5 + $0x148] sm:$0xff]  ;;  %v4624_v50 = vld [vmem:[#allocation4 + $0x28] sm:$0xf] }
 0x4ec   : > { %v4660_v16 = vld.sshfl [vmem:[#allocation1 + $0x10] sm:$0xff pattern:$0x75316420]  ;;  %4884 = vmatpush.msra.mxu3 %v4791_v30  ;;  %4941 = vmatpush.msrb.mxu0 %v4851_v12  ;;  %v4814_v62 = vld [vmem:[%s8458_s5 + $0xc0] sm:$0xff]  ;;  %v4813_v49 = vld [vmem:[%s8458_s5 + $0xb8] sm:$0xff] }
 0x4ed   : > { %v4571_v53 = vperm.slane %v4522_v6, 0  ;;  %v4572_v37 = vperm.slane %v4523_v17, 0  ;;  %4663 = vrot.lane.b32.xlu1 %v4660_v16, %s5578_s20  ;;  %4675 = vst [vmem:[#allocation1 + $0x10] ss:$2 sm:$0xff] %v4606_v44  ;;  %v4573_v34 = vperm.slane %v4524_v61, 0  ;;  %v4848_v3 = vld [vmem:[%s8458_s5 + $0x1d0] sm:$0xff] }
 0x4ee   : > { %4677 = vst [vmem:[#allocation1 + $0x11] ss:$2 sm:$0xff] %v4607_v28  ;;  %v8199_v2 = vld.sshfl [vmem:[#allocation1] sm:$0xff pattern:$0x75316420]  ;;  %4885 = vmatpush.msra.mxu3 %v4790_v48  ;;  %4942 = vmatpush.msrb.mxu0 %v4850_v23  ;;  %v4829_v25 = vld [vmem:[%s8458_s5 + $0x138] sm:$0xff] }
 0x4ef   : > { %v4583_v45 = vsel %vm3735_vm4, %v4571_v53, %v4570_v57  ;;  %4773 = vst [vmem:[#allocation1] ss:$2 sm:$0xff] %v4629_v52  ;;  %v4830_v60 = vld [vmem:[%s8458_s5 + $0x140] sm:$0xff]  ;;  %v4812_v22 = vld [vmem:[%s8458_s5 + $0xb0] sm:$0xff]  ;;  %v4811_v44 = vld [vmem:[%s8458_s5 + $0xa8] sm:$0xff] }
 0x4f0   : > { %v4584_v18 = vsel %vm3737_vm5, %v4572_v37, %v4583_v45  ;;  %4775 = vst [vmem:[#allocation1 + $0x1] ss:$2 sm:$0xff] %v4630_v21  ;;  %4893 = vmatpush.msrb.mxu3 %v4821_v0  ;;  %4943 = vmatpush.msrb.mxu0 %v4849_v39  ;;  %v4828_v46 = vld [vmem:[%s8458_s5 + $0x130] sm:$0xff]  ;;  %v4827_v6 = vld [vmem:[%s8458_s5 + $0x128] sm:$0xff]  ;;  %v4628_v17 = vld [vmem:[#allocation4 + $0x29] sm:$0xf] }
 0x4f1   : > { %v4585_v10 = vsel %vm3739_vm6, %v4573_v34, %v4584_v18  ;;  %v4632_v16 = vld [vmem:[#allocation4 + $0x2a] sm:$0xf]  ;;  %v4847_v30 = vld [vmem:[%s8458_s5 + $0x1c8] sm:$0xff]  ;;  %v4809_v52 = vld [vmem:[%s8458_s5 + $0x98] sm:$0xff] }
 0x4f2   : > { %4595 = vst.msk [vmem:[#allocation4 + $0x21] sm:$0xf] %vm4591_vm1, %v4585_v10  ;;  %4894 = vmatpush.msrb.mxu3 %v4820_v27  ;;  %4944 = vmatpush.msrb.mxu0 %v4848_v3  ;;  %v4810_v53 = vld [vmem:[%s8458_s5 + $0xa0] sm:$0xff]  ;;  %v4825_v34 = vld [vmem:[%s8458_s5 + $0x118] sm:$0xff]  ;;  %v4824_v21 = vld [vmem:[%s8458_s5 + $0x110] sm:$0xff] }
 0x4f3   : > { %v4826_v37 = vld [vmem:[%s8458_s5 + $0x120] sm:$0xff]  ;;  %v4845_v18 = vld [vmem:[%s8458_s5 + $0x1b8] sm:$0xff]  ;;  %v4807_v48 = vld [vmem:[%s8458_s5 + $0x88] sm:$0xff] }
 0x4f4   : > { %4895 = vmatpush.msrb.mxu3 %v4819_v55  ;;  %4945 = vmatpush.msrb.mxu0 %v4847_v30  ;;  %v4846_v45 = vld [vmem:[%s8458_s5 + $0x1c0] sm:$0xff]  ;;  %v4823_v10 = vld [vmem:[%s8458_s5 + $0x108] sm:$0xff]  ;;  %v4861_v0 = vld [vmem:[%s8458_s5 + $0x238] sm:$0xff] }
 0x4f5   : > { %4729 = vrot.lane.b32.xlu1 %v8140_v29, %s5578_s20  ;;  %v8209_v54 = vld.sshfl [vmem:[#allocation1 + $0x10] sm:$0xff pattern:$0x75316420]  ;;  %v4837_v29 = vld [vmem:[%s8458_s5 + $0x178] sm:$0xff]  ;;  %v4859_v27 = vld [vmem:[%s8458_s5 + $0x228] sm:$0xff] }
 0x4f6   : > { %4690 = vst [vmem:[#allocation1 + $0x10] ss:$2 sm:$0xff] %v4610_v26  ;;  %4916 = vmatpush.msrb.mxu2 %v4837_v29  ;;  %4896 = vmatpush.msrb.mxu3 %v4818_v33  ;;  %v4844_v26 = vld [vmem:[%s8458_s5 + $0x1b0] sm:$0xff]  ;;  %v4839_v29 = vld [vmem:[%s8458_s5 + $0x188] sm:$0xff]  ;;  %v4858_v55 = vld [vmem:[%s8458_s5 + $0x220] sm:$0xff] }
 0x4f7   : > { %4946 = vmatpush.msrb.mxu0 %v4846_v45  ;;  %v4856_v20 = vld [vmem:[%s8458_s5 + $0x210] sm:$0xff]  ;;  %v4854_v33 = vld [vmem:[%s8458_s5 + $0x200] sm:$0xff] }
 0x4f8   : > { %4897 = vmatpush.msrb.mxu3 %v4817_v36 }
 0x4f9   : > { %v4611_v14 = vld [vmem:[#allocation4 + $0x20] sm:$0xf]  ;;  %4947 = vmatpush.msrb.mxu0 %v4845_v18 }
 0x4fa   : > { %4692 = vst [vmem:[#allocation1 + $0x11] ss:$2 sm:$0xff] %v4611_v14  ;;  %v4615_v43 = vld [vmem:[#allocation4 + $0x21] sm:$0xf]  ;;  %4898 = vmatpush.msrb.mxu3 %v4816_v38  ;;  %v4806_v14 = vld [vmem:[%s8458_s5 + $0x80] sm:$0xff] }
 0x4fb   : > { %v4619_v41 = vld [vmem:[#allocation4 + $0x22] sm:$0xf]  ;;  %4948 = vmatpush.msrb.mxu0 %v4844_v26 }
 0x4fc   : > { %v4623_v5 = vld [vmem:[#allocation4 + $0x20] sm:$0xf]  ;;  %4899 = vmatpush.msrb.mxu3 %v4815_v24 }
 0x4fd   : > { %v4627_v61 = vld [vmem:[#allocation4 + $0x21] sm:$0xf] }
 0x4fe   : > { %4900 = vmatpush.msrb.mxu3 %v4814_v62  ;;  %v4631_v47 = vld [vmem:[#allocation4 + $0x22] sm:$0xf]  ;;  %v5505_v62 = vld [vmem:[%s8459_s6] ss:$0 sm:$0xff] }
 0x500   : > { %v4662_v35 = vpop.permute.xlu0 %4661  ;;  %4901 = vmatpush.msrb.mxu3 %v4813_v49 }
 0x501   : > { %v4782_v8 = vsel %vm4088_vm13, %v8124_v11, %v4662_v35  ;;  %v4694_v7 = vld.sshfl [vmem:[#allocation1 + $0x10] sm:$0xff pattern:$0x75316420]  ;;  %v4822_v35 = vld [vmem:[%s8458_s5 + $0x100] sm:$0xff] }
 0x502   : > { %4886 = vmatmul.f32.vlgmr.msra.gmra.mxu3 %v4782_v8  ;;  %4709 = vst [vmem:[#allocation1 + $0x10] ss:$2 sm:$0xff] %v4614_v59  ;;  %4697 = vrot.lane.b32.xlu0 %v4694_v7, %s5578_s20  ;;  %v4836_v11 = vld [vmem:[%s8458_s5 + $0x170] sm:$0xff]  ;;  %v4843_v8 = vld [vmem:[%s8458_s5 + $0x1a8] sm:$0xff]  ;;  %v4842_v59 = vld [vmem:[%s8458_s5 + $0x1a0] sm:$0xff] }
 0x503   : > { %4711 = vst [vmem:[#allocation1 + $0x11] ss:$2 sm:$0xff] %v4615_v43  ;;  %4917 = vmatpush.msrb.mxu2 %v4836_v11  ;;  %4902 = vmatpush.msrb.mxu3 %v4812_v22  ;;  %v4841_v7 = vld [vmem:[%s8458_s5 + $0x198] sm:$0xff]  ;;  %v4840_v43 = vld [vmem:[%s8458_s5 + $0x190] sm:$0xff]  ;;  %v4838_v11 = vld [vmem:[%s8458_s5 + $0x180] sm:$0xff] }
 0x504   : > { %4949 = vmatpush.msrb.mxu0 %v4843_v8 }
 0x505   : > { %4918 = vmatpush.msrb.mxu2 %v4835_v19  ;;  %4903 = vmatpush.msrb.mxu3 %v4811_v44  ;;  %v4857_v19 = vld [vmem:[%s8458_s5 + $0x218] sm:$0xff] }
 0x506   : > { %4950 = vmatpush.msrb.mxu0 %v4842_v59 }
 0x507   : > { %4919 = vmatpush.msrb.mxu2 %v4834_v40  ;;  %4904 = vmatpush.msrb.mxu3 %v4810_v53 }
 0x508   : > { %4951 = vmatpush.msrb.mxu0 %v4841_v7 }
 0x509   : > { %4920 = vmatpush.msrb.mxu2 %v4833_v32  ;;  %4905 = vmatpush.msrb.mxu3 %v4809_v52 }
 0x50a   : > { %v8235_v63 = vld.sshfl [vmem:[#allocation1 + $0x10] sm:$0xff pattern:$0x75316420]  ;;  %4952 = vmatpush.msrb.mxu0 %v4840_v43 }
 0x50b   : > { %4724 = vst [vmem:[#allocation1 + $0x10] ss:$2 sm:$0xff] %v4618_v51  ;;  %4921 = vmatpush.msrb.mxu2 %v4832_v31  ;;  %v4860_v51 = vld [vmem:[%s8458_s5 + $0x230] sm:$0xff] }
 0x50c   : > { %4726 = vst [vmem:[#allocation1 + $0x11] ss:$2 sm:$0xff] %v4619_v41  ;;  %4953 = vmatpush.msrb.mxu0 %v4839_v29  ;;  %v4855_v41 = vld [vmem:[%s8458_s5 + $0x208] sm:$0xff] }
 0x50d   : > { %4922 = vmatpush.msrb.mxu2 %v4831_v58 }
 0x50e   : > { %4954 = vmatpush.msrb.mxu0 %v4838_v11 }
 0x50f   : > { %4923 = vmatpush.msrb.mxu2 %v4830_v60 }
 0x511   : > { %4924 = vmatpush.msrb.mxu2 %v4829_v25 }
 0x513   : > { %v4728_v15 = vld.sshfl [vmem:[#allocation1 + $0x10] sm:$0xff pattern:$0x75316420]  ;;  %4925 = vmatpush.msrb.mxu2 %v4828_v46 }
 0x514   : > { %4743 = vst [vmem:[#allocation1 + $0x10] ss:$2 sm:$0xff] %v4623_v5  ;;  %v5489_v13 = vpack.i.bf16 %v8199_v2, %v4728_v15  ;;  %v4808_v2 = vld [vmem:[%s8458_s5 + $0x90] sm:$0xff]  ;;  %v4696_v12 = vpop.permute.xlu2 %4695 }
 0x515   : > { %4745 = vst [vmem:[#allocation1 + $0x11] ss:$2 sm:$0xff] %v4624_v50  ;;  %4926 = vmatpush.msrb.mxu2 %v4827_v6  ;;  %4906 = vmatpush.msrb.mxu3 %v4808_v2  ;;  %v4784_v32 = vsel %vm4088_vm13, %v8129_v1, %v4696_v12  ;;  %v4780_v50 = vld.sshfl [vmem:[#allocation1] sm:$0xff pattern:$0x75316420] }
 0x516   : > { %5490 = vrot.lane.b32.xlu2 %v5489_v13, %s5578_s20 }
 0x517   : > { %4927 = vmatpush.msrb.mxu2 %v4826_v37  ;;  %4907 = vmatpush.msrb.mxu3 %v4807_v48 }
 0x519   : > { %4928 = vmatpush.msrb.mxu2 %v4825_v34  ;;  %4908 = vmatpush.msrb.mxu3 %v4806_v14 }
 0x51b   : > { %4929 = vmatpush.msrb.mxu2 %v4824_v21  ;;  %4970 = vmatpush.msra.mxu3 %v4861_v0 }
 0x51c   : > { %v8302_v28 = vld.sshfl [vmem:[#allocation1 + $0x10] sm:$0xff pattern:$0x75316420] }
 0x51d   : > { %4758 = vst [vmem:[#allocation1 + $0x10] ss:$2 sm:$0xff] %v4627_v61  ;;  %4930 = vmatpush.msrb.mxu2 %v4823_v10  ;;  %4971 = vmatpush.msra.mxu3 %v4860_v51 }
 0x51e   : > { %4760 = vst [vmem:[#allocation1 + $0x11] ss:$2 sm:$0xff] %v4628_v17 }
 0x51f   : > { %4931 = vmatpush.msrb.mxu2 %v4822_v35  ;;  %4972 = vmatpush.msra.mxu3 %v4859_v27 }
 0x521   : > { %4973 = vmatpush.msra.mxu3 %v4858_v55 }
 0x523   : > { %4974 = vmatpush.msra.mxu3 %v4857_v19 }
 0x525   : > { %v4762_v57 = vld.sshfl [vmem:[#allocation1 + $0x10] sm:$0xff pattern:$0x75316420]  ;;  %4975 = vmatpush.msra.mxu3 %v4856_v20 }
 0x526   : > { %4777 = vst [vmem:[#allocation1 + $0x10] ss:$2 sm:$0xff] %v4631_v47  ;;  %4765 = vrot.lane.b32.xlu0 %v4762_v57, %s5578_s20  ;;  %s8412_s20 = scalar_lea.vmem [#allocation5], %s5133_s8  ;;  %s5530_s8 = scalar_lea.hbm %s8460_s7, 8 }
 0x527   : > { %4779 = vst [vmem:[#allocation1 + $0x11] ss:$2 sm:$0xff] %v4632_v16  ;;  %4976 = vmatpush.msra.mxu3 %v4855_v41  ;;  %s5064_s16 = sshll.u32 %s8412_s20, 4  ;;  %p5532_p1 = scmp.lt.s32.totalorder %s5530_s8, %s5526_s22  ;;  %s5065_s16 = int_to_ptr.vmem [resolvable:$true] %s5064_s16 }
 0x529   : > { %4977 = vmatpush.msra.mxu3 %v4854_v33  ;;  %p5533_p2 = por %p5532_p1, %p5531_p0 }
 0x52b   : > { %p5534_p3 = pnand %p5533_p2, %p5529_p13 }
 0x55f   : > { %v4664_v40 = vpop.permute.xlu1 %4663 }
 0x560   : > { %v4783_v9 = vsel %vm4088_vm13, %v8175_v56, %v4664_v40 }
 0x561   : > { %4889 = vmatmul.f32.gmra.mxu3 %v4783_v9 }
 0x567   : > { %v4730_v36 = vpop.permute.xlu1 %4729 }
 0x568   : > { %v4786_v23 = vsel %vm4088_vm13, %v8138_v4, %v4730_v36  ;;  %v4781_v4 = vld.sshfl [vmem:[#allocation1 + $0x10] sm:$0xff pattern:$0x75316420] }
 0x569   : > { %4909 = vmatmul.f32.vlgmr.msrb.gmra.mxu3 %v4784_v32  ;;  %4932 = vmatmul.f32.vlgmr.msrb.gmra.mxu2 %v4786_v23 }
 0x570   : > { %v5491_v38 = vpop.permute.xlu2 %5490 }
 0x571   : > { %v5493_v31 = vunpack.i.h.bf16 %v5491_v38  ;;  %v5492_v39 = vunpack.i.l.bf16 %v5491_v38 }
 0x573   : > { %v4787_v24 = vsel %vm4088_vm13, %v8235_v63, %v5492_v39  ;;  %v4788_v56 = vsel %vm4088_vm13, %v8180_v42, %v5493_v31 }
 0x574   : > { %4935 = vmatmul.f32.gmra.mxu2 %v4787_v24  ;;  %4955 = vmatmul.f32.vlgmr.msrb.gmra.mxu0 %v4788_v56  ;;  %v4698_v58 = vpop.permute.xlu0 %4697 }
 0x575   : > { %v4785_v1 = vsel %vm4088_vm13, %v8209_v54, %v4698_v58 }
 0x576   : > { %4912 = vmatmul.f32.gmra.mxu3 %v4785_v1 }
 0x57e   : > { %5304 = vmatmul.msk.f32.vlgmr.msra.gmra.mxu3 %vm4088_vm13, %v4780_v50 }
 0x585   : > { %v4887_v5 = vpop.f32.mrf.mxu3 }
 0x586   : > { %5305 = vmatmul.msk.f32.gmra.mxu3 %vm4088_vm13, %v4781_v4  ;;  %v4888_v54 = vadd.f32 %v5505_v62, %v4887_v5 }
 0x598   : > { %v4766_v3 = vpop.permute.xlu0 %4765 }
 0x599   : > { %v4789_v63 = vsel %vm4088_vm13, %v8302_v28, %v4766_v3 }
 0x59a   : > { %4958 = vmatmul.f32.gmra.mxu0 %v4789_v63 }
 0x5e4   : > { %v4890_v42 = vpop.f32.mrf.mxu3 }
 0x5e5   : > { %v4891_v10 = vadd.f32 %v5505_v62, %v4890_v42 }
 0x5ec   : > { %v4910_v15 = vpop.f32.mrf.mxu3  ;;  %v4933_v49 = vpop.f32.mrf.mxu2 }
 0x5ed   : > { %v4911_v13 = vadd.f32 %v4910_v15, %v4888_v54 }
 0x5ef   : > { %v4934_v25 = vadd.f32 %v4933_v49, %v4911_v13 }
 0x5f1   : > { %v4956_v22 = vpop.f32.mrf.mxu0 }
 0x5f2   : > { %v4957_v46 = vadd.f32 %v4956_v22, %v4934_v25 }
 0x5f7   : > { %v4936_v35 = vpop.f32.mrf.mxu2 }
 0x5f9   : > { %v4913_v60 = vpop.f32.mrf.mxu3 }
 0x5fa   : > { %v4914_v14 = vadd.f32 %v4913_v60, %v4891_v10 }
 0x5fc   : > { %v4937_v8 = vadd.f32 %v4936_v35, %v4914_v14 }
 0x601   : > { %v4979_v44 = vpop.f32.mrf.mxu3 }
 0x602   : > { %v4980_v6 = vadd.f32 %v4979_v44, %v4957_v46 }
 0x604   : > { %v4985_v17 = vmax.f32 %v4980_v6, 0.0 }
 0x606   : > { %v4989_v61 = vrot.slane %v4985_v17, 2  ;;  %v4990_v28 = vrot.slane %v4985_v17, 4  ;;  %v4991_v16 = vrot.slane %v4985_v17, 6  ;;  %v5306_v47 = vrot.slane %v4985_v17, 9 }
 0x608   : > { %v5307_v57 = vrot.slane %v4989_v61, 9  ;;  %v5308_v53 = vrot.slane %v4990_v28, 9  ;;  %v5309_v37 = vrot.slane %v4991_v16, 9  ;;  %v5025_v30 = vmax.f32 %v4985_v17, %v5306_v47 }
 0x609   : > { %v4982_v43 = vpop.f32.mrf.mxu3 }
 0x60a   : > { %v5026_v52 = vmax.f32 %v4989_v61, %v5307_v57  ;;  %v5027_v34 = vmax.f32 %v4990_v28, %v5308_v53  ;;  %v5028_v45 = vmax.f32 %v4991_v16, %v5309_v37 }
 0x60c   : > { %v5033_v2 = vmax.f32 %v5025_v30, %v5027_v34  ;;  %v5034_v21 = vmax.f32 %v5026_v52, %v5028_v45 }
 0x60e   : > { %v5041_v18 = vperm.slane %v5033_v2, 0  ;;  %v5042_v48 = vperm.slane %v5034_v21, 0 }
 0x610   : > { %v5045_v26 = vsel %vm3735_vm4, %v5042_v48, %v5041_v18 }
 0x611   : > { %5049 = vst [vmem:[%s8412_s20] sm:$0x3] %v5045_v26 }
 0x617   : > { %v4959_v59 = vpop.f32.mrf.mxu0 }
 0x618   : > { %v4960_v7 = vadd.f32 %v4959_v59, %v4937_v8 }
 0x61a   : > { %v4983_v29 = vadd.f32 %v4982_v43, %v4960_v7 }
 0x61c   : > { %v4986_v0 = vmax.f32 %v4983_v29, 0.0 }
 0x61e   : > { %v4992_v11 = vrot.slane %v4986_v0, 2  ;;  %v4993_v51 = vrot.slane %v4986_v0, 4  ;;  %v4994_v27 = vrot.slane %v4986_v0, 6  ;;  %v5310_v55 = vrot.slane %v4986_v0, 9 }
 0x620   : > { %v5311_v19 = vrot.slane %v4992_v11, 9  ;;  %v5312_v20 = vrot.slane %v4993_v51, 9  ;;  %v5313_v41 = vrot.slane %v4994_v27, 9  ;;  %v5029_v33 = vmax.f32 %v4986_v0, %v5310_v55 }
 0x622   : > { %v5030_v40 = vmax.f32 %v4992_v11, %v5311_v19  ;;  %v5031_v9 = vmax.f32 %v4993_v51, %v5312_v20  ;;  %v5032_v12 = vmax.f32 %v4994_v27, %v5313_v41 }
 0x624   : > { %v5035_v36 = vmax.f32 %v5029_v33, %v5031_v9  ;;  %v5036_v32 = vmax.f32 %v5030_v40, %v5032_v12 }
 0x626   : > { %v5043_v23 = vperm.slane %v5035_v36, 0  ;;  %v5044_v38 = vperm.slane %v5036_v32, 0 }
 0x628   : > { %v5046_v31 = vsel %vm3735_vm4, %v5044_v38, %v5043_v23 }
 0x629   : > { %5050 = vst [vmem:[%s8412_s20 + $0x2] sm:$0x3] %v5046_v31 }
 0x62a   : > { %5537 = shalt.err (!%p5534_p3)
}
 0x62b   : > { %s5579_s19 = smov 2  }
 0x62c   : > { %5321 = dma.vmem_to_hbm [thread:$0]  (%p5658_p5), %s5065_s16, 64, %s5067_s17, %s5052_s28, %s5576_s18, %s5576_s18, %s5579_s19  }
 0x62d PF: > { %p5327_p4 = scmp.ge.s32.totalorder %s5572_s27, 2  ;;  %s5081_s20 = sand.u32 1, %s5560_s24  }
 0x62e   : > { %s5082_s14 = scalar_lea.sflag [#allocation6], %s5081_s20 }
 0x62f   : > { %p5324_p7 = pnand %p5327_p4, %p5662_p6 }
 0x631   : > { %p5325_p8 = pneg %p5324_p7 }
 0x633   : > { %5555 = dma.done.wait (%p5325_p8), %s5082_s14, 64  }
 0x634   : > { %5557 = vsyncadd (%p5325_p8), %s5082_s14, 4294967232  ;;  %p17_p9 = scmp.ge.s32.totalorder %s5645_s30, 4   ;;  %s8976_s24 = smov %s5564_s25 }
 0x635   : > { %s8977_s25 = smov %s5568_s26  ;;  %s8978_s26 = smov %s5656_s10 }
 0x636   : > { %s8979_s27 = smov %s5645_s30  ;;  %19 = sbr.rel (!%p17_p9) target bundleno = 3 (0x3), region = 119 }
 0x63b   :  { %5088 = vsyncpa [#allocation6], 1 }
 0x63c   :  { %5090 = vsyncpa [#allocation6 + $0x1], 1 }

</bundles_post_ra>
